<compile_context>
chip_gen: v6e
topology: v6e:2x2x1
jax: 0.10.0
libtpu: 0.0.40
codegen_flags: <defaults>
</compile_context>

<pallas_src>
import jax
import jax.numpy as jnp
from jax import lax
from jax.experimental import pallas as pl
from jax.experimental.pallas import tpu as pltpu


def _make_kernel(H, W, C1, halo, nb):
    HW = H * W
    H2, W2 = H // 2, W // 2
    S = H2 * W2

    def kernel(x_ref, w1_ref, w2_ref, b_ref, o_ref, hal_ref, slab_ref, pool_ref):
        # Hoisted per-step constants (JAX does not CSE broadcast_in_dim -> build once).
        w_idx = lax.broadcasted_iota(jnp.int32, (HW, 1), 0) % W
        left_ok = w_idx > 0                 # neighbour at w-1 exists
        right_ok = w_idx < W - 1            # neighbour at w+1 exists
        eye = (lax.broadcasted_iota(jnp.int32, (C1, C1), 0) ==
               lax.broadcasted_iota(jnp.int32, (C1, C1), 1)).astype(jnp.float32)
        b1 = b_ref[pl.ds(0, 1), :]          # (1, C1) f32
        b2 = b_ref[pl.ds(1, 1), :]          # (1, C1) f32

        # Zero halo rows once per grid step (unconditional on purpose: megacore-safe).
        hal_ref[pl.ds(0, halo), :] = jnp.zeros((halo, C1), jnp.float32)
        hal_ref[pl.ds(halo + HW, halo), :] = jnp.zeros((halo, C1), jnp.float32)

        for n in range(nb):                 # images folded into this grid step (unrolled)
            # ---- conv1: one shallow MXU matmul (K = 9*Cin padded to 32), f32 bias + ReLU ----
            h1 = jnp.dot(x_ref[n], w1_ref[...], preferred_element_type=jnp.float32)
            h1 = jnp.maximum(h1 + b1, 0.0)                        # (HW, C1) f32

            # ---- conv2 im2col: zero-haloed scratch -> bf16 slab built directly in VMEM ----
            hal_ref[pl.ds(halo, HW), :] = h1

            def tap(t):
                dy, dx = divmod(t, 3)
                d = (dy - 1) * W + (dx - 1)
                # row (dy) padding is free: out-of-range rows land in the zero halo
                p = hal_ref[pl.ds(halo + d, HW), :]               # (HW, C1) f32
                if dx == 0:
                    p = jnp.where(left_ok, p, 0.0)                # mask in f32 (v5e-friendly)
                elif dx == 2:
                    p = jnp.where(right_ok, p, 0.0)
                return p.astype(jnp.bfloat16)

            for i in range(4):              # taps (0,1),(2,3),(4,5),(6,7) -> aligned slots
                slab_ref[:, pl.ds(2 * C1 * i, 2 * C1)] = jnp.concatenate(
                    [tap(2 * i), tap(2 * i + 1)], axis=-1)
            slab_ref[:, pl.ds(8 * C1, C1)] = tap(8)               # last tap: 64-lane slot

            h2 = jnp.dot(slab_ref[...], w2_ref[...],
                         preferred_element_type=jnp.float32)
            h2 = jnp.maximum(h2 + b2, 0.0)                        # (HW, C1) f32

            # ---- 2x2 stride-2 maxpool ----
            pool_ref[...] = h2
            mw = jnp.maximum(pool_ref[pl.ds(0, H * W2, stride=2), :],
                             pool_ref[pl.ds(1, H * W2, stride=2), :])  # (H*W2, C1), row = h*W2+w2
            # h-max: the two h-rows of each pooled output live in adjacent 8-row-aligned
            # vreg slices of mw (rows 2*W2*j..+W2-1 and +W2..+2*W2-1), so 8 in-register maxes.
            rows = [jnp.maximum(mw[2 * W2 * j: 2 * W2 * j + W2, :],
                                mw[2 * W2 * j + W2: 2 * W2 * (j + 1), :])
                    for j in range(H2)]
            pooled = jnp.concatenate(rows, axis=0)                # (S, C1), row = h2*W2 + w2

            # ---- transpose (S, C1) -> (C1, S) on the MXU: I_C1 @ pooled^T (NT matmul) ----
            o_ref[n] = lax.dot_general(eye, pooled, (((1,), (1,)), ((), ())),
                                       preferred_element_type=jnp.float32)

    return kernel


def vgg16_head_forward(x_nchw, w1, b1, w2, b2, images_per_step=1):
    """x_nchw: (N,Cin,H,W) f32.  w1: (3,3,Cin,C1) HWIO, w2: (3,3,C1,C1) HWIO, b*: (C*,).

    images_per_step: images folded into one grid step.  1 keeps the parallel grid >= 2 so
    v7x's two TensorCores each take an image; on v5e/v6e it can be raised (e.g. to N) to
    amortize the fixed per-grid-step overhead.
    """
    N, Cin, H, W = x_nchw.shape
    C1 = w1.shape[-1]
    nb = images_per_step
    # Kernel is specialized for the VGG16-head geometry; assert the hard-coded assumptions.
    assert H == 16 and W == 16 and C1 == 64 and N % nb == 0, (N, Cin, H, W, C1, nb)

    HW = H * W
    H2, W2 = H // 2, W // 2
    S = H2 * W2
    K1 = 32                        # conv1 contraction: 9*Cin = 27, zero-padded to 32
    K2 = 9 * C1                    # conv2 contraction: 9 taps * C1 = 576 (bias added post-dot)
    halo = -(-(W + 1) // 8) * 8    # zero-halo rows above/below the image (>= W+1, 8-aligned)

    # conv1 im2col (layout plumbing on the tiny input).
    x_nhwc = jnp.transpose(x_nchw, (0, 2, 3, 1))
    xp = jnp.pad(x_nhwc, ((0, 0), (1, 1), (1, 1), (0, 0)))
    taps = [xp[:, dy:dy + H, dx:dx + W, :] for dy in range(3) for dx in range(3)]
    slab = jnp.concatenate(taps, axis=-1).reshape(N, HW, 9 * Cin)
    x_slab = jnp.concatenate(
        [slab, jnp.zeros((N, HW, K1 - 9 * Cin), slab.dtype)], axis=-1
    ).astype(jnp.bfloat16)                                         # (N, HW, 32) bf16

    w1_full = jnp.concatenate(
        [w1.reshape(9 * Cin, C1), jnp.zeros((K1 - 9 * Cin, C1), w1.dtype)], axis=0
    ).astype(jnp.bfloat16)                                         # (32, C1) bf16
    w2_full = w2.reshape(9 * C1, C1).astype(jnp.bfloat16)          # (576, C1) bf16
    b_all = jnp.stack([b1, b2], axis=0).astype(jnp.float32)        # (2, C1) f32

    kernel = _make_kernel(H, W, C1, halo, nb)

    out = pl.pallas_call(
        kernel,
        out_shape=jax.ShapeDtypeStruct((N, C1, S), jnp.float32),
        grid_spec=pltpu.PrefetchScalarGridSpec(
            num_scalar_prefetch=0,
            grid=(N // nb,),
            in_specs=[
                pl.BlockSpec((nb, HW, K1), lambda i: (i, 0, 0)),
                pl.BlockSpec((K1, C1), lambda i: (0, 0)),
                pl.BlockSpec((K2, C1), lambda i: (0, 0)),
                pl.BlockSpec((2, C1), lambda i: (0, 0)),
            ],
            out_specs=pl.BlockSpec((nb, C1, S), lambda i: (i, 0, 0)),
            scratch_shapes=[
                pltpu.VMEM((HW + 2 * halo, C1), jnp.float32),      # zero-haloed h1
                pltpu.VMEM((HW, K2), jnp.bfloat16),                # conv2 im2col slab
                pltpu.VMEM((HW, C1), jnp.float32),                 # pooling scratch
            ],
        ),
        compiler_params=pltpu.CompilerParams(dimension_semantics=("parallel",)),
    )(x_slab, w1_full, w2_full, b_all)

    # Kernel already emits (N, C1, H2*W2) == torch.flatten(x, 1) order; reshape is free.
    return out.reshape(N, C1 * S)


def reference(x_nchw, w1, b1, w2, b2):
    dn = ("NHWC", "HWIO", "NHWC")
    x = jnp.transpose(x_nchw, (0, 2, 3, 1))
    h = lax.conv_general_dilated(x, w1, (1, 1), "SAME", dimension_numbers=dn)
    h = jnp.maximum(h + b1, 0.0)
    h = lax.conv_general_dilated(h, w2, (1, 1), "SAME", dimension_numbers=dn)
    h = jnp.maximum(h + b2, 0.0)
    p = lax.reduce_window(h, -jnp.inf, lax.max, (1, 2, 2, 1), (1, 2, 2, 1), "VALID")
    p = jnp.transpose(p, (0, 3, 1, 2))     # back to NCHW
    return p.reshape(p.shape[0], -1)       # torch.flatten(x, 1)


if __name__ == "__main__":
    key = jax.random.PRNGKey(0)
    k1, k2, k3, k4, k5 = jax.random.split(key, 5)

    N, Cin, H, W, C1 = 2, 3, 16, 16, 64
    x = jax.random.normal(k1, (N, Cin, H, W), jnp.float32)
    w1 = 0.10 * jax.random.normal(k2, (3, 3, Cin, C1), jnp.float32)
    b1 = 0.10 * jax.random.normal(k3, (C1,), jnp.float32)
    w2 = 0.05 * jax.random.normal(k4, (3, 3, C1, C1), jnp.float32)
    b2 = 0.10 * jax.random.normal(k5, (C1,), jnp.float32)

    out = vgg16_head_forward(x, w1, b1, w2, b2)
    out = jax.block_until_ready(out)

    ref = reference(x, w1, b1, w2, b2)
    assert out.shape == (N, C1 * (H // 2) * (W // 2)), out.shape
    err = float(jnp.max(jnp.abs(out - ref)))
    if not jnp.allclose(out, ref, atol=3e-2, rtol=3e-2):
        raise AssertionError(f"kernel/reference mismatch, max abs err = {err}")
    print("KERNEL_OK")
</pallas_src>

<mosaic_0001>
module attributes {stable_mosaic.version = 11 : i64} {
  func.func @kernel(%arg0: i32, %arg1: memref<1x256x32xbf16, #tpu.memory_space<vmem>>, %arg2: memref<32x64xbf16, #tpu.memory_space<vmem>>, %arg3: memref<576x64xbf16, #tpu.memory_space<vmem>>, %arg4: memref<2x64xf32, #tpu.memory_space<vmem>>, %arg5: memref<1x64x64xf32, #tpu.memory_space<vmem>>, %arg6: memref<304x64xf32, #tpu.memory_space<vmem>>, %arg7: memref<256x576xbf16, #tpu.memory_space<vmem>>, %arg8: memref<256x64xf32, #tpu.memory_space<vmem>>) attributes {dimension_semantics = [#tpu.dimension_semantics<parallel>], iteration_bounds = array<i64: 2>, scalar_prefetch = 0 : i64, scratch_operands = 3 : i64, tpu.core_type = #tpu.core_type<tc>, window_params = [{transform_indices = @transform_0, window_bounds = array<i64: 1, 256, 32>}, {pipeline_mode = #tpu.pipeline_mode<synchronous>, transform_indices = @transform_1, window_bounds = array<i64: 32, 64>}, {pipeline_mode = #tpu.pipeline_mode<synchronous>, transform_indices = @transform_2, window_bounds = array<i64: 576, 64>}, {pipeline_mode = #tpu.pipeline_mode<synchronous>, transform_indices = @transform_3, window_bounds = array<i64: 2, 64>}, {transform_indices = @transform_4, window_bounds = array<i64: 1, 64, 64>}]} {
    %0 = tpu.iota {dimensions = array<i32: 0>} : vector<256x1xi32>
    %c16_i32 = arith.constant 16 : i32
    %c0_i32 = arith.constant 0 : i32
    %1 = arith.cmpi eq, %c16_i32, %c0_i32 : i32
    %c1_i32 = arith.constant 1 : i32
    %2 = arith.select %1, %c1_i32, %c16_i32 : i32
    %3 = vector.broadcast %2 : i32 to vector<256x1xi32>
    %4 = arith.remsi %0, %3 : vector<256x1xi32>
    %c0_i32_0 = arith.constant 0 : i32
    %5 = vector.broadcast %c0_i32_0 : i32 to vector<256x1xi32>
    %6 = arith.cmpi ne, %4, %5 : vector<256x1xi32>
    %c0_i32_1 = arith.constant 0 : i32
    %7 = vector.broadcast %c0_i32_1 : i32 to vector<256x1xi32>
    %8 = arith.cmpi slt, %4, %7 : vector<256x1xi32>
    %c0_i32_2 = arith.constant 0 : i32
    %9 = arith.cmpi slt, %2, %c0_i32_2 : i32
    %10 = vector.broadcast %9 : i1 to vector<256x1xi1>
    %11 = vector.broadcast %10 : vector<256x1xi1> to vector<256x1xi1>
    %12 = arith.xori %8, %11 : vector<256x1xi1>
    %13 = arith.andi %12, %6 : vector<256x1xi1>
    %14 = vector.broadcast %2 : i32 to vector<256x1xi32>
    %15 = arith.addi %4, %14 : vector<256x1xi32>
    %16 = arith.select %13, %15, %4 : vector<256x1xi1>, vector<256x1xi32>
    %c0_i32_3 = arith.constant 0 : i32
    %17 = vector.broadcast %c0_i32_3 : i32 to vector<256x1xi32>
    %18 = arith.cmpi sgt, %16, %17 : vector<256x1xi32>
    %c15_i32 = arith.constant 15 : i32
    %19 = vector.broadcast %c15_i32 : i32 to vector<256x1xi32>
    %20 = arith.cmpi slt, %16, %19 : vector<256x1xi32>
    %21 = tpu.iota {dimensions = array<i32: 0>} : vector<64x64xi32>
    %22 = tpu.iota {dimensions = array<i32: 1>} : vector<64x64xi32>
    %23 = arith.cmpi eq, %21, %22 : vector<64x64xi32>
    %24 = arith.extui %23 : vector<64x64xi1> to vector<64x64xi32>
    %25 = arith.sitofp %24 : vector<64x64xi32> to vector<64x64xf32>
    %c0 = arith.constant 0 : index
    %c0_4 = arith.constant 0 : index
    %26 = vector.load %arg4[%c0, %c0_4] : memref<2x64xf32, #tpu.memory_space<vmem>>, vector<1x64xf32>
    %c1 = arith.constant 1 : index
    %c0_5 = arith.constant 0 : index
    %27 = vector.load %arg4[%c1, %c0_5] : memref<2x64xf32, #tpu.memory_space<vmem>>, vector<1x64xf32>
    %cst = arith.constant 0.000000e+00 : f32
    %28 = vector.broadcast %cst : f32 to vector<24x64xf32>
    %c0_6 = arith.constant 0 : index
    %c0_7 = arith.constant 0 : index
    %29 = vector.load %arg6[%c0_6, %c0_7] : memref<304x64xf32, #tpu.memory_space<vmem>>, vector<24x64xf32>
    tpu.vector_store %arg6[%c0_6, %c0_7], %28 {strides = array<i32>} : memref<304x64xf32, #tpu.memory_space<vmem>>, vector<24x64xf32>,
    %cst_8 = arith.constant 0.000000e+00 : f32
    %30 = vector.broadcast %cst_8 : f32 to vector<24x64xf32>
    %c280 = arith.constant 280 : index
    %c0_9 = arith.constant 0 : index
    %31 = vector.load %arg6[%c280, %c0_9] : memref<304x64xf32, #tpu.memory_space<vmem>>, vector<24x64xf32>
    tpu.vector_store %arg6[%c280, %c0_9], %30 {strides = array<i32>} : memref<304x64xf32, #tpu.memory_space<vmem>>, vector<24x64xf32>,
    %c0_10 = arith.constant 0 : index
    %c0_11 = arith.constant 0 : index
    %c0_12 = arith.constant 0 : index
    %32 = vector.load %arg1[%c0_10, %c0_11, %c0_12] : memref<1x256x32xbf16, #tpu.memory_space<vmem>>, vector<1x256x32xbf16>
    %33 = vector.shape_cast %32 : vector<1x256x32xbf16> to vector<256x32xbf16>
    %c0_13 = arith.constant 0 : index
    %c0_14 = arith.constant 0 : index
    %34 = vector.load %arg2[%c0_13, %c0_14] : memref<32x64xbf16, #tpu.memory_space<vmem>>, vector<32x64xbf16>
    %cst_15 = arith.constant dense<0.000000e+00> : vector<256x64xf32>
    %35 = tpu.matmul %33, %34, %cst_15 {dimension_numbers = #tpu.dot_dimension_numbers<[1], [0], [0], [1], [0, 0, 1, 1], [], []>} : vector<256x32xbf16>, vector<32x64xbf16>, vector<256x64xf32> -> vector<256x64xf32>
    %36 = vector.broadcast %26 : vector<1x64xf32> to vector<256x64xf32>
    %37 = arith.addf %35, %36 : vector<256x64xf32>
    %cst_16 = arith.constant 0.000000e+00 : f32
    %38 = vector.broadcast %cst_16 : f32 to vector<256x64xf32>
    %39 = arith.maximumf %37, %38 : vector<256x64xf32>
    %c24 = arith.constant 24 : index
    %c0_17 = arith.constant 0 : index
    %40 = vector.load %arg6[%c24, %c0_17] : memref<304x64xf32, #tpu.memory_space<vmem>>, vector<256x64xf32>
    tpu.vector_store %arg6[%c24, %c0_17], %39 {strides = array<i32>} : memref<304x64xf32, #tpu.memory_space<vmem>>, vector<256x64xf32>,
    %c7 = arith.constant 7 : index
    %c0_18 = arith.constant 0 : index
    %41 = vector.load %arg6[%c7, %c0_18] : memref<304x64xf32, #tpu.memory_space<vmem>>, vector<256x64xf32>
    %cst_19 = arith.constant 0.000000e+00 : f32
    %42 = vector.shape_cast %18 : vector<256x1xi1> to vector<256x1xi1>
    %43 = vector.broadcast %42 : vector<256x1xi1> to vector<256x64xi1>
    %44 = vector.broadcast %cst_19 : f32 to vector<256x64xf32>
    %45 = arith.select %43, %41, %44 : vector<256x64xi1>, vector<256x64xf32>
    %46 = arith.truncf %45 : vector<256x64xf32> to vector<256x64xbf16>
    %c8 = arith.constant 8 : index
    %c0_20 = arith.constant 0 : index
    %47 = vector.load %arg6[%c8, %c0_20] : memref<304x64xf32, #tpu.memory_space<vmem>>, vector<256x64xf32>
    %48 = arith.truncf %47 : vector<256x64xf32> to vector<256x64xbf16>
    %49 = tpu.concatenate %46, %48 in 1 : vector<256x64xbf16>, vector<256x64xbf16> -> vector<256x128xbf16>
    %c0_21 = arith.constant 0 : index
    %c0_22 = arith.constant 0 : index
    %50 = vector.load %arg7[%c0_21, %c0_22] : memref<256x576xbf16, #tpu.memory_space<vmem>>, vector<256x128xbf16>
    tpu.vector_store %arg7[%c0_21, %c0_22], %49 {strides = array<i32>} : memref<256x576xbf16, #tpu.memory_space<vmem>>, vector<256x128xbf16>,
    %c9 = arith.constant 9 : index
    %c0_23 = arith.constant 0 : index
    %51 = vector.load %arg6[%c9, %c0_23] : memref<304x64xf32, #tpu.memory_space<vmem>>, vector<256x64xf32>
    %cst_24 = arith.constant 0.000000e+00 : f32
    %52 = vector.shape_cast %20 : vector<256x1xi1> to vector<256x1xi1>
    %53 = vector.broadcast %52 : vector<256x1xi1> to vector<256x64xi1>
    %54 = vector.broadcast %cst_24 : f32 to vector<256x64xf32>
    %55 = arith.select %53, %51, %54 : vector<256x64xi1>, vector<256x64xf32>
    %56 = arith.truncf %55 : vector<256x64xf32> to vector<256x64xbf16>
    %c23 = arith.constant 23 : index
    %c0_25 = arith.constant 0 : index
    %57 = vector.load %arg6[%c23, %c0_25] : memref<304x64xf32, #tpu.memory_space<vmem>>, vector<256x64xf32>
    %cst_26 = arith.constant 0.000000e+00 : f32
    %58 = vector.shape_cast %18 : vector<256x1xi1> to vector<256x1xi1>
    %59 = vector.broadcast %58 : vector<256x1xi1> to vector<256x64xi1>
    %60 = vector.broadcast %cst_26 : f32 to vector<256x64xf32>
    %61 = arith.select %59, %57, %60 : vector<256x64xi1>, vector<256x64xf32>
    %62 = arith.truncf %61 : vector<256x64xf32> to vector<256x64xbf16>
    %63 = tpu.concatenate %56, %62 in 1 : vector<256x64xbf16>, vector<256x64xbf16> -> vector<256x128xbf16>
    %c0_27 = arith.constant 0 : index
    %c128 = arith.constant 128 : index
    %64 = vector.load %arg7[%c0_27, %c128] : memref<256x576xbf16, #tpu.memory_space<vmem>>, vector<256x128xbf16>
    tpu.vector_store %arg7[%c0_27, %c128], %63 {strides = array<i32>} : memref<256x576xbf16, #tpu.memory_space<vmem>>, vector<256x128xbf16>,
    %c24_28 = arith.constant 24 : index
    %c0_29 = arith.constant 0 : index
    %65 = vector.load %arg6[%c24_28, %c0_29] : memref<304x64xf32, #tpu.memory_space<vmem>>, vector<256x64xf32>
    %66 = arith.truncf %65 : vector<256x64xf32> to vector<256x64xbf16>
    %c25 = arith.constant 25 : index
    %c0_30 = arith.constant 0 : index
    %67 = vector.load %arg6[%c25, %c0_30] : memref<304x64xf32, #tpu.memory_space<vmem>>, vector<256x64xf32>
    %cst_31 = arith.constant 0.000000e+00 : f32
    %68 = vector.shape_cast %20 : vector<256x1xi1> to vector<256x1xi1>
    %69 = vector.broadcast %68 : vector<256x1xi1> to vector<256x64xi1>
    %70 = vector.broadcast %cst_31 : f32 to vector<256x64xf32>
    %71 = arith.select %69, %67, %70 : vector<256x64xi1>, vector<256x64xf32>
    %72 = arith.truncf %71 : vector<256x64xf32> to vector<256x64xbf16>
    %73 = tpu.concatenate %66, %72 in 1 : vector<256x64xbf16>, vector<256x64xbf16> -> vector<256x128xbf16>
    %c0_32 = arith.constant 0 : index
    %c256 = arith.constant 256 : index
    %74 = vector.load %arg7[%c0_32, %c256] : memref<256x576xbf16, #tpu.memory_space<vmem>>, vector<256x128xbf16>
    tpu.vector_store %arg7[%c0_32, %c256], %73 {strides = array<i32>} : memref<256x576xbf16, #tpu.memory_space<vmem>>, vector<256x128xbf16>,
    %c39 = arith.constant 39 : index
    %c0_33 = arith.constant 0 : index
    %75 = vector.load %arg6[%c39, %c0_33] : memref<304x64xf32, #tpu.memory_space<vmem>>, vector<256x64xf32>
    %cst_34 = arith.constant 0.000000e+00 : f32
    %76 = vector.shape_cast %18 : vector<256x1xi1> to vector<256x1xi1>
    %77 = vector.broadcast %76 : vector<256x1xi1> to vector<256x64xi1>
    %78 = vector.broadcast %cst_34 : f32 to vector<256x64xf32>
    %79 = arith.select %77, %75, %78 : vector<256x64xi1>, vector<256x64xf32>
    %80 = arith.truncf %79 : vector<256x64xf32> to vector<256x64xbf16>
    %c40 = arith.constant 40 : index
    %c0_35 = arith.constant 0 : index
    %81 = vector.load %arg6[%c40, %c0_35] : memref<304x64xf32, #tpu.memory_space<vmem>>, vector<256x64xf32>
    %82 = arith.truncf %81 : vector<256x64xf32> to vector<256x64xbf16>
    %83 = tpu.concatenate %80, %82 in 1 : vector<256x64xbf16>, vector<256x64xbf16> -> vector<256x128xbf16>
    %c0_36 = arith.constant 0 : index
    %c384 = arith.constant 384 : index
    %84 = vector.load %arg7[%c0_36, %c384] : memref<256x576xbf16, #tpu.memory_space<vmem>>, vector<256x128xbf16>
    tpu.vector_store %arg7[%c0_36, %c384], %83 {strides = array<i32>} : memref<256x576xbf16, #tpu.memory_space<vmem>>, vector<256x128xbf16>,
    %c41 = arith.constant 41 : index
    %c0_37 = arith.constant 0 : index
    %85 = vector.load %arg6[%c41, %c0_37] : memref<304x64xf32, #tpu.memory_space<vmem>>, vector<256x64xf32>
    %cst_38 = arith.constant 0.000000e+00 : f32
    %86 = vector.shape_cast %20 : vector<256x1xi1> to vector<256x1xi1>
    %87 = vector.broadcast %86 : vector<256x1xi1> to vector<256x64xi1>
    %88 = vector.broadcast %cst_38 : f32 to vector<256x64xf32>
    %89 = arith.select %87, %85, %88 : vector<256x64xi1>, vector<256x64xf32>
    %90 = arith.truncf %89 : vector<256x64xf32> to vector<256x64xbf16>
    %c0_39 = arith.constant 0 : index
    %c512 = arith.constant 512 : index
    %91 = vector.load %arg7[%c0_39, %c512] : memref<256x576xbf16, #tpu.memory_space<vmem>>, vector<256x64xbf16>
    tpu.vector_store %arg7[%c0_39, %c512], %90 {strides = array<i32>} : memref<256x576xbf16, #tpu.memory_space<vmem>>, vector<256x64xbf16>,
    %c0_40 = arith.constant 0 : index
    %c0_41 = arith.constant 0 : index
    %92 = vector.load %arg7[%c0_40, %c0_41] : memref<256x576xbf16, #tpu.memory_space<vmem>>, vector<256x576xbf16>
    %c0_42 = arith.constant 0 : index
    %c0_43 = arith.constant 0 : index
    %93 = vector.load %arg3[%c0_42, %c0_43] : memref<576x64xbf16, #tpu.memory_space<vmem>>, vector<576x64xbf16>
    %cst_44 = arith.constant dense<0.000000e+00> : vector<256x64xf32>
    %94 = tpu.matmul %92, %93, %cst_44 {dimension_numbers = #tpu.dot_dimension_numbers<[1], [0], [0], [1], [0, 0, 1, 1], [], []>} : vector<256x576xbf16>, vector<576x64xbf16>, vector<256x64xf32> -> vector<256x64xf32>
    %95 = vector.broadcast %27 : vector<1x64xf32> to vector<256x64xf32>
    %96 = arith.addf %94, %95 : vector<256x64xf32>
    %cst_45 = arith.constant 0.000000e+00 : f32
    %97 = vector.broadcast %cst_45 : f32 to vector<256x64xf32>
    %98 = arith.maximumf %96, %97 : vector<256x64xf32>
    %c0_46 = arith.constant 0 : index
    %c0_47 = arith.constant 0 : index
    %99 = vector.load %arg8[%c0_46, %c0_47] : memref<256x64xf32, #tpu.memory_space<vmem>>, vector<256x64xf32>
    tpu.vector_store %arg8[%c0_46, %c0_47], %98 {strides = array<i32>} : memref<256x64xf32, #tpu.memory_space<vmem>>, vector<256x64xf32>,
    %c0_48 = arith.constant 0 : index
    %c0_49 = arith.constant 0 : index
    %100 = tpu.strided_load %arg8[%c0_48, %c0_49] {strides = array<i32: 2, 1>} : memref<256x64xf32, #tpu.memory_space<vmem>>, vector<128x64xf32>
    %c1_50 = arith.constant 1 : index
    %c0_51 = arith.constant 0 : index
    %101 = tpu.strided_load %arg8[%c1_50, %c0_51] {strides = array<i32: 2, 1>} : memref<256x64xf32, #tpu.memory_space<vmem>>, vector<128x64xf32>
    %102 = arith.maximumf %100, %101 : vector<128x64xf32>
    %103 = vector.extract_strided_slice %102 {offsets = [0, 0], sizes = [8, 64], strides = [1, 1]} : vector<128x64xf32> to vector<8x64xf32>
    %104 = vector.extract_strided_slice %102 {offsets = [8, 0], sizes = [8, 64], strides = [1, 1]} : vector<128x64xf32> to vector<8x64xf32>
    %105 = arith.maximumf %103, %104 : vector<8x64xf32>
    %106 = vector.extract_strided_slice %102 {offsets = [16, 0], sizes = [8, 64], strides = [1, 1]} : vector<128x64xf32> to vector<8x64xf32>
    %107 = vector.extract_strided_slice %102 {offsets = [24, 0], sizes = [8, 64], strides = [1, 1]} : vector<128x64xf32> to vector<8x64xf32>
    %108 = arith.maximumf %106, %107 : vector<8x64xf32>
    %109 = vector.extract_strided_slice %102 {offsets = [32, 0], sizes = [8, 64], strides = [1, 1]} : vector<128x64xf32> to vector<8x64xf32>
    %110 = vector.extract_strided_slice %102 {offsets = [40, 0], sizes = [8, 64], strides = [1, 1]} : vector<128x64xf32> to vector<8x64xf32>
    %111 = arith.maximumf %109, %110 : vector<8x64xf32>
    %112 = vector.extract_strided_slice %102 {offsets = [48, 0], sizes = [8, 64], strides = [1, 1]} : vector<128x64xf32> to vector<8x64xf32>
    %113 = vector.extract_strided_slice %102 {offsets = [56, 0], sizes = [8, 64], strides = [1, 1]} : vector<128x64xf32> to vector<8x64xf32>
    %114 = arith.maximumf %112, %113 : vector<8x64xf32>
    %115 = vector.extract_strided_slice %102 {offsets = [64, 0], sizes = [8, 64], strides = [1, 1]} : vector<128x64xf32> to vector<8x64xf32>
    %116 = vector.extract_strided_slice %102 {offsets = [72, 0], sizes = [8, 64], strides = [1, 1]} : vector<128x64xf32> to vector<8x64xf32>
    %117 = arith.maximumf %115, %116 : vector<8x64xf32>
    %118 = vector.extract_strided_slice %102 {offsets = [80, 0], sizes = [8, 64], strides = [1, 1]} : vector<128x64xf32> to vector<8x64xf32>
    %119 = vector.extract_strided_slice %102 {offsets = [88, 0], sizes = [8, 64], strides = [1, 1]} : vector<128x64xf32> to vector<8x64xf32>
    %120 = arith.maximumf %118, %119 : vector<8x64xf32>
    %121 = vector.extract_strided_slice %102 {offsets = [96, 0], sizes = [8, 64], strides = [1, 1]} : vector<128x64xf32> to vector<8x64xf32>
    %122 = vector.extract_strided_slice %102 {offsets = [104, 0], sizes = [8, 64], strides = [1, 1]} : vector<128x64xf32> to vector<8x64xf32>
    %123 = arith.maximumf %121, %122 : vector<8x64xf32>
    %124 = vector.extract_strided_slice %102 {offsets = [112, 0], sizes = [8, 64], strides = [1, 1]} : vector<128x64xf32> to vector<8x64xf32>
    %125 = vector.extract_strided_slice %102 {offsets = [120, 0], sizes = [8, 64], strides = [1, 1]} : vector<128x64xf32> to vector<8x64xf32>
    %126 = arith.maximumf %124, %125 : vector<8x64xf32>
    %127 = tpu.concatenate %105, %108, %111, %114, %117, %120, %123, %126 in 0 : vector<8x64xf32>, vector<8x64xf32>, vector<8x64xf32>, vector<8x64xf32>, vector<8x64xf32>, vector<8x64xf32>, vector<8x64xf32>, vector<8x64xf32> -> vector<64x64xf32>
    %cst_52 = arith.constant dense<0.000000e+00> : vector<64x64xf32>
    %128 = tpu.matmul %25, %127, %cst_52 {dimension_numbers = #tpu.dot_dimension_numbers<[1], [1], [0], [0], [0, 0, 1, 0], [], []>} : vector<64x64xf32>, vector<64x64xf32>, vector<64x64xf32> -> vector<64x64xf32>
    %c0_53 = arith.constant 0 : index
    %c0_54 = arith.constant 0 : index
    %c0_55 = arith.constant 0 : index
    %129 = vector.load %arg5[%c0_53, %c0_54, %c0_55] : memref<1x64x64xf32, #tpu.memory_space<vmem>>, vector<1x64x64xf32>
    %130 = vector.shape_cast %129 : vector<1x64x64xf32> to vector<64x64xf32>
    %131 = vector.shape_cast %128 : vector<64x64xf32> to vector<1x64x64xf32>
    tpu.vector_store %arg5[%c0_53, %c0_54, %c0_55], %131 {strides = array<i32>} : memref<1x64x64xf32, #tpu.memory_space<vmem>>, vector<1x64x64xf32>,
    return
  }
  func.func @transform_0(%arg0: i32) -> (i32, i32, i32) {
    %c0_i32 = arith.constant 0 : i32
    %c0_i32_0 = arith.constant 0 : i32
    %c0_i32_1 = arith.constant 0 : i32
    return %arg0, %c0_i32, %c0_i32_0 : i32, i32, i32
  }
  func.func @transform_1(%arg0: i32) -> (i32, i32) {
    %c0_i32 = arith.constant 0 : i32
    %c0_i32_0 = arith.constant 0 : i32
    %c0_i32_1 = arith.constant 0 : i32
    return %c0_i32, %c0_i32_0 : i32, i32
  }
  func.func @transform_2(%arg0: i32) -> (i32, i32) {
    %c0_i32 = arith.constant 0 : i32
    %c0_i32_0 = arith.constant 0 : i32
    %c0_i32_1 = arith.constant 0 : i32
    return %c0_i32, %c0_i32_0 : i32, i32
  }
  func.func @transform_3(%arg0: i32) -> (i32, i32) {
    %c0_i32 = arith.constant 0 : i32
    %c0_i32_0 = arith.constant 0 : i32
    %c0_i32_1 = arith.constant 0 : i32
    return %c0_i32, %c0_i32_0 : i32, i32
  }
  func.func @transform_4(%arg0: i32) -> (i32, i32, i32) {
    %c0_i32 = arith.constant 0 : i32
    %c0_i32_0 = arith.constant 0 : i32
    %c0_i32_1 = arith.constant 0 : i32
    return %arg0, %c0_i32, %c0_i32_0 : i32, i32, i32
  }
}

</mosaic_0001>

<bundles_post_ra>
// kernel: tpu_custom_call.1
= control target key start
LH: loop header
LB: loop body
LE: loop exit
PB: predicated region body
PF: predicated region fallthrough
CT: control target
= control target key end

     0   :  { %9 = vsyncpa [#allocation6], 0  ;;  %s7386_s0 = inlined_call_operand.vmem [shape: bf16[2,256,32], index: 0, kind: input, shape index: {}]   ;;  %s7387_s1 = inlined_call_operand.vmem [shape: bf16[32,64], index: 1, kind: input, shape index: {}]   ;;  %s7388_s2 = inlined_call_operand.vmem [shape: bf16[576,64], index: 2, kind: input, shape index: {}]   ;;  %s7389_s3 = inlined_call_operand.vmem [shape: f32[2,64], index: 3, kind: input, shape index: {}]   ;;  %s7390_s4 = inlined_call_operand.hbm [shape: f32[2,64,64], index: 4, kind: output, shape index: {}]  }
   0x1   :  { %11 = vsyncpa [#allocation6 + $0x1], 0  ;;  %s5763_s15 = smov 0   ;;  %s5765_s16 = smov 0  }
   0x2   :  { %s5767_s17 = smov 0   ;;  %s5769_s18 = smov 0  }
   0x3 LB: > { %s5784_s19 = sadd.s32 4294967295, %s5731_s18   ;;  %s4683_s20 = sadd.s32 4294967294, %s5731_s18   ;;  %s5731_s18 = sphi %s5769_s18, %s7793_s18   ;;  %s5727_s17 = sphi %s5767_s17, %s7792_s17   ;;  %s5723_s16 = sphi %s5765_s16, %s7791_s16   ;;  %s5719_s15 = sphi %s5763_s15, %s7790_s15  }
   0x4   : > { %s5788_s21 = sadd.s32 1, %s5731_s18   ;;  %s113_s22 = sadd.s32 1, %s5727_s17 }
   0x5   : > { %s110_s23 = ssub.s32 %s5731_s18, %s5788_s21  ;;  %p123_p0 = scmp.ne.s32.totalorder %s5727_s17, %s5723_s16 }
   0x6   : > { %p111_p1 = scmp.eq.s32.totalorder %s110_s23, 0  ;;  %p124_p2 = scmp.eq.s32.totalorder %s5784_s19, 1 }
   0x7   : > { %p129_p3 = scmp.ne.s32.totalorder %s5723_s16, %s5719_s15  ;;  %p130_p4 = scmp.eq.s32.totalorder %s4683_s20, 1 }
   0x8   : > { %s5799_s24 = scalar_select %p111_p1, %s5727_s17, %s113_s22  }
   0x9   : > { %p5801_p5 = por %p124_p2, %p123_p0  ;;  %p5805_p6 = por %p130_p4, %p129_p3 }
   0xa   : > { %p4686_p7 = scmp.ge.s32.totalorder %s5731_s18, 1  ;;  %p165_p8 = scmp.lt.s32.totalorder %s5731_s18, 3 }
   0xc   : > { %p166_p9 = pnand %p4686_p7, %p165_p8 }
   0xe   : > { %169 = sbr.rel (%p166_p9) target bundleno = 1020 (0x3fc), region = 36 }
  0x13   : > { %v5506_v0 = vld [vmem:[%s7387_s1 + $0x8] sm:$0xff]   ;;  %p191_p10 = scmp.lt.s32.totalorder %s5784_s19, 1  ;;  %v5507_v1 = vld [vmem:[%s7387_s1] sm:$0xff]   ;;  %vm845_vm0 = vcmask 261120   ;;  %vm7391_vm1 = vcmask 523264   ;;  %v7394_v18 = vmov 0.0   ;;  %v7398_v24 = vlaneseq }
  0x14   : > { %5359 = vmatprep.subr.bf16.mxu0 %v5506_v0  ;;  %708 = vst.msk [vmem:[#allocation2 + $0x8] sm:$0xff] %vm7391_vm1, %v7394_v18  ;;  %709 = vst.msk [vmem:[#allocation2 + $0x10] sm:$0xff] %vm7391_vm1, %v7394_v18  ;;  %s5734_s10 = smov 64   ;;  %v5524_v22 = vld [vmem:[%s7388_s2 + $0x78] sm:$0xff]   ;;  %v5526_v25 = vld [vmem:[%s7388_s2 + $0x70] sm:$0xff]   ;;  %v7458_v36 = vmov 0 }
  0x15   : > { %s192_s5 = scalar_select %p191_p10, %s5784_s19, 1  ;;  %5360 = vmatpush3.bf16.msra.mxu0 %v5506_v0  ;;  %707 = vst.msk [vmem:[#allocation2] sm:$0xff] %vm7391_vm1, %v7394_v18  ;;  %710 = vst.msk [vmem:[#allocation2 + $0x118] sm:$0xff] %vm7391_vm1, %v7394_v18  ;;  %v5525_v23 = vld [vmem:[%s7388_s2 + $0x38] sm:$0xff]   ;;  %5099 = vmatprep.subr.bf16.mxu1 %v5524_v22  ;;  %v5527_v26 = vld [vmem:[%s7388_s2 + $0x30] sm:$0xff]   ;;  %v5882_v27 = vshrl.u32 %v7398_v24, 7 }
  0x16   : > { %5361 = vmatprep.subr.bf16.mxu0 %v5507_v1  ;;  %711 = vst.msk [vmem:[#allocation2 + $0x120] sm:$0xff] %vm7391_vm1, %v7394_v18  ;;  %712 = vst.msk [vmem:[#allocation2 + $0x128] sm:$0xff] %vm7391_vm1, %v7394_v18  ;;  %5100 = vmatpush3.bf16.msra.mxu1 %v5525_v23  ;;  %v5528_v28 = vld [vmem:[%s7388_s2 + $0x68] sm:$0xff]   ;;  %v5890_v29 = vld [vmem:[%s7389_s3] ss:$0 sm:$0xff]  ;;  %vm7393_vm4 = vcmask 519168  }
  0x17   : > { %s5047_s6 = sshll.u32 %s192_s5, 7  ;;  %5101 = vmatprep.subr.bf16.mxu1 %v5526_v25  ;;  %v234_v30 = vand.u32 15, %v5882_v27  ;;  %v5529_v31 = vld [vmem:[%s7388_s2 + $0x28] sm:$0xff]   ;;  %v5530_v34 = vld [vmem:[%s7388_s2 + $0x60] sm:$0xff]   ;;  %v5532_v48 = vld [vmem:[%s7388_s2 + $0x58] sm:$0xff]   ;;  %v5916_v50 = vadd.s32 16, %v5882_v27 }
  0x18   : > { %s5822_s9 = scalar_lea.vmem %s7386_s0, %s5047_s6  ;;  %v5531_v37 = vld [vmem:[%s7388_s2 + $0x20] sm:$0xff]   ;;  %v5533_v52 = vld [vmem:[%s7388_s2 + $0x18] sm:$0xff]   ;;  %v229_v53 = vadd.s32 248, %v5882_v27  ;;  %v5926_v59 = vadd.s32 24, %v5882_v27  ;;  %v5534_v62 = vld [vmem:[%s7388_s2 + $0x50] sm:$0xff]   ;;  %s188_s5 = sand.u32 1, %s5723_s16  }
  0x19   : > { %v5508_v2 = vld [vmem:[%s5822_s9] sm:$0xff]   ;;  %5362 = vmatpush3.bf16.msra.mxu0 %v5507_v1  ;;  %v5509_v3 = vld [vmem:[%s5822_s9 + $0x8] sm:$0xff]   ;;  %v5510_v4 = vld [vmem:[%s5822_s9 + $0x10] sm:$0xff]   ;;  %vm5900_vm2 = vcmp.gt.s32.totalorder %v234_v30, 0  ;;  %7461 = vst [vmem:[#allocation9_spill] sm:$0xff] %v5916_v50  ;;  %v248_v0 = vand.u32 15, %v5916_v50 }
  0x1a   : > { %5363 = vmatprep.mubr.msk.bf16.mxu0 %vm845_vm0, %v5508_v2  ;;  %v5511_v5 = vld [vmem:[%s5822_s9 + $0x18] sm:$0xff]   ;;  %v5512_v6 = vld [vmem:[%s5822_s9 + $0x20] sm:$0xff]   ;;  %v5513_v7 = vld [vmem:[%s5822_s9 + $0x28] sm:$0xff]   ;;  %5102 = vmatpush3.bf16.msra.mxu1 %v5527_v26  ;;  %v7459_v36 = vsel %vm5900_vm2, 4294967295, %v7458_v36  ;;  %7462 = vst [vmem:[#allocation10_spill] sm:$0xff] %v5926_v59  ;;  %v5935_v1 = vadd.s32 32, %v5882_v27 }
  0x1b   : > { %v5514_v8 = vld [vmem:[%s5822_s9 + $0x30] sm:$0xff]   ;;  %v5515_v9 = vld [vmem:[%s5822_s9 + $0x38] sm:$0xff]   ;;  %v5516_v10 = vld [vmem:[%s5822_s9 + $0x40] sm:$0xff]   ;;  %5103 = vmatprep.subr.bf16.mxu1 %v5528_v28  ;;  %7460 = vst [vmem:[#allocation8_spill] sm:$0xff] %v7459_v36  ;;  %v5938_v2 = vadd.s32 8, %v5882_v27  ;;  %vm5951_vm3 = vcmp.gt.s32.totalorder %v248_v0, 0 }
  0x1c   : > { %5364 = vmatmul.mubr.msk.bf16.vlgmr.msra.gmra.mxu0 %vm845_vm0, %v5509_v3  ;;  %v5517_v11 = vld [vmem:[%s5822_s9 + $0x48] sm:$0xff]   ;;  %v5518_v12 = vld [vmem:[%s5822_s9 + $0x50] sm:$0xff]   ;;  %v5519_v13 = vld [vmem:[%s5822_s9 + $0x58] sm:$0xff]   ;;  %7463 = vst [vmem:[#allocation11_spill] sm:$0xff] %v5935_v1  ;;  %v5974_v30 = vadd.s32 40, %v5882_v27  ;;  %v7478_v0 = vmov 0 }
  0x1d   : > { %5367 = vmatprep.mubr.msk.bf16.mxu0 %vm845_vm0, %v5510_v4  ;;  %v5520_v14 = vld [vmem:[%s5822_s9 + $0x60] sm:$0xff]   ;;  %v5521_v15 = vld [vmem:[%s5822_s9 + $0x68] sm:$0xff]   ;;  %v5522_v16 = vld [vmem:[%s5822_s9 + $0x70] sm:$0xff]   ;;  %7464 = vst [vmem:[#allocation12_spill] sm:$0xff] %v5938_v2  ;;  %v217_v50 = vadd.s32 152, %v5882_v27  ;;  %v219_v36 = vadd.s32 168, %v5882_v27 }
  0x1e   : > { %v5523_v17 = vld [vmem:[%s5822_s9 + $0x78] sm:$0xff]   ;;  %v1263_v19 = vld [vmem:[#allocation2 + $0x8] sm:$0xff]  ;;  %v1264_v20 = vld [vmem:[#allocation2 + $0x10] sm:$0xff]  ;;  %5104 = vmatpush3.bf16.msra.mxu1 %v5529_v31  ;;  %7472 = vst [vmem:[#allocation14_spill] sm:$0xff] %v5974_v30  ;;  %s4687_s6 = sshll.u32 %s188_s5, 6  ;;  %s5080_s8 = sshll.u32 %s5784_s19, 10 }
  0x1f   : > { %v1295_v21 = vpack.c.bf16 %v1264_v20, %v1263_v19  ;;  %v1119_v38 = vld [vmem:[#allocation2 + $0x7] sm:$0xff]  ;;  %v1120_v39 = vld [vmem:[#allocation2 + $0xf] sm:$0xff]  ;;  %5105 = vmatprep.subr.bf16.mxu1 %v5530_v34  ;;  %v7468_v20 = vmov 0  ;;  %s190_s7 = scalar_lea.vmem [#allocation5], %s4687_s6  ;;  %s7340_s13 = scalar_lea.hbm %s7390_s4, %s5080_s8 }
  0x20   : > { %v1215_v43 = vsel %vm5900_vm2, %v1119_v38, 0.0  ;;  %v5535_v3 = vld [vmem:[%s7388_s2 + $0x10] sm:$0xff]   ;;  %v5536_v22 = vld [vmem:[%s7388_s2 + $0x48] sm:$0xff]   ;;  %s4621_s9 = sshll.u32 %s190_s7, 4  ;;  %s7346_s19 = scalar_lea.sflag [#allocation6], %s188_s5  ;;  %s7342_s9 = int_to_ptr.vmem [resolvable:$true] %s4621_s9 }
  0x21   : > { %1327 = vrot.lane.b32.xlu0 %v1295_v21, %s5734_s10  ;;  %v1247_v45 = vpack.c.bf16 %v1120_v39, %v1215_v43  ;;  %v2782_v21 = vld [vmem:[#allocation2 + $0x121] sm:$0xff]  ;;  %s5671_s14 = scalar_lea.vmem %s7342_s9, 1024 }
  0x22   : > { %5106 = vmatpush3.bf16.msra.mxu1 %v5531_v37  ;;  %v5983_v37 = vadd.s32 64, %v5882_v27  ;;  %v5537_v38 = vld [vmem:[%s7388_s2 + $0x8] sm:$0xff]   ;;  %p5672_p11 = scmp.ne.s32.totalorder %s7342_s9, %s5671_s14 }
  0x23   : > { %5107 = vmatprep.subr.bf16.mxu1 %v5532_v48 }
  0x24   : > { %5368 = vmatmul.mubr.msk.bf16.gmra.mxu0 %vm845_vm0, %v5511_v5  ;;  %p5673_p12 = pnand %p5672_p11, %p5801_p5 }
  0x25   : > { %5371 = vmatprep.mubr.msk.bf16.mxu0 %vm845_vm0, %v5512_v6  ;;  %v451_v6 = vand.u32 15, %v229_v53 }
  0x26   : > { %5108 = vmatpush3.bf16.msra.mxu1 %v5533_v52  ;;  %p5674_p13 = pneg %p5673_p12 }
  0x27   : > { %5109 = vmatprep.subr.bf16.mxu1 %v5534_v62  ;;  %vm5959_vm5 = vcmp.lt.s32.totalorder %v451_v6, 15 }
  0x28   : > { %v7469_v20 = vsel %vm5959_vm5, 4294967295, %v7468_v20  ;;  %v2814_v31 = vsel %vm5959_vm5, %v2782_v21, 0.0 }
  0x2a   : > { %5110 = vmatpush3.bf16.msra.mxu1 %v5535_v3  ;;  %v290_v3 = vand.u32 15, %v5983_v37 }
  0x2b   : > { %5111 = vmatprep.subr.bf16.mxu1 %v5536_v22 }
  0x2c   : > { %5372 = vmatmul.mubr.msk.bf16.gmra.mxu0 %vm845_vm0, %v5513_v7  ;;  %vm6065_vm11 = vcmp.gt.s32.totalorder %v290_v3, 0 }
  0x2d   : > { %5375 = vmatprep.mubr.msk.bf16.mxu0 %vm845_vm0, %v5514_v8  ;;  %v5946_v8 = vadd.s32 48, %v5882_v27 }
  0x2e   : > { %5112 = vmatpush3.bf16.msra.mxu1 %v5537_v38 }
  0x2f   : > { %7465 = vst [vmem:[#allocation13_spill] sm:$0xff] %v5946_v8  ;;  %v276_v26 = vand.u32 15, %v5946_v8 }
  0x31   : > { %vm6019_vm9 = vcmp.gt.s32.totalorder %v276_v26, 0 }
  0x32   : > { %v7479_v0 = vsel %vm6019_vm9, 4294967295, %v7478_v0 }
  0x34   : > { %5376 = vmatmul.mubr.msk.bf16.gmra.mxu0 %vm845_vm0, %v5515_v9  ;;  %v255_v9 = vand.u32 15, %v5926_v59 }
  0x35   : > { %5379 = vmatprep.mubr.msk.bf16.mxu0 %vm845_vm0, %v5516_v10 }
  0x36   : > { %vm5969_vm6 = vcmp.lt.s32.totalorder %v255_v9, 15 }
  0x3c   : > { %5380 = vmatmul.mubr.msk.bf16.gmra.mxu0 %vm845_vm0, %v5517_v11 }
  0x3d   : > { %5383 = vmatprep.mubr.msk.bf16.mxu0 %vm845_vm0, %v5518_v12 }
  0x44   : > { %5384 = vmatmul.mubr.msk.bf16.gmra.mxu0 %vm845_vm0, %v5519_v13  ;;  %v7466_v13 = vmov 0 }
  0x45   : > { %5387 = vmatprep.mubr.msk.bf16.mxu0 %vm845_vm0, %v5520_v14  ;;  %v7467_v13 = vsel %vm5951_vm3, 4294967295, %v7466_v13  ;;  %v262_v14 = vand.u32 15, %v5935_v1 }
  0x47   : > { %vm5990_vm7 = vcmp.gt.s32.totalorder %v262_v14, 0 }
  0x4c   : > { %5388 = vmatmul.mubr.msk.bf16.gmra.mxu0 %vm845_vm0, %v5521_v15  ;;  %v241_v15 = vand.u32 15, %v5938_v2 }
  0x4d   : > { %5391 = vmatprep.mubr.msk.bf16.mxu0 %vm845_vm0, %v5522_v16 }
  0x4e   : > { %vm5994_vm8 = vcmp.lt.s32.totalorder %v241_v15, 15 }
  0x54   : > { %5392 = vmatmul.mubr.msk.bf16.gmra.mxu0 %vm845_vm0, %v5523_v17 }
  0x93   : > { %v1328_v42 = vpop.permute.xlu0 %1327 }
  0x94   : > { %v1361_v51 = vsel %vm7391_vm1, %v1247_v45, %v1328_v42 }
  0x95   : > { %v4733_v56 = vcombine.low %v1361_v51, %v1361_v51  ;;  %v4734_v57 = vcombine.high %v1361_v51, %v1361_v51 }
  0x97   : > { %1519 = vst [vmem:[#allocation3] sm:$0xf] %v4733_v56  ;;  %1520 = vst [vmem:[#allocation3 + $0x14] sm:$0xf] %v4734_v57  ;;  %v269_v57 = vand.u32 15, %v5974_v30 }
  0x99   : > { %vm6053_vm10 = vcmp.lt.s32.totalorder %v269_v57, 15 }
  0xdc   : > { %v5365_v32 = vpop.f32.mrf.mxu0 }
  0xdd   : > { %v937_v33 = vadd.f32 %v5365_v32, %v5890_v29 }
  0xde   : > { %v928_v35 = vpop.f32.mrf.mxu0 }
  0xdf   : > { %v1057_v40 = vmax.f32 %v937_v33, 0.0  ;;  %v929_v41 = vadd.f32 %v5890_v29, %v928_v35 }
  0xe0   : > { %v5366_v44 = vpop.f32.mrf.mxu0 }
  0xe1   : > { %1089 = vst.msk [vmem:[#allocation2 + $0x28] sm:$0xff] %vm7391_vm1, %v1057_v40  ;;  %v1055_v46 = vmax.f32 %v929_v41, 0.0  ;;  %v940_v47 = vadd.f32 %v5366_v44, %v5890_v29  ;;  %v7473_v44 = vmov 0 }
  0xe2   : > { %v931_v49 = vpop.f32.mrf.mxu0  ;;  %v7474_v44 = vsel %vm5990_vm7, 4294967295, %v7473_v44 }
  0xe3   : > { %1087 = vst.msk [vmem:[#allocation2 + $0x18] sm:$0xff] %vm7391_vm1, %v1055_v46  ;;  %v1058_v54 = vmax.f32 %v940_v47, 0.0  ;;  %v932_v55 = vadd.f32 %v5890_v29, %v931_v49  ;;  %v5079_v46 = vpack.c.bf16 %v2814_v31, %v2814_v31  ;;  %v6051_v31 = vadd.s32 96, %v5882_v27 }
  0xe4   : > { %v5369_v58 = vpop.f32.mrf.mxu0 }
  0xe5   : > { %1090 = vst.msk [vmem:[#allocation2 + $0x30] sm:$0xff] %vm7391_vm1, %v1058_v54  ;;  %v1056_v60 = vmax.f32 %v932_v55, 0.0  ;;  %v953_v61 = vadd.f32 %v5369_v58, %v5890_v29  ;;  %v6009_v58 = vadd.s32 56, %v5882_v27 }
  0xe6   : > { %v944_v63 = vpop.f32.mrf.mxu0  ;;  %2975 = vst.msk [vmem:[#allocation3 + $0x27c] sm:$0xf] %vm7393_vm4, %v5079_v46 }
  0xe7   : > { %1088 = vst.msk [vmem:[#allocation2 + $0x20] sm:$0xff] %vm7391_vm1, %v1056_v60  ;;  %v1061_v4 = vmax.f32 %v953_v61, 0.0  ;;  %v945_v5 = vadd.f32 %v5890_v29, %v944_v63  ;;  %7477 = vst [vmem:[#allocation15_spill] sm:$0xff] %v6009_v58 }
  0xe8   : > { %v5370_v7 = vpop.f32.mrf.mxu0  ;;  %v1267_v63 = vld [vmem:[#allocation2 + $0x28] sm:$0xff] }
  0xe9   : > { %1093 = vst.msk [vmem:[#allocation2 + $0x48] sm:$0xff] %vm7391_vm1, %v1061_v4  ;;  %v1059_v10 = vmax.f32 %v945_v5, 0.0  ;;  %v956_v11 = vadd.f32 %v5370_v7, %v5890_v29  ;;  %v5538_v4 = vld [vmem:[%s7388_s2 + $0x40] sm:$0xff]  }
  0xea   : > { %v947_v12 = vpop.f32.mrf.mxu0  ;;  %v1695_v19 = vld [vmem:[#allocation2 + $0x17] sm:$0xff]  ;;  %v5539_v5 = vld [vmem:[%s7388_s2] sm:$0xff]   ;;  %5113 = vmatprep.subr.bf16.mxu1 %v5538_v4 }
  0xeb   : > { %1091 = vst.msk [vmem:[#allocation2 + $0x38] sm:$0xff] %vm7391_vm1, %v1059_v10  ;;  %v1062_v16 = vmax.f32 %v956_v11, 0.0  ;;  %v948_v17 = vadd.f32 %v5890_v29, %v947_v12  ;;  %v1265_v35 = vld [vmem:[#allocation2 + $0x18] sm:$0xff]  ;;  %v1727_v41 = vsel %vm5900_vm2, %v1695_v19, 0.0  ;;  %v6033_v10 = vadd.s32 80, %v5882_v27  ;;  %5114 = vmatpush3.bf16.msra.mxu1 %v5539_v5 }
  0xec   : > { %v5966_v23 = vld [vmem:[#allocation2 + $0x29] sm:$0xff]  ;;  %v5373_v25 = vpop.f32.mrf.mxu0  ;;  %v6038_v12 = vadd.s32 72, %v5882_v27  ;;  %v318_v5 = vand.u32 15, %v6051_v31  ;;  %v7488_v31 = vmov 0  ;;  %vm7500_vm2 = vcmask 523264  }
  0xed   : > { %v5048_v32 = vpack.c.bf16 %v5966_v23, %v5966_v23  ;;  %1094 = vst.msk [vmem:[#allocation2 + $0x50] sm:$0xff] %vm7391_vm1, %v1062_v16  ;;  %v1060_v33 = vmax.f32 %v948_v17, 0.0  ;;  %v969_v34 = vadd.f32 %v5373_v25, %v5890_v29  ;;  %v1268_v52 = vld [vmem:[#allocation2 + $0x30] sm:$0xff] }
  0xee   : > { %v960_v39 = vpop.f32.mrf.mxu0  ;;  %v1696_v40 = vld [vmem:[#allocation2 + $0x1f] sm:$0xff]  ;;  %v1697_v43 = vld [vmem:[#allocation2 + $0x27] sm:$0xff]  ;;  %v6030_v7 = vpack.c.bf16 %v1268_v52, %v1267_v63  ;;  %v1698_v9 = vld [vmem:[#allocation2 + $0x2f] sm:$0xff]  ;;  %vm6139_vm15 = vcmp.gt.s32.totalorder %v318_v5, 0 }
  0xef   : > { %v1266_v42 = vld [vmem:[#allocation2 + $0x20] sm:$0xff]  ;;  %2944 = vst.msk [vmem:[#allocation3 + $0x10] sm:$0xf] %vm7393_vm4, %v5048_v32  ;;  %v1065_v47 = vmax.f32 %v969_v34, 0.0  ;;  %v961_v48 = vadd.f32 %v5890_v29, %v960_v39  ;;  %v1759_v49 = vpack.c.bf16 %v1696_v40, %v1727_v41  ;;  %v1729_v56 = vsel %vm5951_vm3, %v1697_v43, 0.0  ;;  %v5543_v40 = vld [vmem:[%s7388_s2 + $0xf8] sm:$0xff]  }
  0xf0   : > { %1092 = vst.msk [vmem:[#allocation2 + $0x40] sm:$0xff] %vm7391_vm1, %v1060_v33  ;;  %v1296_v51 = vpack.c.bf16 %v1266_v42, %v1265_v35  ;;  %v6001_v53 = vld [vmem:[#allocation2 + $0x19] sm:$0xff]  ;;  %v6003_v54 = vld [vmem:[#allocation2 + $0x21] sm:$0xff]  ;;  %v5374_v55 = vpop.f32.mrf.mxu0  ;;  %v1760_v17 = vpack.c.bf16 %v1698_v9, %v1729_v56  ;;  %v7480_v33 = vmov 0  ;;  %v283_v34 = vand.u32 15, %v6009_v58  ;;  %5211 = vmatprep.subr.bf16.mxu0 %v5543_v40 }
  0xf1   : > { %v1650_v60 = vsel %vm5969_vm6, %v6003_v54, 0.0  ;;  %1097 = vst.msk [vmem:[#allocation2 + $0x68] sm:$0xff] %vm7391_vm1, %v1065_v47  ;;  %v1063_v61 = vmax.f32 %v961_v48, 0.0  ;;  %v972_v62 = vadd.f32 %v5374_v55, %v5890_v29  ;;  %1791 = vrot.lane.b32.xlu0 %v1759_v49, %s5734_s10  ;;  %v7481_v33 = vsel %vm6053_vm10, 4294967295, %v7480_v33  ;;  %v5544_v41 = vld [vmem:[%s7388_s2 + $0xb8] sm:$0xff]   ;;  %v1271_v3 = vld [vmem:[#allocation2 + $0x48] sm:$0xff] }
  0xf2   : > { %1329 = vrot.lane.b32.xlu1 %v1296_v51, %s5734_s10  ;;  %v963_v6 = vpop.f32.mrf.mxu0  ;;  %v6035_v11 = vld [vmem:[#allocation2 + $0x31] sm:$0xff]  ;;  %v6041_v14 = vpack.c.bf16 %v1650_v60, %v6001_v53  ;;  %v7482_v39 = vmov 0  ;;  %v304_v49 = vand.u32 15, %v6033_v10  ;;  %v297_v51 = vand.u32 15, %v6038_v12  ;;  %5212 = vmatpush3.bf16.msra.mxu0 %v5544_v41  ;;  %v5550_v5 = vld [vmem:[%s7388_s2 + $0xe8] sm:$0xff]  }
  0xf3   : > { %1095 = vst.msk [vmem:[#allocation2 + $0x58] sm:$0xff] %vm7391_vm1, %v1063_v61  ;;  %v1066_v15 = vmax.f32 %v972_v62, 0.0  ;;  %v964_v16 = vadd.f32 %v5890_v29, %v963_v6  ;;  %v1699_v19 = vld [vmem:[#allocation2 + $0x37] sm:$0xff]  ;;  %v2784_v21 = vsel %vm5994_vm8, %v6035_v11, 0.0  ;;  %v7483_v39 = vsel %vm6065_vm11, 4294967295, %v7482_v39 }
  0xf4   : > { %v6048_v22 = vld [vmem:[#allocation2 + $0x49] sm:$0xff]  ;;  %v5377_v25 = vpop.f32.mrf.mxu0  ;;  %v1269_v26 = vld [vmem:[#allocation2 + $0x38] sm:$0xff]  ;;  %v5049_v32 = vpack.c.bf16 %v2784_v21, %v2784_v21  ;;  %7484 = vst [vmem:[#allocation16_spill] sm:$0xff] %v7483_v39  ;;  %v1731_v48 = vsel %vm5990_vm7, %v1699_v19, 0.0  ;;  %v6096_v9 = vadd.s32 88, %v5882_v27  ;;  %vm6109_vm12 = vcmp.gt.s32.totalorder %v304_v49, 0 }
  0xf5   : > { %v5052_v35 = vpack.c.bf16 %v6048_v22, %v6048_v22  ;;  %1098 = vst.msk [vmem:[#allocation2 + $0x70] sm:$0xff] %vm7391_vm1, %v1066_v15  ;;  %v1064_v37 = vmax.f32 %v964_v16, 0.0  ;;  %v985_v38 = vadd.f32 %v5377_v25, %v5890_v29  ;;  %1331 = vrot.lane.b32.xlu0 %v6030_v7, %s5734_s10  ;;  %v1272_v4 = vld [vmem:[#allocation2 + $0x50] sm:$0xff]  ;;  %v7485_v25 = vmov 0 }
  0xf6   : > { %1793 = vrot.lane.b32.xlu1 %v1760_v17, %s5734_s10  ;;  %v976_v43 = vpop.f32.mrf.mxu0  ;;  %2945 = vst.msk [vmem:[#allocation3 + $0x24] sm:$0xf] %vm7393_vm4, %v5049_v32  ;;  %v1702_v15 = vld [vmem:[#allocation2 + $0x4f] sm:$0xff]  ;;  %v7486_v25 = vsel %vm6109_vm12, 4294967295, %v7485_v25  ;;  %vm6115_vm13 = vcmp.lt.s32.totalorder %v283_v34, 15  ;;  %vm6119_vm14 = vcmp.lt.s32.totalorder %v297_v51, 15  ;;  %v6128_v40 = vpack.c.bf16 %v1272_v4, %v1271_v3 }
  0xf7   : > { %v6075_v42 = vld [vmem:[#allocation2 + $0x39] sm:$0xff]  ;;  %2948 = vst.msk [vmem:[#allocation3 + $0x60] sm:$0xf] %vm7393_vm4, %v5052_v35  ;;  %v1069_v55 = vmax.f32 %v985_v38, 0.0  ;;  %v977_v56 = vadd.f32 %v5890_v29, %v976_v43  ;;  %v1701_v60 = vld [vmem:[#allocation2 + $0x47] sm:$0xff]  ;;  %v5547_v19 = vld [vmem:[%s7388_s2 + $0xf0] sm:$0xff]  }
  0xf8   : > { %v1270_v46 = vld [vmem:[#allocation2 + $0x40] sm:$0xff]  ;;  %v5050_v52 = vpack.c.bf16 %v6075_v42, %v6075_v42  ;;  %1096 = vst.msk [vmem:[#allocation2 + $0x60] sm:$0xff] %vm7391_vm1, %v1064_v37  ;;  %v5378_v62 = vpop.f32.mrf.mxu0  ;;  %v1733_v16 = vsel %vm6019_vm9, %v1701_v60, 0.0  ;;  %7487 = vst [vmem:[#allocation17_spill] sm:$0xff] %v7486_v25  ;;  %v7489_v31 = vsel %vm6115_vm13, 4294967295, %v7488_v31  ;;  %v6124_v35 = vadd.s32 104, %v5882_v27  ;;  %5213 = vmatprep.subr.bf16.mxu0 %v5547_v19 }
  0xf9   : > { %v1700_v47 = vld [vmem:[#allocation2 + $0x3f] sm:$0xff]  ;;  %v6087_v57 = vpack.c.bf16 %v1270_v46, %v1269_v26  ;;  %1101 = vst.msk [vmem:[#allocation2 + $0x88] sm:$0xff] %vm7391_vm1, %v1069_v55  ;;  %v1067_v10 = vmax.f32 %v977_v56, 0.0  ;;  %v988_v12 = vadd.f32 %v5378_v62, %v5890_v29  ;;  %7490 = vst [vmem:[#allocation18_spill] sm:$0xff] %v7489_v31  ;;  %v5548_v43 = vld [vmem:[%s7388_s2 + $0xb0] sm:$0xff]   ;;  %v6144_v55 = vadd.s32 112, %v5882_v27 }
  0xfa   : > { %v6089_v61 = vld [vmem:[#allocation2 + $0x41] sm:$0xff]  ;;  %v1761_v63 = vpack.c.bf16 %v1700_v47, %v1731_v48  ;;  %2946 = vst.msk [vmem:[#allocation3 + $0x38] sm:$0xf] %vm7393_vm4, %v5050_v52  ;;  %v979_v21 = vpop.f32.mrf.mxu0  ;;  %v6113_v26 = vld [vmem:[#allocation2 + $0x51] sm:$0xff]  ;;  %v1762_v47 = vpack.c.bf16 %v1702_v15, %v1733_v16  ;;  %v7493_v52 = vmov 0  ;;  %v311_v4 = vand.u32 15, %v6096_v9  ;;  %5214 = vmatpush3.bf16.msra.mxu0 %v5548_v43 }
  0xfb   : > { %v2786_v6 = vsel %vm5969_vm6, %v6089_v61, 0.0  ;;  %1333 = vrot.lane.b32.xlu0 %v6087_v57, %s5734_s10  ;;  %1099 = vst.msk [vmem:[#allocation2 + $0x78] sm:$0xff] %vm7391_vm1, %v1067_v10  ;;  %v1070_v37 = vmax.f32 %v988_v12, 0.0  ;;  %v980_v38 = vadd.f32 %v5890_v29, %v979_v21  ;;  %v1703_v41 = vld [vmem:[#allocation2 + $0x57] sm:$0xff]  ;;  %v2788_v34 = vsel %vm6053_vm10, %v6113_v26, 0.0  ;;  %v1275_v51 = vld [vmem:[#allocation2 + $0x68] sm:$0xff]  ;;  %5215 = vmatprep.subr.bf16.mxu0 %v5550_v5 }
  0xfc   : > { %v5051_v17 = vpack.c.bf16 %v2786_v6, %v2786_v6  ;;  %1795 = vrot.lane.b32.xlu1 %v1761_v63, %s5734_s10  ;;  %v6137_v46 = vld [vmem:[#allocation2 + $0x69] sm:$0xff]  ;;  %v5381_v48 = vpop.f32.mrf.mxu0  ;;  %v1273_v49 = vld [vmem:[#allocation2 + $0x58] sm:$0xff]  ;;  %v7494_v52 = vsel %vm6139_vm15, 4294967295, %v7493_v52  ;;  %v5053_v56 = vpack.c.bf16 %v2788_v34, %v2788_v34  ;;  %v1735_v16 = vsel %vm6065_vm11, %v1703_v41, 0.0 }
  0xfd   : > { %7495 = vst [vmem:[#allocation19_spill] sm:$0xff] %v7494_v52  ;;  %v5056_v60 = vpack.c.bf16 %v6137_v46, %v6137_v46  ;;  %1102 = vst.msk [vmem:[#allocation2 + $0x90] sm:$0xff] %vm7391_vm1, %v1070_v37  ;;  %v1068_v62 = vmax.f32 %v980_v38, 0.0  ;;  %v1001_v63 = vadd.f32 %v5381_v48, %v5890_v29  ;;  %v1276_v3 = vld [vmem:[#allocation2 + $0x70] sm:$0xff]  ;;  %v5551_v6 = vld [vmem:[%s7388_s2 + $0xa8] sm:$0xff]   ;;  %v325_v9 = vand.u32 15, %v6124_v35 }
  0xfe   : > { %2947 = vst.msk [vmem:[#allocation3 + $0x4c] sm:$0xf] %vm7393_vm4, %v5051_v17  ;;  %v992_v17 = vpop.f32.mrf.mxu0  ;;  %2949 = vst.msk [vmem:[#allocation3 + $0x74] sm:$0xf] %vm7393_vm4, %v5053_v56  ;;  %v213_v19 = vadd.s32 120, %v5882_v27  ;;  %v1706_v41 = vld [vmem:[#allocation2 + $0x6f] sm:$0xff]  ;;  %5216 = vmatpush3.bf16.msra.mxu0 %v5551_v6 }
  0xff   : > { %1335 = vrot.lane.b32.xlu0 %v6128_v40, %s5734_s10  ;;  %v6159_v10 = vld [vmem:[#allocation2 + $0x59] sm:$0xff]  ;;  %2952 = vst.msk [vmem:[#allocation3 + $0xb0] sm:$0xf] %vm7393_vm4, %v5056_v60  ;;  %v1073_v37 = vmax.f32 %v1001_v63, 0.0  ;;  %v1705_v43 = vld [vmem:[#allocation2 + $0x67] sm:$0xff]  ;;  %v993_v35 = vadd.f32 %v5890_v29, %v992_v17  ;;  %v332_v60 = vand.u32 15, %v6144_v55  ;;  %v6187_v63 = vpack.c.bf16 %v1276_v3, %v1275_v51 }
 0x100   : > { %1797 = vrot.lane.b32.xlu1 %v1762_v47, %s5734_s10  ;;  %v1274_v12 = vld [vmem:[#allocation2 + $0x60] sm:$0xff]  ;;  %v5054_v21 = vpack.c.bf16 %v6159_v10, %v6159_v10  ;;  %1100 = vst.msk [vmem:[#allocation2 + $0x80] sm:$0xff] %vm7391_vm1, %v1068_v62  ;;  %v5382_v48 = vpop.f32.mrf.mxu0  ;;  %v1737_v56 = vsel %vm6109_vm12, %v1705_v43, 0.0  ;;  %vm6189_vm0 = vcmp.lt.s32.totalorder %v311_v4, 15  ;;  %v339_v3 = vand.u32 15, %v213_v19 }
 0x101   : > { %v1704_v15 = vld [vmem:[#allocation2 + $0x5f] sm:$0xff]  ;;  %v6171_v38 = vpack.c.bf16 %v1274_v12, %v1273_v49  ;;  %1105 = vst.msk [vmem:[#allocation2 + $0xa8] sm:$0xff] %vm7391_vm1, %v1073_v37  ;;  %v1004_v49 = vadd.f32 %v5382_v48, %v5890_v29  ;;  %v6198_v37 = vadd.s32 128, %v5882_v27  ;;  %vm6210_vm1 = vcmp.lt.s32.totalorder %v325_v9, 15 }
 0x102   : > { %v1763_v34 = vpack.c.bf16 %v1704_v15, %v1735_v16  ;;  %v6173_v47 = vld [vmem:[#allocation2 + $0x61] sm:$0xff]  ;;  %2950 = vst.msk [vmem:[#allocation3 + $0x88] sm:$0xf] %vm7393_vm4, %v5054_v21  ;;  %v1071_v15 = vmax.f32 %v993_v35, 0.0  ;;  %v1764_v16 = vpack.c.bf16 %v1706_v41, %v1737_v56  ;;  %v995_v17 = vpop.f32.mrf.mxu0  ;;  %v1707_v21 = vld [vmem:[#allocation2 + $0x77] sm:$0xff]  ;;  %vm7509_vm11 = vcmask 523264  }
 0x103   : > { %v2790_v62 = vsel %vm6115_vm13, %v6173_v47, 0.0  ;;  %1337 = vrot.lane.b32.xlu0 %v6171_v38, %s5734_s10  ;;  %v5554_v55 = vld [vmem:[%s7388_s2 + $0xe0] sm:$0xff]   ;;  %v6200_v51 = vld [vmem:[#allocation2 + $0x71] sm:$0xff]  ;;  %v1074_v43 = vmax.f32 %v1004_v49, 0.0  ;;  %v996_v48 = vadd.f32 %v5890_v29, %v995_v17  ;;  %v1739_v35 = vsel %vm6139_vm15, %v1707_v21, 0.0 }
 0x104   : > { %v5055_v5 = vpack.c.bf16 %v2790_v62, %v2790_v62  ;;  %1799 = vrot.lane.b32.xlu1 %v1763_v34, %s5734_s10  ;;  %v5555_v4 = vld [vmem:[%s7388_s2 + $0xa0] sm:$0xff]   ;;  %v2792_v34 = vsel %vm6119_vm14, %v6200_v51, 0.0  ;;  %5217 = vmatprep.subr.bf16.mxu0 %v5554_v55  ;;  %v6214_v19 = vld [vmem:[#allocation2 + $0x89] sm:$0xff]  ;;  %1103 = vst.msk [vmem:[#allocation2 + $0x98] sm:$0xff] %vm7500_vm2, %v1071_v15  ;;  %v1277_v6 = vld [vmem:[#allocation2 + $0x78] sm:$0xff]  ;;  %v5385_v56 = vpop.f32.mrf.mxu0  ;;  %v7502_v55 = vmov 0 }
 0x105   : > { %v5057_v62 = vpack.c.bf16 %v2792_v34, %v2792_v34  ;;  %v5060_v9 = vpack.c.bf16 %v6214_v19, %v6214_v19  ;;  %v1017_v15 = vadd.f32 %v5385_v56, %v5890_v29  ;;  %v5557_v17 = vld [vmem:[%s7388_s2 + $0xd8] sm:$0xff]   ;;  %v346_v18 = vand.u32 15, %v6198_v37  ;;  %5218 = vmatpush3.bf16.msra.mxu0 %v5555_v4 }
 0x106   : > { %2951 = vst.msk [vmem:[#allocation3 + $0x9c] sm:$0xf] %vm7393_vm4, %v5055_v5  ;;  %vm7501_vm4 = vmmov %vm7500_vm2  ;;  %v1072_v5 = vmax.f32 %v996_v48, 0.0  ;;  %vm6227_vm2 = vcmp.gt.s32.totalorder %v332_v60, 0  ;;  %v5558_v21 = vld [vmem:[%s7388_s2 + $0x98] sm:$0xff]   ;;  %v1008_v60 = vpop.f32.mrf.mxu0  ;;  %vm6243_vm15 = vcmp.lt.s32.totalorder %v339_v3, 15  ;;  %5219 = vmatprep.subr.bf16.mxu0 %v5557_v17 }
 0x107   : > { %1106 = vst.msk [vmem:[#allocation2 + $0xb0] sm:$0xff] %vm7501_vm4, %v1074_v43  ;;  %1339 = vrot.lane.b32.xlu0 %v6187_v63, %s5734_s10  ;;  %v7503_v55 = vsel %vm6227_vm2, 4294967295, %v7502_v55  ;;  %v6238_v34 = vld [vmem:[#allocation2 + $0x79] sm:$0xff]  ;;  %vm7505_vm4 = vcmask 519168   ;;  %v1710_v3 = vld [vmem:[#allocation2 + $0x8f] sm:$0xff]  ;;  %v1077_v58 = vmax.f32 %v1017_v15, 0.0  ;;  %v1009_v24 = vadd.f32 %v5890_v29, %v1008_v60 }
 0x108   : > { %7504 = vst [vmem:[#allocation20_spill] sm:$0xff] %v7503_v55  ;;  %1801 = vrot.lane.b32.xlu1 %v1764_v16, %s5734_s10  ;;  %v1278_v43 = vld [vmem:[#allocation2 + $0x80] sm:$0xff]  ;;  %2953 = vst.msk [vmem:[#allocation3 + $0xc4] sm:$0xf] %vm7505_vm4, %v5057_v62  ;;  %v5058_v16 = vpack.c.bf16 %v6238_v34, %v6238_v34  ;;  %v2096_v4 = vsel %vm5994_vm8, %v6003_v54, 0.0  ;;  %v5386_v30 = vpop.f32.mrf.mxu0  ;;  %v1279_v17 = vld [vmem:[#allocation2 + $0x88] sm:$0xff] }
 0x109   : > { %v1708_v48 = vld [vmem:[#allocation2 + $0x7f] sm:$0xff]  ;;  %vm7508_vm12 = vmmov %vm7505_vm4  ;;  %1104 = vst.msk [vmem:[#allocation2 + $0xa0] sm:$0xff] %vm7509_vm11, %v1072_v5  ;;  %v6254_v49 = vpack.c.bf16 %v1278_v43, %v1277_v6  ;;  %v1709_v62 = vld [vmem:[#allocation2 + $0x87] sm:$0xff]  ;;  %5220 = vmatpush3.bf16.msra.mxu0 %v5558_v21  ;;  %v7513_v21 = vmov 0  ;;  %v381_v55 = vand.u32 15, %v219_v36  ;;  %v2100_v36 = vsel %vm6053_vm10, %v6089_v61, 0.0 }
 0x10a   : > { %2956 = vst.msk [vmem:[#allocation3 + $0x100] sm:$0xf] %vm7508_vm12, %v5060_v9  ;;  %v1765_v37 = vpack.c.bf16 %v1708_v48, %v1739_v35  ;;  %v6256_v8 = vld [vmem:[#allocation2 + $0x81] sm:$0xff]  ;;  %v1741_v9 = vsel %vm6227_vm2, %v1709_v62, 0.0  ;;  %vm7510_vm11 = vmmov %vm7505_vm4  ;;  %vm7511_vm12 = vcmask 523264   ;;  %v1020_v35 = vadd.f32 %v5386_v30, %v5890_v29  ;;  %v5561_v5 = vld [vmem:[%s7388_s2 + $0xd0] sm:$0xff]   ;;  %v1011_v60 = vpop.f32.mrf.mxu0 }
 0x10b   : > { %v2794_v6 = vsel %vm6189_vm0, %v6256_v8, 0.0  ;;  %2954 = vst.msk [vmem:[#allocation3 + $0xd8] sm:$0xf] %vm7510_vm11, %v5058_v16  ;;  %1341 = vrot.lane.b32.xlu0 %v6254_v49, %s5734_s10  ;;  %v1766_v15 = vpack.c.bf16 %v1710_v3, %v1741_v9  ;;  %v1280_v43 = vld [vmem:[#allocation2 + $0x90] sm:$0xff]  ;;  %v1075_v48 = vmax.f32 %v1009_v24, 0.0  ;;  %v6277_v16 = vadd.s32 136, %v5882_v27  ;;  %5221 = vmatprep.subr.bf16.mxu0 %v5561_v5  ;;  %vm7512_vm11 = vmmov %vm7511_vm12 }
 0x10c   : > { %1109 = vst.msk [vmem:[#allocation2 + $0xc8] sm:$0xff] %vm7511_vm12, %v1077_v58  ;;  %v5059_v54 = vpack.c.bf16 %v2794_v6, %v2794_v6  ;;  %1803 = vrot.lane.b32.xlu1 %v1765_v37, %s5734_s10  ;;  %v5562_v30 = vld [vmem:[%s7388_s2 + $0x90] sm:$0xff]   ;;  %v2127_v58 = vpack.c.bf16 %v2096_v4, %v6001_v53  ;;  %v1078_v62 = vmax.f32 %v1020_v35, 0.0  ;;  %v1012_v6 = vadd.f32 %v5890_v29, %v1011_v60  ;;  %v5389_v9 = vpop.f32.mrf.mxu0  ;;  %v5564_v60 = vld [vmem:[%s7388_s2 + $0xc8] sm:$0xff]   ;;  %v2015_v41 = vld [vmem:[#allocation2 + $0x18] sm:$0xff] }
 0x10d   : > { %v6285_v37 = vld [vmem:[#allocation2 + $0x91] sm:$0xff]  ;;  %1107 = vst.msk [vmem:[#allocation2 + $0xb8] sm:$0xff] %vm7512_vm11, %v1075_v48  ;;  %vm6293_vm12 = vcmp.gt.s32.totalorder %v346_v18, 0  ;;  %v216_v4 = vadd.s32 144, %v5882_v27  ;;  %v6304_v5 = vpack.c.bf16 %v1280_v43, %v1279_v17  ;;  %v1033_v48 = vadd.f32 %v5389_v9, %v5890_v29  ;;  %5222 = vmatpush3.bf16.msra.mxu0 %v5562_v30  ;;  %v5565_v17 = vld [vmem:[%s7388_s2 + $0x88] sm:$0xff]  }
 0x10e   : > { %2955 = vst.msk [vmem:[#allocation3 + $0xec] sm:$0xf] %vm7505_vm4, %v5059_v54  ;;  %v6290_v3 = vld [vmem:[#allocation2 + $0xa9] sm:$0xff]  ;;  %v7514_v21 = vsel %vm6293_vm12, 4294967295, %v7513_v21  ;;  %v1711_v53 = vld [vmem:[#allocation2 + $0x97] sm:$0xff]  ;;  %v2796_v35 = vsel %vm6210_vm1, %v6285_v37, 0.0  ;;  %vm7516_vm4 = vmmov %vm7512_vm11  ;;  %v1024_v1 = vpop.f32.mrf.mxu0  ;;  %5223 = vmatprep.subr.bf16.mxu0 %v5564_v60  ;;  %v2129_v52 = vpack.c.bf16 %v2100_v36, %v6075_v42 }
 0x10f   : > { %7515 = vst [vmem:[#allocation21_spill] sm:$0xff] %v7514_v21  ;;  %v5064_v54 = vpack.c.bf16 %v6290_v3, %v6290_v3  ;;  %2159 = vrot.lane.b32.xlu0 %v2127_v58, %s5734_s10  ;;  %1110 = vst.msk [vmem:[#allocation2 + $0xd0] sm:$0xff] %vm7516_vm4, %v1078_v62  ;;  %v1076_v18 = vmax.f32 %v1012_v6, 0.0  ;;  %v5061_v59 = vpack.c.bf16 %v2796_v35, %v2796_v35  ;;  %vm7517_vm11 = vcmask 519168  }
 0x110   : > { %v6311_v24 = vld [vmem:[#allocation2 + $0x99] sm:$0xff]  ;;  %1805 = vrot.lane.b32.xlu1 %v1766_v15, %s5734_s10  ;;  %v1743_v62 = vsel %vm6293_vm12, %v1711_v53, 0.0  ;;  %v1081_v15 = vmax.f32 %v1033_v48, 0.0  ;;  %v6324_v6 = vld [vmem:[#allocation2 + $0xa1] sm:$0xff]  ;;  %v353_v30 = vand.u32 15, %v6277_v16  ;;  %v2098_v9 = vsel %vm5969_vm6, %v6035_v11, 0.0  ;;  %v5390_v2 = vpop.f32.mrf.mxu0 }
 0x111   : > { %2960 = vst.msk [vmem:[#allocation3 + $0x150] sm:$0xf] %vm7517_vm11, %v5064_v54  ;;  %v5062_v43 = vpack.c.bf16 %v6311_v24, %v6311_v24  ;;  %v1712_v58 = vld [vmem:[#allocation2 + $0x9f] sm:$0xff]  ;;  %v360_v35 = vand.u32 15, %v216_v4  ;;  %v1025_v54 = vadd.f32 %v5890_v29, %v1024_v1  ;;  %2957 = vst.msk [vmem:[#allocation3 + $0x114] sm:$0xf] %vm7517_vm11, %v5061_v59  ;;  %v1036_v1 = vadd.f32 %v5390_v2, %v5890_v29 }
 0x112   : > { %1108 = vst.msk [vmem:[#allocation2 + $0xc0] sm:$0xff] %vm7516_vm4, %v1076_v18  ;;  %v2798_v53 = vsel %vm6243_vm15, %v6324_v6, 0.0  ;;  %v5568_v18 = vld [vmem:[%s7388_s2 + $0xc0] sm:$0xff]   ;;  %vm7518_vm4 = vmmov %vm7517_vm11  ;;  %vm7519_vm6 = vcmask 523264   ;;  %v1767_v59 = vpack.c.bf16 %v1712_v58, %v1743_v62  ;;  %v1281_v11 = vld [vmem:[#allocation2 + $0x98] sm:$0xff]  ;;  %v1027_v48 = vpop.f32.mrf.mxu0  ;;  %v367_v60 = vand.u32 15, %v217_v50  ;;  %5224 = vmatpush3.bf16.msra.mxu0 %v5565_v17 }
 0x113   : > { %2958 = vst.msk [vmem:[#allocation3 + $0x128] sm:$0xf] %vm7518_vm4, %v5062_v43  ;;  %1343 = vrot.lane.b32.xlu0 %v6304_v5, %s5734_s10  ;;  %v5063_v28 = vpack.c.bf16 %v2798_v53, %v2798_v53  ;;  %v1282_v16 = vld [vmem:[#allocation2 + $0xa0] sm:$0xff]  ;;  %v1079_v4 = vmax.f32 %v1025_v54, 0.0  ;;  %v1082_v2 = vmax.f32 %v1036_v1, 0.0  ;;  %v1028_v53 = vadd.f32 %v5890_v29, %v1027_v48  ;;  %vm7520_vm11 = vmmov %vm7518_vm4  ;;  %5225 = vmatprep.subr.bf16.mxu0 %v5568_v18 }
 0x114   : > { %1113 = vst.msk [vmem:[#allocation2 + $0xe8] sm:$0xff] %vm7519_vm6, %v1081_v15  ;;  %2527 = vrot.lane.b32.xlu1 %v6030_v7, %s5734_s10  ;;  %v5569_v43 = vld [vmem:[%s7388_s2 + $0x80] sm:$0xff]   ;;  %v2128_v15 = vpack.c.bf16 %v2098_v9, %v5966_v23  ;;  %vm6352_vm4 = vcmp.lt.s32.totalorder %v353_v30, 15  ;;  %v6356_v58 = vld [vmem:[#allocation2 + $0xb1] sm:$0xff]  ;;  %vm6360_vm6 = vcmp.gt.s32.totalorder %v360_v35, 0  ;;  %v7523_v17 = vmov 0  ;;  %v5393_v9 = vpop.f32.mrf.mxu0 }
 0x115   : > { %2959 = vst.msk [vmem:[#allocation3 + $0x13c] sm:$0xf] %vm7520_vm11, %v5063_v28  ;;  %v7524_v17 = vsel %vm6360_vm6, 4294967295, %v7523_v17  ;;  %v1713_v62 = vld [vmem:[#allocation2 + $0xa7] sm:$0xff]  ;;  %vm7526_vm12 = vcmask 523264   ;;  %v218_v23 = vadd.s32 160, %v5882_v27  ;;  %v6372_v18 = vpack.c.bf16 %v1282_v16, %v1281_v11 }
 0x116   : > { %v6358_v50 = vld [vmem:[#allocation2 + $0xc9] sm:$0xff]  ;;  %7525 = vst [vmem:[#allocation22_spill] sm:$0xff] %v7524_v17  ;;  %1111 = vst.msk [vmem:[#allocation2 + $0xd8] sm:$0xff] %vm7526_vm12, %v1079_v4  ;;  %v2800_v30 = vsel %vm6352_vm4, %v6356_v58, 0.0  ;;  %v1080_v35 = vmax.f32 %v1028_v53, 0.0  ;;  %v1049_v1 = vadd.f32 %v5393_v9, %v5890_v29  ;;  %v1040_v4 = vpop.f32.mrf.mxu0  ;;  %5226 = vmatpush3.bf16.msra.mxu0 %v5569_v43  ;;  %vm7530_vm2 = vcmask 519168  }
 0x117   : > { %v5068_v54 = vpack.c.bf16 %v6358_v50, %v6358_v50  ;;  %2161 = vrot.lane.b32.xlu0 %v2128_v15, %s5734_s10  ;;  %vm7527_vm11 = vmmov %vm7526_vm12  ;;  %v5065_v48 = vpack.c.bf16 %v2800_v30, %v2800_v30  ;;  %vm6379_vm12 = vcmp.lt.s32.totalorder %v367_v60, 15  ;;  %v1714_v16 = vld [vmem:[#allocation2 + $0xaf] sm:$0xff]  ;;  %v1745_v15 = vsel %vm6360_vm6, %v1713_v62, 0.0 }
 0x118   : > { %1114 = vst.msk [vmem:[#allocation2 + $0xf0] sm:$0xff] %vm7527_vm11, %v1082_v2  ;;  %1807 = vrot.lane.b32.xlu1 %v1767_v59, %s5734_s10  ;;  %1112 = vst.msk [vmem:[#allocation2 + $0xe0] sm:$0xff] %vm7527_vm11, %v1080_v35  ;;  %v1085_v59 = vmax.f32 %v1049_v1, 0.0  ;;  %v221_v60 = vadd.s32 184, %v5882_v27  ;;  %v374_v43 = vand.u32 15, %v218_v23  ;;  %v1041_v53 = vadd.f32 %v5890_v29, %v1040_v4  ;;  %v5394_v9 = vpop.f32.mrf.mxu0  ;;  %v1283_v35 = vld [vmem:[#allocation2 + $0xa8] sm:$0xff] }
 0x119   : > { %v6377_v28 = vld [vmem:[#allocation2 + $0xb9] sm:$0xff]  ;;  %2964 = vst.msk [vmem:[#allocation3 + $0x1a0] sm:$0xf] %vm7530_vm2, %v5068_v54  ;;  %v6389_v2 = vld [vmem:[#allocation2 + $0xc1] sm:$0xff]  ;;  %2961 = vst.msk [vmem:[#allocation3 + $0x164] sm:$0xf] %vm7530_vm2, %v5065_v48  ;;  %v1052_v61 = vadd.f32 %v5394_v9, %v5890_v29  ;;  %v1768_v54 = vpack.c.bf16 %v1714_v16, %v1745_v15 }
 0x11a   : > { %v5066_v11 = vpack.c.bf16 %v6377_v28, %v6377_v28  ;;  %v2802_v62 = vsel %vm6379_vm12, %v6389_v2, 0.0  ;;  %vm7531_vm11 = vmmov %vm7530_vm2  ;;  %v220_v30 = vadd.s32 176, %v5882_v27  ;;  %vm7532_vm6 = vcmask 523264   ;;  %v1284_v1 = vld [vmem:[#allocation2 + $0xb0] sm:$0xff]  ;;  %v1043_v48 = vpop.f32.mrf.mxu0 }
 0x11b   : > { %1345 = vrot.lane.b32.xlu0 %v6372_v18, %s5734_s10  ;;  %1117 = vst.msk [vmem:[#allocation2 + $0x108] sm:$0xff] %vm7532_vm6, %v1085_v59  ;;  %v5067_v23 = vpack.c.bf16 %v2802_v62, %v2802_v62  ;;  %v1083_v4 = vmax.f32 %v1041_v53, 0.0  ;;  %vm6408_vm2 = vcmp.lt.s32.totalorder %v381_v55, 15  ;;  %v223_v17 = vadd.s32 200, %v5882_v27  ;;  %vm7535_vm6 = vmmov %vm7531_vm11  ;;  %v1715_v55 = vld [vmem:[#allocation2 + $0xb7] sm:$0xff]  ;;  %v1718_v31 = vld [vmem:[#allocation2 + $0xcf] sm:$0xff] }
 0x11c   : > { %2962 = vst.msk [vmem:[#allocation3 + $0x178] sm:$0xf] %vm7531_vm11, %v5066_v11  ;;  %2529 = vrot.lane.b32.xlu1 %v6087_v57, %s5734_s10  ;;  %v1086_v59 = vmax.f32 %v1052_v61, 0.0  ;;  %v1044_v9 = vadd.f32 %v5890_v29, %v1043_v48  ;;  %v395_v57 = vand.u32 15, %v221_v60  ;;  %vm6420_vm11 = vcmp.gt.s32.totalorder %v374_v43, 0  ;;  %v1716_v48 = vld [vmem:[#allocation2 + $0xbf] sm:$0xff] }
 0x11d   : > { %2963 = vst.msk [vmem:[#allocation3 + $0x18c] sm:$0xf] %vm7535_vm6, %v5067_v23  ;;  %v6416_v62 = vld [vmem:[#allocation2 + $0xd1] sm:$0xff]  ;;  %v7536_v15 = vmov 0  ;;  %vm7539_vm10 = vcmask 523264   ;;  %v227_v29 = vadd.s32 232, %v5882_v27  ;;  %v6430_v36 = vpack.c.bf16 %v1284_v1, %v1283_v35 }
 0x11e   : > { %v7537_v15 = vsel %vm6420_vm11, 4294967295, %v7536_v15  ;;  %1115 = vst.msk [vmem:[#allocation2 + $0xf8] sm:$0xff] %vm7539_vm10, %v1083_v4  ;;  %v2804_v42 = vsel %vm6408_vm2, %v6416_v62, 0.0  ;;  %vm7540_vm6 = vmmov %vm7539_vm10  ;;  %v1084_v43 = vmax.f32 %v1044_v9, 0.0  ;;  %v388_v23 = vand.u32 15, %v220_v30 }
 0x11f   : > { %v6418_v16 = vld [vmem:[#allocation2 + $0xe9] sm:$0xff]  ;;  %7538 = vst [vmem:[#allocation23_spill] sm:$0xff] %v7537_v15  ;;  %2163 = vrot.lane.b32.xlu0 %v2129_v52, %s5734_s10  ;;  %1118 = vst.msk [vmem:[#allocation2 + $0x110] sm:$0xff] %vm7540_vm6, %v1086_v59  ;;  %v5069_v53 = vpack.c.bf16 %v2804_v42, %v2804_v42  ;;  %v6436_v61 = vld [vmem:[#allocation2 + $0xd9] sm:$0xff]  ;;  %v409_v4 = vand.u32 15, %v223_v17  ;;  %vm7541_vm10 = vcmask 519168  }
 0x120   : > { %v5072_v60 = vpack.c.bf16 %v6418_v16, %v6418_v16  ;;  %1809 = vrot.lane.b32.xlu1 %v1768_v54, %s5734_s10  ;;  %v1747_v52 = vsel %vm6420_vm11, %v1715_v55, 0.0  ;;  %v5070_v35 = vpack.c.bf16 %v6436_v61, %v6436_v61  ;;  %vm7542_vm9 = vmmov %vm7540_vm6  ;;  %vm6445_vm7 = vcmp.lt.s32.totalorder %v395_v57, 15  ;;  %v6449_v54 = vld [vmem:[#allocation2 + $0xe1] sm:$0xff]  ;;  %v1285_v42 = vld [vmem:[#allocation2 + $0xb8] sm:$0xff] }
 0x121   : > { %1116 = vst.msk [vmem:[#allocation2 + $0x100] sm:$0xff] %vm7542_vm9, %v1084_v43  ;;  %vm7543_vm6 = vmmov %vm7541_vm10  ;;  %v225_v17 = vadd.s32 216, %v5882_v27  ;;  %v2102_v30 = vsel %vm6115_vm13, %v6113_v26, 0.0  ;;  %v2806_v59 = vsel %vm6445_vm7, %v6449_v54, 0.0  ;;  %v437_v9 = vand.u32 15, %v227_v29 }
 0x122   : > { %2968 = vst.msk [vmem:[#allocation3 + $0x1f0] sm:$0xf] %vm7541_vm10, %v5072_v60  ;;  %vm7546_vm9 = vmmov %vm7543_vm6  ;;  %v5071_v57 = vpack.c.bf16 %v2806_v59, %v2806_v59  ;;  %v1769_v55 = vpack.c.bf16 %v1716_v48, %v1747_v52  ;;  %v1286_v60 = vld [vmem:[#allocation2 + $0xc0] sm:$0xff]  ;;  %v2130_v43 = vpack.c.bf16 %v2102_v30, %v6048_v22  ;;  %vm6464_vm10 = vcmp.gt.s32.totalorder %v388_v23, 0 }
 0x123   : > { %2965 = vst.msk [vmem:[#allocation3 + $0x1b4] sm:$0xf] %vm7543_vm6, %v5069_v53  ;;  %1347 = vrot.lane.b32.xlu0 %v6430_v36, %s5734_s10  ;;  %v7547_v26 = vmov 0  ;;  %vm6469_vm11 = vcmp.lt.s32.totalorder %v409_v4, 15  ;;  %v7549_v29 = vmov 0  ;;  %v1717_v59 = vld [vmem:[#allocation2 + $0xc7] sm:$0xff]  ;;  %v6484_v4 = vpack.c.bf16 %v1286_v60, %v1285_v42  ;;  %vm7553_vm13 = vmmov %vm7543_vm6 }
 0x124   : > { %2966 = vst.msk [vmem:[#allocation3 + $0x1c8] sm:$0xf] %vm7546_vm9, %v5070_v35  ;;  %2531 = vrot.lane.b32.xlu1 %v6128_v40, %s5734_s10  ;;  %v7548_v26 = vsel %vm6464_vm10, 4294967295, %v7547_v26  ;;  %v7550_v29 = vsel %vm6469_vm11, 4294967295, %v7549_v29  ;;  %v423_v35 = vand.u32 15, %v225_v17  ;;  %v222_v48 = vadd.s32 192, %v5882_v27 }
 0x125   : > { %2967 = vst.msk [vmem:[#allocation3 + $0x1dc] sm:$0xf] %vm7543_vm6, %v5071_v57  ;;  %v6473_v53 = vld [vmem:[#allocation2 + $0xf1] sm:$0xff]  ;;  %vm6479_vm9 = vcmp.lt.s32.totalorder %v437_v9, 15  ;;  %v7551_v23 = vmov 0  ;;  %v1749_v39 = vsel %vm6464_vm10, %v1717_v59, 0.0 }
 0x126   : > { %v2779_v40 = vld [vmem:[#allocation2 + $0x109] sm:$0xff]  ;;  %v2808_v22 = vsel %vm6469_vm11, %v6473_v53, 0.0  ;;  %v7552_v23 = vsel %vm6479_vm9, 4294967295, %v7551_v23  ;;  %v2780_v52 = vld [vmem:[#allocation2 + $0x111] sm:$0xff]  ;;  %vm6499_vm3 = vcmp.lt.s32.totalorder %v423_v35, 15  ;;  %v7554_v60 = vmov 0 }
 0x127   : > { %2165 = vrot.lane.b32.xlu0 %v2130_v43, %s5734_s10  ;;  %v5076_v30 = vpack.c.bf16 %v2779_v40, %v2779_v40  ;;  %v5073_v57 = vpack.c.bf16 %v2808_v22, %v2808_v22  ;;  %v2812_v17 = vsel %vm6479_vm9, %v2780_v52, 0.0  ;;  %v2126_v9 = vsel %vm5959_vm5, %v2780_v52, 0.0  ;;  %vm7557_vm5 = vmmov %vm7543_vm6 }
 0x128   : > { %1811 = vrot.lane.b32.xlu1 %v1769_v55, %s5734_s10  ;;  %v6489_v15 = vld [vmem:[#allocation2 + $0xf9] sm:$0xff]  ;;  %v5077_v25 = vpack.c.bf16 %v2812_v17, %v2812_v17  ;;  %v7555_v60 = vsel %vm6499_vm3, 4294967295, %v7554_v60  ;;  %v6503_v55 = vld [vmem:[#allocation2 + $0x101] sm:$0xff]  ;;  %v6505_v43 = vpack.c.bf16 %v2126_v9, %v2779_v40  ;;  %v2104_v22 = vsel %vm6119_vm14, %v6173_v47, 0.0 }
 0x129   : > { %2972 = vst.msk [vmem:[#allocation3 + $0x240] sm:$0xf] %vm7543_vm6, %v5076_v30  ;;  %v5074_v42 = vpack.c.bf16 %v6489_v15, %v6489_v15  ;;  %v402_v59 = vand.u32 15, %v222_v48  ;;  %v2810_v52 = vsel %vm6499_vm3, %v6503_v55, 0.0  ;;  %v1770_v40 = vpack.c.bf16 %v1718_v31, %v1749_v39  ;;  %v1287_v30 = vld [vmem:[#allocation2 + $0xc8] sm:$0xff]  ;;  %v1720_v39 = vld [vmem:[#allocation2 + $0xdf] sm:$0xff] }
 0x12a   : > { %2969 = vst.msk [vmem:[#allocation3 + $0x204] sm:$0xf] %vm7553_vm13, %v5073_v57  ;;  %vm7556_vm13 = vmmov %vm7543_vm6  ;;  %v5075_v35 = vpack.c.bf16 %v2810_v52, %v2810_v52  ;;  %v1288_v57 = vld [vmem:[#allocation2 + $0xd0] sm:$0xff]  ;;  %v2131_v48 = vpack.c.bf16 %v2104_v22, %v6159_v10  ;;  %v224_v9 = vadd.s32 208, %v5882_v27  ;;  %v2106_v10 = vsel %vm6189_vm0, %v6200_v51, 0.0  ;;  %v1290_v52 = vld [vmem:[#allocation2 + $0xe0] sm:$0xff] }
 0x12b   : > { %2973 = vst.msk [vmem:[#allocation3 + $0x254] sm:$0xf] %vm7543_vm6, %v5077_v25  ;;  %1349 = vrot.lane.b32.xlu0 %v6484_v4, %s5734_s10  ;;  %vm6521_vm10 = vcmp.gt.s32.totalorder %v402_v59, 0  ;;  %v1719_v25 = vld [vmem:[#allocation2 + $0xd7] sm:$0xff] }
 0x12c   : > { %2970 = vst.msk [vmem:[#allocation3 + $0x218] sm:$0xf] %vm7556_vm13, %v5074_v42  ;;  %2533 = vrot.lane.b32.xlu1 %v6171_v38, %s5734_s10  ;;  %v6527_v42 = vpack.c.bf16 %v1288_v57, %v1287_v30  ;;  %v1751_v31 = vsel %vm6521_vm10, %v1719_v25, 0.0  ;;  %v416_v38 = vand.u32 15, %v224_v9  ;;  %v1289_v59 = vld [vmem:[#allocation2 + $0xd8] sm:$0xff]  ;;  %v7560_v30 = vmov 0 }
 0x12d   : > { %2971 = vst.msk [vmem:[#allocation3 + $0x22c] sm:$0xf] %vm7557_vm5, %v5075_v35  ;;  %v1771_v22 = vpack.c.bf16 %v1720_v39, %v1751_v31  ;;  %v226_v35 = vadd.s32 224, %v5882_v27  ;;  %v1721_v57 = vld [vmem:[#allocation2 + $0xe7] sm:$0xff]  ;;  %v1722_v9 = vld [vmem:[#allocation2 + $0xef] sm:$0xff]  ;;  %v2108_v39 = vsel %vm6210_vm1, %v6256_v8, 0.0 }
 0x12e   : > { %vm6541_vm5 = vcmp.gt.s32.totalorder %v416_v38, 0  ;;  %v2133_v38 = vpack.c.bf16 %v2108_v39, %v6238_v34  ;;  %v2110_v34 = vsel %vm6243_vm15, %v6285_v37, 0.0  ;;  %v1726_v37 = vld [vmem:[#allocation2 + $0x10f] sm:$0xff] }
 0x12f   : > { %2167 = vrot.lane.b32.xlu0 %v2131_v48, %s5734_s10  ;;  %v7561_v30 = vsel %vm6541_vm5, 4294967295, %v7560_v30  ;;  %v1308_v48 = vpack.c.bf16 %v1290_v52, %v1289_v59  ;;  %v430_v25 = vand.u32 15, %v226_v35  ;;  %v1723_v59 = vld [vmem:[#allocation2 + $0xf7] sm:$0xff]  ;;  %v228_v52 = vadd.s32 240, %v5882_v27 }
 0x130   : > { %1813 = vrot.lane.b32.xlu1 %v1770_v40, %s5734_s10  ;;  %v2132_v40 = vpack.c.bf16 %v2106_v10, %v6137_v46  ;;  %v1291_v46 = vld [vmem:[#allocation2 + $0xe8] sm:$0xff]  ;;  %v1292_v10 = vld [vmem:[#allocation2 + $0xf0] sm:$0xff]  ;;  %v2134_v39 = vpack.c.bf16 %v2110_v34, %v6214_v19  ;;  %v1122_v34 = vld [vmem:[#allocation2 + $0x1f] sm:$0xff] }
 0x131   : > { %vm6556_vm6 = vcmp.gt.s32.totalorder %v430_v25, 0  ;;  %v1309_v35 = vpack.c.bf16 %v1292_v10, %v1291_v46  ;;  %v7564_v46 = vmov 0 }
 0x133   : > { %1351 = vrot.lane.b32.xlu0 %v6527_v42, %s5734_s10 }
 0x134   : > { %2535 = vrot.lane.b32.xlu1 %v6187_v63, %s5734_s10  ;;  %v1753_v63 = vsel %vm6541_vm5, %v1721_v57, 0.0  ;;  %v444_v57 = vand.u32 15, %v228_v52  ;;  %v2114_v52 = vsel %vm6379_vm12, %v6356_v58, 0.0  ;;  %v2118_v58 = vsel %vm6445_vm7, %v6416_v62, 0.0 }
 0x135   : > { %v1772_v31 = vpack.c.bf16 %v1722_v9, %v1753_v63  ;;  %v1293_v9 = vld [vmem:[#allocation2 + $0xf8] sm:$0xff]  ;;  %v1294_v63 = vld [vmem:[#allocation2 + $0x100] sm:$0xff]  ;;  %v2122_v62 = vsel %vm6499_vm3, %v6473_v53, 0.0  ;;  %vm7572_vm5 = vnez %v7481_v33 }
 0x136   : > { %vm6572_vm13 = vcmp.gt.s32.totalorder %v444_v57, 0  ;;  %v1310_v10 = vpack.c.bf16 %v1294_v63, %v1293_v9 }
 0x137   : > { %2169 = vrot.lane.b32.xlu0 %v2132_v40, %s5734_s10  ;;  %v1724_v40 = vld [vmem:[#allocation2 + $0xff] sm:$0xff]  ;;  %v7565_v46 = vsel %vm6572_vm13, 4294967295, %v7564_v46 }
 0x138   : > { %1815 = vrot.lane.b32.xlu1 %v1771_v22, %s5734_s10  ;;  %v7562_v22 = vmov 0 }
 0x139   : > { %v7563_v22 = vsel %vm6556_vm6, 4294967295, %v7562_v22 }
 0x13b   : > { %1353 = vrot.lane.b32.xlu0 %v1308_v48, %s5734_s10 }
 0x13c   : > { %2537 = vrot.lane.b32.xlu1 %v6254_v49, %s5734_s10  ;;  %v1755_v49 = vsel %vm6556_vm6, %v1723_v59, 0.0 }
 0x13d   : > { %v1773_v25 = vpack.c.bf16 %v1724_v40, %v1755_v49  ;;  %v2136_v40 = vpack.c.bf16 %v2114_v52, %v6290_v3  ;;  %v2138_v3 = vpack.c.bf16 %v2118_v58, %v6358_v50  ;;  %v1121_v50 = vld [vmem:[#allocation2 + $0x17] sm:$0xff] }
 0x13f   : > { %2171 = vrot.lane.b32.xlu0 %v2133_v38, %s5734_s10 }
 0x140   : > { %1817 = vrot.lane.b32.xlu1 %v1772_v31, %s5734_s10  ;;  %v1725_v31 = vld [vmem:[#allocation2 + $0x107] sm:$0xff] }
 0x141   : > { %v1757_v38 = vsel %vm6572_vm13, %v1725_v31, 0.0  ;;  %vm7566_vm13 = vnez %v7467_v13  ;;  %v6645_v31 = vld [vmem:[#allocation2 + $0x37] sm:$0xff] }
 0x142   : > { %v1774_v19 = vpack.c.bf16 %v1726_v37, %v1757_v38  ;;  %v1217_v53 = vsel %vm7566_vm13, %v1121_v50, 0.0  ;;  %v6660_v50 = vld [vmem:[#allocation2 + $0x47] sm:$0xff] }
 0x143   : > { %1355 = vrot.lane.b32.xlu0 %v1309_v35, %s5734_s10 }
 0x144   : > { %2539 = vrot.lane.b32.xlu1 %v6304_v5, %s5734_s10  ;;  %v2112_v5 = vsel %vm6352_vm4, %v6324_v6, 0.0  ;;  %v2116_v6 = vsel %vm6408_vm2, %v6389_v2, 0.0 }
 0x145   : > { %v2135_v59 = vpack.c.bf16 %v2112_v5, %v6311_v24  ;;  %v2137_v24 = vpack.c.bf16 %v2116_v6, %v6377_v28  ;;  %v2120_v28 = vsel %vm6469_vm11, %v6449_v54, 0.0  ;;  %v1551_v54 = vld [vmem:[#allocation2 + $0x9] sm:$0xff] }
 0x146   : > { %v2139_v2 = vpack.c.bf16 %v2120_v28, %v6436_v61  ;;  %v2124_v61 = vsel %vm6479_vm9, %v6503_v55, 0.0  ;;  %vm7568_vm9 = vcmask 523264   ;;  %v2494_v28 = vld [vmem:[#allocation2 + $0x120] sm:$0xff] }
 0x147   : > { %2173 = vrot.lane.b32.xlu0 %v2134_v39, %s5734_s10  ;;  %v2141_v45 = vpack.c.bf16 %v2124_v61, %v6489_v15  ;;  %vm7569_vm6 = vmmov %vm7568_vm9  ;;  %v6643_v39 = vld [vmem:[#allocation2 + $0x2f] sm:$0xff]  ;;  %v1558_v61 = vld [vmem:[#allocation2 + $0x41] sm:$0xff] }
 0x148   : > { %1819 = vrot.lane.b32.xlu1 %v1773_v25, %s5734_s10  ;;  %v2492_v15 = vld [vmem:[#allocation2 + $0x110] sm:$0xff]  ;;  %vm7571_vm3 = vmmov %vm7569_vm6 }
 0x14b   : > { %1357 = vrot.lane.b32.xlu0 %v1310_v10, %s5734_s10 }
 0x14c   : > { %2541 = vrot.lane.b32.xlu1 %v6372_v18, %s5734_s10  ;;  %v6606_v18 = vld [vmem:[%s7388_s2 + $0x118] sm:$0xff]  }
 0x14d   : > { %5395 = vmatprep.subr.bf16.mxu1 %v6606_v18 }
 0x14f   : > { %2175 = vrot.lane.b32.xlu0 %v2135_v59, %s5734_s10  ;;  %v1556_v59 = vld [vmem:[#allocation2 + $0x31] sm:$0xff] }
 0x150   : > { %1821 = vrot.lane.b32.xlu1 %v1774_v19, %s5734_s10  ;;  %v2491_v19 = vld [vmem:[#allocation2 + $0x108] sm:$0xff] }
 0x153   : > { %2177 = vrot.lane.b32.xlu0 %v2136_v40, %s5734_s10 }
 0x154   : > { %2543 = vrot.lane.b32.xlu1 %v6430_v36, %s5734_s10  ;;  %v1552_v36 = vld [vmem:[#allocation2 + $0x11] sm:$0xff] }
 0x155   : > { %v1648_v49 = vsel %vm5994_vm8, %v1552_v36, 0.0  ;;  %vm7567_vm8 = vnez %v7474_v44  ;;  %v1652_v36 = vsel %vm7572_vm5, %v1556_v59, 0.0  ;;  %vm7575_vm5 = vmmov %vm7569_vm6 }
 0x156   : > { %vm7578_vm11 = vmmov %vm7575_vm5 }
 0x157   : > { %2179 = vrot.lane.b32.xlu0 %v2137_v24, %s5734_s10  ;;  %v6650_v24 = vld [vmem:[#allocation2 + $0x3f] sm:$0xff] }
 0x158   : > { %2545 = vrot.lane.b32.xlu1 %v6484_v4, %s5734_s10  ;;  %v2140_v4 = vpack.c.bf16 %v2122_v62, %v6418_v16  ;;  %v1248_v16 = vpack.c.bf16 %v1122_v34, %v1217_v53  ;;  %v2509_v62 = vpack.c.bf16 %v2492_v15, %v2491_v19  ;;  %v6675_v19 = vld [vmem:[#allocation2 + $0x57] sm:$0xff] }
 0x159   : > { %v1560_v15 = vld [vmem:[#allocation2 + $0x51] sm:$0xff] }
 0x15b   : > { %2181 = vrot.lane.b32.xlu0 %v2138_v3, %s5734_s10  ;;  %v2493_v3 = vld [vmem:[#allocation2 + $0x118] sm:$0xff] }
 0x15c   : > { %2547 = vrot.lane.b32.xlu1 %v6527_v42, %s5734_s10  ;;  %v6631_v42 = vld [vmem:[#allocation2 + $0x27] sm:$0xff] }
 0x15d   : > { %v1219_v9 = vsel %vm7567_vm8, %v6631_v42, 0.0 }
 0x15e   : > { %v1249_v52 = vpack.c.bf16 %v6643_v39, %v1219_v9 }
 0x15f   : > { %2183 = vrot.lane.b32.xlu0 %v2139_v2, %s5734_s10 }
 0x160   : > { %2549 = vrot.lane.b32.xlu1 %v1308_v48, %s5734_s10  ;;  %v1679_v48 = vpack.c.bf16 %v1648_v49, %v1551_v54 }
 0x163   : > { %2185 = vrot.lane.b32.xlu0 %v2140_v4, %s5734_s10  ;;  %v1792_v57 = vpop.permute.xlu0 %1791 }
 0x164   : > { %2551 = vrot.lane.b32.xlu1 %v1309_v35, %s5734_s10  ;;  %v1330_v25 = vpop.permute.xlu1 %1329  ;;  %v1825_v55 = vsel %vm7568_vm9, %v1679_v48, %v1792_v57  ;;  %vm7570_vm9 = vnez %v7479_v0  ;;  %v1555_v48 = vld [vmem:[#allocation2 + $0x29] sm:$0xff] }
 0x165   : > { %v1364_v63 = vsel %vm7569_vm6, %v1248_v16, %v1330_v25  ;;  %v4765_v37 = vcombine.low %v1825_v55, %v1825_v55  ;;  %v4766_v35 = vcombine.high %v1825_v55, %v1825_v55  ;;  %v1221_v58 = vsel %vm7570_vm9, %v6645_v31, 0.0  ;;  %v6666_v57 = vld [vmem:[#allocation2 + $0x4f] sm:$0xff]  ;;  %v1557_v55 = vld [vmem:[#allocation2 + $0x39] sm:$0xff]  ;;  %v6804_v0 = vld [vmem:[#allocation2 + $0xc7] sm:$0xff] }
 0x166   : > { %v4735_v38 = vcombine.low %v1364_v63, %v1364_v63  ;;  %v4736_v5 = vcombine.high %v1364_v63, %v1364_v63  ;;  %v1250_v53 = vpack.c.bf16 %v6650_v24, %v1221_v58  ;;  %v1681_v16 = vpack.c.bf16 %v1652_v36, %v1555_v48  ;;  %v7573_v25 = vld [vmem:[#allocation16_spill] sm:$0xff]  ;;  %v7576_v63 = vld [vmem:[#allocation18_spill] sm:$0xff] }
 0x167   : > { %2187 = vrot.lane.b32.xlu0 %v2141_v45, %s5734_s10  ;;  %1983 = vst [vmem:[#allocation3 + $0x4] sm:$0xf] %v4765_v37  ;;  %1984 = vst [vmem:[#allocation3 + $0x18] sm:$0xf] %v4766_v35  ;;  %v1332_v40 = vpop.permute.xlu0 %1331  ;;  %v1656_v36 = vsel %vm6119_vm14, %v1560_v15, 0.0  ;;  %v6701_v15 = vld [vmem:[#allocation2 + $0x77] sm:$0xff] }
 0x168   : > { %2553 = vrot.lane.b32.xlu1 %v1310_v10, %s5734_s10  ;;  %1521 = vst [vmem:[#allocation3 + $0x28] sm:$0xf] %v4735_v38  ;;  %1522 = vst [vmem:[#allocation3 + $0x3c] sm:$0xf] %v4736_v5  ;;  %v1794_v6 = vpop.permute.xlu1 %1793  ;;  %v1367_v2 = vsel %vm7569_vm6, %v1249_v52, %v1332_v40  ;;  %vm7577_vm6 = vnez %v7576_v63  ;;  %v7582_v63 = vld [vmem:[#allocation19_spill] sm:$0xff]  ;;  %v1239_v1 = vsel %vm6521_vm10, %v6804_v0, 0.0 }
 0x169   : > { %v1828_v10 = vsel %vm7571_vm3, %v6041_v14, %v1794_v6  ;;  %v4737_v4 = vcombine.low %v1367_v2, %v1367_v2  ;;  %v4738_v54 = vcombine.high %v1367_v2, %v1367_v2  ;;  %v2510_v14 = vpack.c.bf16 %v2494_v28, %v2493_v3  ;;  %v5540_v6 = vld [vmem:[#allocation3] ss:$20 sps:$4 sm:$0xff]  }
 0x16a   : > { %v4767_v49 = vcombine.low %v1828_v10, %v1828_v10  ;;  %v4768_v34 = vcombine.high %v1828_v10, %v1828_v10  ;;  %vm7574_vm3 = vnez %v7573_v25  ;;  %v1654_v37 = vsel %vm7577_vm6, %v1558_v61, 0.0  ;;  %v6679_v2 = vld [vmem:[#allocation2 + $0x5f] sm:$0xff] }
 0x16b   : > { %2189 = vrot.lane.b32.xlu0 %v6505_v43, %s5734_s10  ;;  %1523 = vst [vmem:[#allocation3 + $0x50] sm:$0xf] %v4737_v4  ;;  %1524 = vst [vmem:[#allocation3 + $0x64] sm:$0xf] %v4738_v54  ;;  %v1223_v45 = vsel %vm7574_vm3, %v6660_v50, 0.0  ;;  %v1682_v3 = vpack.c.bf16 %v1654_v37, %v1557_v55  ;;  %v6684_v4 = vld [vmem:[#allocation2 + $0x67] sm:$0xff]  ;;  %vm7583_vm14 = vnez %v7582_v63 }
 0x16c   : > { %2555 = vrot.lane.b32.xlu1 %v2509_v62, %s5734_s10  ;;  %1985 = vst [vmem:[#allocation3 + $0x2c] sm:$0xf] %v4767_v49  ;;  %1986 = vst [vmem:[#allocation3 + $0x40] sm:$0xf] %v4768_v34  ;;  %v1251_v40 = vpack.c.bf16 %v6666_v57, %v1223_v45  ;;  %v5638_v54 = vld [vmem:[%s7388_s2 + $0x110] sm:$0xff]   ;;  %v1227_v37 = vsel %vm7583_vm14, %v6684_v4, 0.0 }
 0x16d   : > { %v1334_v33 = vpop.permute.xlu0 %1333  ;;  %v6694_v55 = vld [vmem:[#allocation2 + $0x6f] sm:$0xff] }
 0x16e   : > { %v1370_v43 = vsel %vm7575_vm5, %v1250_v53, %v1334_v33  ;;  %v1796_v9 = vpop.permute.xlu1 %1795  ;;  %v5542_v28 = vld [vmem:[#allocation3 + $0x4] ss:$20 sps:$4 sm:$0xff]   ;;  %v7580_v53 = vld [vmem:[#allocation17_spill] sm:$0xff] }
 0x16f   : > { %v4739_v35 = vcombine.low %v1370_v43, %v1370_v43  ;;  %v4740_v38 = vcombine.high %v1370_v43, %v1370_v43  ;;  %v1831_v5 = vsel %vm7578_vm11, %v1681_v16, %v1796_v9  ;;  %vm7579_vm11 = vmmov %vm7575_vm5  ;;  %3844 = vmatprep.mubr.bf16.mxu1 %v5542_v28  ;;  %vm7581_vm6 = vnez %v7580_v53  ;;  %v2029_v63 = vld [vmem:[#allocation2 + $0x88] sm:$0xff] }
 0x170   : > { %v4769_v59 = vcombine.low %v1831_v5, %v1831_v5  ;;  %v4770_v52 = vcombine.high %v1831_v5, %v1831_v5  ;;  %2557 = vrot.lane.b32.xlu1 %v2510_v14, %s5734_s10  ;;  %v1225_v48 = vsel %vm7581_vm6, %v6675_v19, 0.0  ;;  %v1559_v14 = vld [vmem:[#allocation2 + $0x49] sm:$0xff]  ;;  %3845 = vmatmul.mubr.bf16.vlgmr.msra.gmra.mxu1 %v5540_v6  ;;  %v1561_v5 = vld [vmem:[#allocation2 + $0x59] sm:$0xff]  ;;  %s5735_s10 = smov [#allocation5]  }
 0x171   : > { %1525 = vst [vmem:[#allocation3 + $0x78] sm:$0xf] %v4739_v35  ;;  %1526 = vst [vmem:[#allocation3 + $0x8c] sm:$0xf] %v4740_v38  ;;  %v1336_v58 = vpop.permute.xlu0 %1335  ;;  %v1252_v32 = vpack.c.bf16 %v6679_v2, %v1225_v48  ;;  %v1683_v9 = vpack.c.bf16 %v1656_v36, %v1559_v14  ;;  %5396 = vmatpush3.bf16.msra.mxu1 %v6606_v18  ;;  %v6712_v36 = vld [vmem:[#allocation2 + $0x7f] sm:$0xff]  ;;  %s5675_s20 = sshll.u32 %s5735_s10, 4  ;;  %s5676_s20 = int_to_ptr.vmem [resolvable:$false] %s5675_s20 }
 0x172   : > { %1987 = vst [vmem:[#allocation3 + $0x54] sm:$0xf] %v4769_v59  ;;  %1988 = vst [vmem:[#allocation3 + $0x68] sm:$0xf] %v4770_v52  ;;  %v1373_v10 = vsel %vm7579_vm11, %v1251_v40, %v1336_v58  ;;  %v1798_v62 = vpop.permute.xlu1 %1797  ;;  %5397 = vmatprep.subr.bf16.mxu1 %v5638_v54  ;;  %v5641_v59 = vld [vmem:[%s7388_s2 + $0x108] sm:$0xff]   ;;  %s5677_s22 = scalar_lea.vmem %s5676_s20, 2048  ;;  %p5678_p0 = scmp.lt.s32.totalorder %s7342_s9, %s5676_s20 }
 0x173   : > { %v4741_v49 = vcombine.low %v1373_v10, %v1373_v10  ;;  %v4742_v34 = vcombine.high %v1373_v10, %v1373_v10  ;;  %v1834_v61 = vsel %vm7575_vm5, %v1682_v3, %v1798_v62  ;;  %v5545_v45 = vld [vmem:[#allocation3 + $0x2c] ss:$20 sps:$4 sm:$0xff]   ;;  %vm7584_vm11 = vmmov %vm7575_vm5  ;;  %v1253_v3 = vpack.c.bf16 %v6694_v55, %v1227_v37  ;;  %v5549_v14 = vld [vmem:[#allocation3 + $0x28] ss:$20 sps:$4 sm:$0xff]   ;;  %p5679_p1 = scmp.lt.s32.totalorder %s5677_s22, %s5671_s14 }
 0x174   : > { %v4771_v33 = vcombine.low %v1834_v61, %v1834_v61  ;;  %v4772_v16 = vcombine.high %v1834_v61, %v1834_v61  ;;  %3852 = vmatprep.mubr.bf16.mxu1 %v5545_v45  ;;  %v7585_v10 = vsel %vm6189_vm0, %v6173_v47, 0.0  ;;  %v5645_v47 = vld [vmem:[%s7388_s2 + $0x100] sm:$0xff]   ;;  %vm7588_vm0 = vmmov %vm7575_vm5 }
 0x175   : > { %1527 = vst [vmem:[#allocation3 + $0xa0] sm:$0xf] %v4741_v49  ;;  %1528 = vst [vmem:[#allocation3 + $0xb4] sm:$0xf] %v4742_v34  ;;  %v1338_v43 = vpop.permute.xlu0 %1337  ;;  %v1684_v62 = vpack.c.bf16 %v7585_v10, %v1561_v5  ;;  %v7586_v49 = vld [vmem:[#allocation20_spill] sm:$0xff]  ;;  %5398 = vmatpush3.bf16.msra.mxu1 %v5638_v54  ;;  %v2016_v5 = vld [vmem:[#allocation2 + $0x20] sm:$0xff]  ;;  %p5680_p2 = por %p5679_p1, %p5678_p0 }
 0x176   : > { %1989 = vst [vmem:[#allocation3 + $0x7c] sm:$0xf] %v4771_v33  ;;  %1990 = vst [vmem:[#allocation3 + $0x90] sm:$0xf] %v4772_v16  ;;  %v1376_v35 = vsel %vm7584_vm11, %v1252_v32, %v1338_v43  ;;  %v1800_v38 = vpop.permute.xlu1 %1799  ;;  %vm7587_vm11 = vnez %v7586_v49  ;;  %v1563_v33 = vld [vmem:[#allocation2 + $0x69] sm:$0xff]  ;;  %5399 = vmatprep.subr.bf16.mxu1 %v5641_v59 }
 0x177   : > { %v4743_v52 = vcombine.low %v1376_v35, %v1376_v35  ;;  %v4744_v40 = vcombine.high %v1376_v35, %v1376_v35  ;;  %v1837_v6 = vsel %vm7575_vm5, %v1683_v9, %v1800_v38  ;;  %v1229_v34 = vsel %vm7587_vm11, %v6701_v15, 0.0  ;;  %p5681_p3 = pnand %p5680_p2, %p5674_p13 }
 0x178   : > { %v4773_v58 = vcombine.low %v1837_v6, %v1837_v6  ;;  %v4774_v18 = vcombine.high %v1837_v6, %v1837_v6  ;;  %3853 = vmatmul.mubr.bf16.gmra.mxu1 %v5549_v14  ;;  %v1254_v54 = vpack.c.bf16 %v6712_v36, %v1229_v34  ;;  %v7589_v35 = vsel %vm6210_vm1, %v6200_v51, 0.0  ;;  %v1565_v6 = vld [vmem:[#allocation2 + $0x79] sm:$0xff] }
 0x179   : > { %1529 = vst [vmem:[#allocation3 + $0xc8] sm:$0xf] %v4743_v52  ;;  %1530 = vst [vmem:[#allocation3 + $0xdc] sm:$0xf] %v4744_v40  ;;  %v1340_v28 = vpop.permute.xlu0 %1339  ;;  %v5552_v45 = vld [vmem:[#allocation3 + $0x54] ss:$20 sps:$4 sm:$0xff]   ;;  %v1685_v38 = vpack.c.bf16 %v7589_v35, %v1563_v33  ;;  %5400 = vmatpush3.bf16.msra.mxu1 %v5641_v59 }
 0x17a   : > { %1991 = vst [vmem:[#allocation3 + $0xa4] sm:$0xf] %v4773_v58  ;;  %1992 = vst [vmem:[#allocation3 + $0xb8] sm:$0xf] %v4774_v18  ;;  %v1379_v61 = vsel %vm7575_vm5, %v1253_v3, %v1340_v28  ;;  %v1802_v48 = vpop.permute.xlu1 %1801  ;;  %3860 = vmatprep.mubr.bf16.mxu1 %v5552_v45  ;;  %v6728_v58 = vld [vmem:[#allocation2 + $0x87] sm:$0xff]  ;;  %5401 = vmatprep.subr.bf16.mxu1 %v5645_v47  ;;  %v7591_v34 = vsel %vm6243_vm15, %v6256_v8, 0.0 }
 0x17b   : > { %v4745_v12 = vcombine.low %v1379_v61, %v1379_v61  ;;  %v4746_v16 = vcombine.high %v1379_v61, %v1379_v61  ;;  %v1840_v32 = vsel %vm7588_vm0, %v1684_v62, %v1802_v48  ;;  %vm7590_vm5 = vmmov %vm7588_vm0  ;;  %v2047_v62 = vpack.c.bf16 %v2016_v5, %v2015_v41  ;;  %v6735_v48 = vld [vmem:[#allocation2 + $0x8f] sm:$0xff]  ;;  %v7592_v14 = vld [vmem:[#allocation21_spill] sm:$0xff] }
 0x17c   : > { %v4775_v43 = vcombine.low %v1840_v32, %v1840_v32  ;;  %v4776_v9 = vcombine.high %v1840_v32, %v1840_v32  ;;  %v1686_v61 = vpack.c.bf16 %v7591_v34, %v1565_v6  ;;  %vm7593_vm1 = vnez %v7592_v14  ;;  %v5556_v32 = vld [vmem:[#allocation3 + $0x50] ss:$20 sps:$4 sm:$0xff]  }
 0x17d   : > { %1531 = vst [vmem:[#allocation3 + $0xf0] sm:$0xf] %v4745_v12  ;;  %1532 = vst [vmem:[#allocation3 + $0x104] sm:$0xf] %v4746_v16  ;;  %v1342_v37 = vpop.permute.xlu0 %1341  ;;  %v1231_v33 = vsel %vm7593_vm1, %v6728_v58, 0.0  ;;  %5402 = vmatpush3.bf16.msra.mxu1 %v5645_v47  ;;  %v7595_v45 = vld [vmem:[#allocation8_spill] sm:$0xff] }
 0x17e   : > { %1993 = vst [vmem:[#allocation3 + $0xcc] sm:$0xf] %v4775_v43  ;;  %1994 = vst [vmem:[#allocation3 + $0xe0] sm:$0xf] %v4776_v9  ;;  %v1382_v52 = vsel %vm7590_vm5, %v1254_v54, %v1342_v37  ;;  %v1804_v40 = vpop.permute.xlu1 %1803  ;;  %v5559_v54 = vld [vmem:[#allocation3 + $0x7c] ss:$20 sps:$4 sm:$0xff]   ;;  %v1255_v47 = vpack.c.bf16 %v6735_v48, %v1231_v33 }
 0x17f   : > { %v4747_v18 = vcombine.low %v1382_v52, %v1382_v52  ;;  %v4748_v3 = vcombine.high %v1382_v52, %v1382_v52  ;;  %v1843_v28 = vsel %vm7588_vm0, %v1685_v38, %v1804_v40  ;;  %vm7594_vm5 = vmmov %vm7588_vm0  ;;  %vm7596_vm0 = vnez %v7595_v45  ;;  %v1568_v37 = vld [vmem:[#allocation2 + $0x91] sm:$0xff]  ;;  %v2036_v14 = vld [vmem:[#allocation2 + $0xc0] sm:$0xff] }
 0x180   : > { %v4777_v10 = vcombine.low %v1843_v28, %v1843_v28  ;;  %v4778_v51 = vcombine.high %v1843_v28, %v1843_v28  ;;  %v2415_v56 = vsel %vm7596_vm0, %v6631_v42, 0.0  ;;  %vm7597_vm15 = vmmov %vm7594_vm5  ;;  %3861 = vmatmul.mubr.bf16.gmra.mxu1 %v5556_v32  ;;  %v2018_v40 = vld [vmem:[#allocation2 + $0x30] sm:$0xff] }
 0x181   : > { %1533 = vst [vmem:[#allocation3 + $0x118] sm:$0xf] %v4747_v18  ;;  %1534 = vst [vmem:[#allocation3 + $0x12c] sm:$0xf] %v4748_v3  ;;  %v2160_v59 = vpop.permute.xlu0 %2159  ;;  %v2447_v52 = vpack.c.bf16 %v6643_v39, %v2415_v56  ;;  %3868 = vmatprep.mubr.bf16.mxu1 %v5559_v54  ;;  %v1567_v18 = vld [vmem:[#allocation2 + $0x89] sm:$0xff]  ;;  %v1664_v3 = vsel %vm6352_vm4, %v1568_v37, 0.0 }
 0x182   : > { %1995 = vst [vmem:[#allocation3 + $0xf4] sm:$0xf] %v4777_v10  ;;  %1996 = vst [vmem:[#allocation3 + $0x108] sm:$0xf] %v4778_v51  ;;  %v2193_v12 = vsel %vm7594_vm5, %v2047_v62, %v2160_v59  ;;  %v1806_v16 = vpop.permute.xlu1 %1805  ;;  %v6750_v28 = vld [vmem:[#allocation2 + $0x97] sm:$0xff]  ;;  %v2017_v62 = vld [vmem:[#allocation2 + $0x28] sm:$0xff]  ;;  %v1687_v33 = vpack.c.bf16 %v1664_v3, %v1567_v18 }
 0x183   : > { %v4797_v43 = vcombine.low %v2193_v12, %v2193_v12  ;;  %v4798_v8 = vcombine.high %v2193_v12, %v2193_v12  ;;  %v1846_v9 = vsel %vm7597_vm15, %v1686_v61, %v1806_v16  ;;  %vm7598_vm0 = vmmov %vm7594_vm5  ;;  %v2048_v34 = vpack.c.bf16 %v2018_v40, %v2017_v62  ;;  %v6753_v12 = vld [vmem:[#allocation2 + $0x9f] sm:$0xff]  ;;  %v5566_v54 = vld [vmem:[#allocation3 + $0xa4] ss:$20 sps:$4 sm:$0xff]  }
 0x184   : > { %v4779_v35 = vcombine.low %v1846_v9, %v1846_v9  ;;  %v4780_v38 = vcombine.high %v1846_v9, %v1846_v9  ;;  %v7599_v16 = vld [vmem:[#allocation22_spill] sm:$0xff]  ;;  %vm7601_vm4 = vmmov %vm7598_vm0  ;;  %v5563_v56 = vld [vmem:[#allocation3 + $0x78] ss:$20 sps:$4 sm:$0xff]  }
 0x185   : > { %2351 = vst [vmem:[#allocation3 + $0x8] sm:$0xf] %v4797_v43  ;;  %2352 = vst [vmem:[#allocation3 + $0x1c] sm:$0xf] %v4798_v8  ;;  %v1344_v5 = vpop.permute.xlu0 %1343  ;;  %vm7600_vm15 = vnez %v7599_v16  ;;  %v1570_v37 = vld [vmem:[#allocation2 + $0xa1] sm:$0xff] }
 0x186   : > { %1997 = vst [vmem:[#allocation3 + $0x11c] sm:$0xf] %v4779_v35  ;;  %1998 = vst [vmem:[#allocation3 + $0x130] sm:$0xf] %v4780_v38  ;;  %v1385_v42 = vsel %vm7594_vm5, %v1255_v47, %v1344_v5  ;;  %v2528_v6 = vpop.permute.xlu1 %2527  ;;  %v1233_v7 = vsel %vm7600_vm15, %v6750_v28, 0.0  ;;  %v2417_v5 = vsel %vm7566_vm13, %v6645_v31, 0.0 }
 0x187   : > { %v4749_v41 = vcombine.low %v1385_v42, %v1385_v42  ;;  %v4750_v10 = vcombine.high %v1385_v42, %v1385_v42  ;;  %v2561_v51 = vsel %vm7598_vm0, %v2447_v52, %v2528_v6  ;;  %vm7602_vm5 = vmmov %vm7598_vm0  ;;  %v1256_v47 = vpack.c.bf16 %v6753_v12, %v1233_v7  ;;  %v2019_v52 = vld [vmem:[#allocation2 + $0x38] sm:$0xff]  ;;  %v2020_v6 = vld [vmem:[#allocation2 + $0x40] sm:$0xff] }
 0x188   : > { %v4829_v59 = vcombine.low %v2561_v51, %v2561_v51  ;;  %v4830_v39 = vcombine.high %v2561_v51, %v2561_v51  ;;  %3869 = vmatmul.mubr.bf16.gmra.mxu1 %v5563_v56  ;;  %v2448_v42 = vpack.c.bf16 %v6650_v24, %v2417_v5  ;;  %v6768_v51 = vld [vmem:[#allocation2 + $0xa7] sm:$0xff]  ;;  %vm7603_vm13 = vmmov %vm7598_vm0  ;;  %v2049_v24 = vpack.c.bf16 %v2020_v6, %v2019_v52 }
 0x189   : > { %1535 = vst [vmem:[#allocation3 + $0x140] sm:$0xf] %v4749_v41  ;;  %1536 = vst [vmem:[#allocation3 + $0x154] sm:$0xf] %v4750_v10  ;;  %v2162_v61 = vpop.permute.xlu0 %2161  ;;  %3876 = vmatprep.mubr.bf16.mxu1 %v5566_v54  ;;  %v1569_v41 = vld [vmem:[#allocation2 + $0x99] sm:$0xff]  ;;  %v1666_v10 = vsel %vm6379_vm12, %v1570_v37, 0.0 }
 0x18a   : > { %2719 = vst [vmem:[#allocation3 + $0xc] sm:$0xf] %v4829_v59  ;;  %2720 = vst [vmem:[#allocation3 + $0x20] sm:$0xf] %v4830_v39  ;;  %v2196_v32 = vsel %vm7601_vm4, %v2048_v34, %v2162_v61  ;;  %v1808_v45 = vpop.permute.xlu1 %1807  ;;  %v6771_v34 = vld [vmem:[#allocation2 + $0xaf] sm:$0xff] }
 0x18b   : > { %v4799_v43 = vcombine.low %v2196_v32, %v2196_v32  ;;  %v4800_v8 = vcombine.high %v2196_v32, %v2196_v32  ;;  %v1849_v9 = vsel %vm7602_vm5, %v1687_v33, %v1808_v45  ;;  %v1688_v33 = vpack.c.bf16 %v1666_v10, %v1569_v41  ;;  %v7604_v32 = vld [vmem:[#allocation23_spill] sm:$0xff]  ;;  %vm7606_vm12 = vmmov %vm7598_vm0 }
 0x18c   : > { %v4781_v35 = vcombine.low %v1849_v9, %v1849_v9  ;;  %v4782_v38 = vcombine.high %v1849_v9, %v1849_v9  ;;  %v5570_v7 = vld [vmem:[#allocation3 + $0x8] ss:$20 sps:$4 sm:$0xff]   ;;  %vm7605_vm4 = vnez %v7604_v32  ;;  %v2419_v9 = vsel %vm7567_vm8, %v6660_v50, 0.0  ;;  %vm7607_vm5 = vmmov %vm7598_vm0  ;;  %v2022_v50 = vld [vmem:[#allocation2 + $0x50] sm:$0xff] }
 0x18d   : > { %2353 = vst [vmem:[#allocation3 + $0x30] sm:$0xf] %v4799_v43  ;;  %2354 = vst [vmem:[#allocation3 + $0x44] sm:$0xf] %v4800_v8  ;;  %v1346_v40 = vpop.permute.xlu0 %1345  ;;  %v1235_v21 = vsel %vm7605_vm4, %v6768_v51, 0.0  ;;  %v2449_v44 = vpack.c.bf16 %v6666_v57, %v2419_v9  ;;  %v1571_v41 = vld [vmem:[#allocation2 + $0xa9] sm:$0xff] }
 0x18e   : > { %1999 = vst [vmem:[#allocation3 + $0x144] sm:$0xf] %v4781_v35  ;;  %2000 = vst [vmem:[#allocation3 + $0x158] sm:$0xf] %v4782_v38  ;;  %v1388_v18 = vsel %vm7598_vm0, %v1256_v47, %v1346_v40  ;;  %v2530_v3 = vpop.permute.xlu1 %2529  ;;  %v5573_v8 = vld [vmem:[#allocation3 + $0xa0] ss:$20 sps:$4 sm:$0xff]   ;;  %v1257_v40 = vpack.c.bf16 %v6771_v34, %v1235_v21 }
 0x18f   : > { %v4751_v13 = vcombine.low %v1388_v18, %v1388_v18  ;;  %v4752_v31 = vcombine.high %v1388_v18, %v1388_v18  ;;  %v2564_v62 = vsel %vm7603_vm13, %v2448_v42, %v2530_v3  ;;  %v5574_v38 = vld [vmem:[#allocation3 + $0xcc] ss:$20 sps:$4 sm:$0xff]   ;;  %v2021_v42 = vld [vmem:[#allocation2 + $0x48] sm:$0xff]  ;;  %vm7608_vm8 = vmmov %vm7598_vm0  ;;  %vm7609_vm13 = vnez %v7548_v26 }
 0x190   : > { %v4831_v59 = vcombine.low %v2564_v62, %v2564_v62  ;;  %v4832_v39 = vcombine.high %v2564_v62, %v2564_v62  ;;  %v1572_v47 = vld [vmem:[#allocation2 + $0xb1] sm:$0xff]  ;;  %3877 = vmatmul.mubr.bf16.gmra.mxu1 %v5573_v8  ;;  %v2050_v57 = vpack.c.bf16 %v2022_v50, %v2021_v42  ;;  %v2024_v50 = vld [vmem:[#allocation2 + $0x60] sm:$0xff] }
 0x191   : > { %1537 = vst [vmem:[#allocation3 + $0x168] sm:$0xf] %v4751_v13  ;;  %1538 = vst [vmem:[#allocation3 + $0x17c] sm:$0xf] %v4752_v31  ;;  %v2164_v61 = vpop.permute.xlu0 %2163  ;;  %v5572_v43 = vld [vmem:[#allocation3 + $0xc] ss:$20 sps:$4 sm:$0xff]   ;;  %3884 = vmatprep.mubr.bf16.mxu1 %v5574_v38 }
 0x192   : > { %2721 = vst [vmem:[#allocation3 + $0x34] sm:$0xf] %v4831_v59  ;;  %2722 = vst [vmem:[#allocation3 + $0x48] sm:$0xf] %v4832_v39  ;;  %v2199_v45 = vsel %vm7606_vm12, %v2049_v24, %v2164_v61  ;;  %v1810_v56 = vpop.permute.xlu1 %1809  ;;  %4005 = vmatprep.mubr.bf16.mxu0 %v5572_v43  ;;  %v1668_v10 = vsel %vm6408_vm2, %v1572_v47, 0.0  ;;  %v6786_v13 = vld [vmem:[#allocation2 + $0xb7] sm:$0xff] }
 0x193   : > { %v4801_v54 = vcombine.low %v2199_v45, %v2199_v45  ;;  %v4802_v37 = vcombine.high %v2199_v45, %v2199_v45  ;;  %v1852_v35 = vsel %vm7607_vm5, %v1688_v33, %v1810_v56  ;;  %4006 = vmatmul.mubr.bf16.vlgmr.msra.gmra.mxu0 %v5570_v7  ;;  %v6789_v61 = vld [vmem:[#allocation2 + $0xbf] sm:$0xff]  ;;  %v1689_v7 = vpack.c.bf16 %v1668_v10, %v1571_v41  ;;  %vm7610_vm2 = vmmov %vm7598_vm0  ;;  %v5578_v43 = vld [vmem:[#allocation3 + $0xc8] ss:$20 sps:$4 sm:$0xff]  }
 0x194   : > { %v4783_v5 = vcombine.low %v1852_v35, %v1852_v35  ;;  %v4784_v52 = vcombine.high %v1852_v35, %v1852_v35  ;;  %v1237_v11 = vsel %vm7609_vm13, %v6786_v13, 0.0  ;;  %v5579_v8 = vld [vmem:[#allocation3 + $0x30] ss:$20 sps:$4 sm:$0xff]   ;;  %vm7611_vm12 = vmmov %vm7598_vm0  ;;  %v5580_v35 = vld [vmem:[#allocation3 + $0xf4] ss:$20 sps:$4 sm:$0xff]  }
 0x195   : > { %2355 = vst [vmem:[#allocation3 + $0x58] sm:$0xf] %v4801_v54  ;;  %2356 = vst [vmem:[#allocation3 + $0x6c] sm:$0xf] %v4802_v37  ;;  %v1348_v6 = vpop.permute.xlu0 %1347  ;;  %v1574_v38 = vld [vmem:[#allocation2 + $0xc1] sm:$0xff]  ;;  %v2023_v42 = vld [vmem:[#allocation2 + $0x58] sm:$0xff] }
 0x196   : > { %2001 = vst [vmem:[#allocation3 + $0x16c] sm:$0xf] %v4783_v5  ;;  %2002 = vst [vmem:[#allocation3 + $0x180] sm:$0xf] %v4784_v52  ;;  %v1391_v18 = vsel %vm7608_vm8, %v1257_v40, %v1348_v6  ;;  %v2532_v3 = vpop.permute.xlu1 %2531  ;;  %v1258_v52 = vpack.c.bf16 %v6789_v61, %v1237_v11  ;;  %v2421_v40 = vsel %vm7570_vm9, %v6675_v19, 0.0  ;;  %v1573_v41 = vld [vmem:[#allocation2 + $0xb9] sm:$0xff] }
 0x197   : > { %v4753_v31 = vcombine.low %v1391_v18, %v1391_v18  ;;  %v4754_v62 = vcombine.high %v1391_v18, %v1391_v18  ;;  %v2567_v59 = vsel %vm7598_vm0, %v2449_v44, %v2532_v3  ;;  %v2450_v44 = vpack.c.bf16 %v6679_v2, %v2421_v40  ;;  %vm7612_vm5 = vmmov %vm7598_vm0  ;;  %v2040_v32 = vld [vmem:[#allocation2 + $0xe0] sm:$0xff] }
 0x198   : > { %v4833_v39 = vcombine.low %v2567_v59, %v2567_v59  ;;  %v4834_v24 = vcombine.high %v2567_v59, %v2567_v59  ;;  %3885 = vmatmul.mubr.bf16.gmra.mxu1 %v5578_v43  ;;  %v1670_v10 = vsel %vm6445_vm7, %v1574_v38, 0.0  ;;  %vm7613_vm9 = vmmov %vm7598_vm0  ;;  %v2051_v2 = vpack.c.bf16 %v2024_v50, %v2023_v42 }
 0x199   : > { %1539 = vst [vmem:[#allocation3 + $0x190] sm:$0xf] %v4753_v31  ;;  %1540 = vst [vmem:[#allocation3 + $0x1a4] sm:$0xf] %v4754_v62  ;;  %v2166_v33 = vpop.permute.xlu0 %2165  ;;  %v5576_v21 = vld [vmem:[#allocation3 + $0x34] ss:$20 sps:$4 sm:$0xff]   ;;  %3892 = vmatprep.mubr.bf16.mxu1 %v5580_v35 }
 0x19a   : > { %2723 = vst [vmem:[#allocation3 + $0x5c] sm:$0xf] %v4833_v39  ;;  %2724 = vst [vmem:[#allocation3 + $0x70] sm:$0xf] %v4834_v24  ;;  %v2202_v45 = vsel %vm7610_vm2, %v2050_v57, %v2166_v33  ;;  %v1812_v56 = vpop.permute.xlu1 %1811  ;;  %4013 = vmatprep.mubr.bf16.mxu0 %v5576_v21  ;;  %v6807_v24 = vld [vmem:[#allocation2 + $0xcf] sm:$0xff]  ;;  %v1690_v33 = vpack.c.bf16 %v1670_v10, %v1573_v41  ;;  %v2423_v43 = vsel %vm7574_vm3, %v6684_v4, 0.0 }
 0x19b   : > { %v4803_v9 = vcombine.low %v2202_v45, %v2202_v45  ;;  %v4804_v54 = vcombine.high %v2202_v45, %v2202_v45  ;;  %v1855_v37 = vsel %vm7611_vm12, %v1689_v7, %v1812_v56  ;;  %4014 = vmatmul.mubr.bf16.gmra.mxu0 %v5579_v8  ;;  %vm7614_vm7 = vmmov %vm7598_vm0  ;;  %v5584_v45 = vld [vmem:[#allocation3 + $0xf0] ss:$20 sps:$4 sm:$0xff]   ;;  %v2451_v25 = vpack.c.bf16 %v6694_v55, %v2423_v43 }
 0x19c   : > { %v4785_v47 = vcombine.low %v1855_v37, %v1855_v37  ;;  %v4786_v5 = vcombine.high %v1855_v37, %v1855_v37  ;;  %v5585_v56 = vld [vmem:[#allocation3 + $0x58] ss:$20 sps:$4 sm:$0xff]   ;;  %vm7615_vm8 = vmmov %vm7598_vm0  ;;  %v5586_v37 = vld [vmem:[#allocation3 + $0x11c] ss:$20 sps:$4 sm:$0xff]   ;;  %vm7618_vm12 = vnez %v7561_v30 }
 0x19d   : > { %2357 = vst [vmem:[#allocation3 + $0x80] sm:$0xf] %v4803_v9  ;;  %2358 = vst [vmem:[#allocation3 + $0x94] sm:$0xf] %v4804_v54  ;;  %v1350_v6 = vpop.permute.xlu0 %1349  ;;  %v1576_v35 = vld [vmem:[#allocation2 + $0xd1] sm:$0xff] }
 0x19e   : > { %2003 = vst [vmem:[#allocation3 + $0x194] sm:$0xf] %v4785_v47  ;;  %2004 = vst [vmem:[#allocation3 + $0x1a8] sm:$0xf] %v4786_v5  ;;  %v1394_v18 = vsel %vm7612_vm5, %v1258_v52, %v1350_v6  ;;  %v2534_v3 = vpop.permute.xlu1 %2533  ;;  %v1259_v5 = vpack.c.bf16 %v6807_v24, %v1239_v1  ;;  %v2025_v52 = vld [vmem:[#allocation2 + $0x68] sm:$0xff]  ;;  %v2026_v4 = vld [vmem:[#allocation2 + $0x70] sm:$0xff] }
 0x19f   : > { %v4755_v19 = vcombine.low %v1394_v18, %v1394_v18  ;;  %v4756_v31 = vcombine.high %v1394_v18, %v1394_v18  ;;  %v2570_v62 = vsel %vm7613_vm9, %v2450_v44, %v2534_v3  ;;  %vm7616_vm3 = vmmov %vm7598_vm0  ;;  %v1575_v44 = vld [vmem:[#allocation2 + $0xc9] sm:$0xff]  ;;  %vm7617_vm0 = vnez %v7550_v29  ;;  %v6822_v18 = vld [vmem:[#allocation2 + $0xd7] sm:$0xff] }
 0x1a0   : > { %v4835_v59 = vcombine.low %v2570_v62, %v2570_v62  ;;  %v4836_v39 = vcombine.high %v2570_v62, %v2570_v62  ;;  %3893 = vmatmul.mubr.bf16.gmra.mxu1 %v5584_v45  ;;  %v1672_v50 = vsel %vm7617_vm0, %v1576_v35, 0.0  ;;  %v2781_v3 = vld [vmem:[#allocation2 + $0x119] sm:$0xff]  ;;  %v1241_v29 = vsel %vm7618_vm12, %v6822_v18, 0.0  ;;  %vm7620_vm9 = vmmov %vm7610_vm2 }
 0x1a1   : > { %1541 = vst [vmem:[#allocation3 + $0x1b8] sm:$0xf] %v4755_v19  ;;  %1542 = vst [vmem:[#allocation3 + $0x1cc] sm:$0xf] %v4756_v31  ;;  %v2168_v57 = vpop.permute.xlu0 %2167  ;;  %v5582_v7 = vld [vmem:[#allocation3 + $0x5c] ss:$20 sps:$4 sm:$0xff]   ;;  %3900 = vmatprep.mubr.bf16.mxu1 %v5586_v37  ;;  %v5078_v31 = vpack.c.bf16 %v2781_v3, %v2781_v3  ;;  %vm7625_vm0 = vnez %v7563_v22 }
 0x1a2   : > { %2725 = vst [vmem:[#allocation3 + $0x84] sm:$0xf] %v4835_v59  ;;  %2726 = vst [vmem:[#allocation3 + $0x98] sm:$0xf] %v4836_v39  ;;  %v2205_v21 = vsel %vm7614_vm7, %v2051_v2, %v2168_v57  ;;  %v1814_v11 = vpop.permute.xlu1 %1813  ;;  %4021 = vmatprep.mubr.bf16.mxu0 %v5582_v7  ;;  %v2052_v59 = vpack.c.bf16 %v2026_v4, %v2025_v52  ;;  %v6825_v39 = vld [vmem:[#allocation2 + $0xdf] sm:$0xff]  ;;  %v1691_v57 = vpack.c.bf16 %v1672_v50, %v1575_v44  ;;  %vm7619_vm5 = vcmask 519168  }
 0x1a3   : > { %v4805_v8 = vcombine.low %v2205_v21, %v2205_v21  ;;  %v4806_v9 = vcombine.high %v2205_v21, %v2205_v21  ;;  %v1858_v54 = vsel %vm7615_vm8, %v1690_v33, %v1814_v11  ;;  %4022 = vmatmul.mubr.bf16.gmra.mxu0 %v5585_v56  ;;  %2974 = vst.msk [vmem:[#allocation3 + $0x268] sm:$0xf] %vm7619_vm5, %v5078_v31  ;;  %v5590_v21 = vld [vmem:[#allocation3 + $0x118] ss:$20 sps:$4 sm:$0xff]   ;;  %v2425_v45 = vsel %vm7581_vm6, %v6701_v15, 0.0  ;;  %vm7621_vm7 = vmmov %vm7610_vm2  ;;  %v2028_v15 = vld [vmem:[#allocation2 + $0x80] sm:$0xff] }
 0x1a4   : > { %v4787_v38 = vcombine.low %v1858_v54, %v1858_v54  ;;  %v4788_v47 = vcombine.high %v1858_v54, %v1858_v54  ;;  %v5591_v11 = vld [vmem:[#allocation3 + $0x80] ss:$20 sps:$4 sm:$0xff]   ;;  %v2452_v53 = vpack.c.bf16 %v6712_v36, %v2425_v45  ;;  %vm7622_vm6 = vmmov %vm7610_vm2  ;;  %vm7623_vm8 = vnez %v7555_v60 }
 0x1a5   : > { %2359 = vst [vmem:[#allocation3 + $0xa8] sm:$0xf] %v4805_v8  ;;  %2360 = vst [vmem:[#allocation3 + $0xbc] sm:$0xf] %v4806_v9  ;;  %v1352_v40 = vpop.permute.xlu0 %1351  ;;  %v5592_v9 = vld [vmem:[#allocation3 + $0x144] ss:$20 sps:$4 sm:$0xff]  }
 0x1a6   : > { %2005 = vst [vmem:[#allocation3 + $0x1bc] sm:$0xf] %v4787_v38  ;;  %2006 = vst [vmem:[#allocation3 + $0x1d0] sm:$0xf] %v4788_v47  ;;  %v1397_v42 = vsel %vm7616_vm3, %v1259_v5, %v1352_v40  ;;  %v2536_v6 = vpop.permute.xlu1 %2535  ;;  %v1578_v54 = vld [vmem:[#allocation2 + $0xe1] sm:$0xff]  ;;  %v1260_v38 = vpack.c.bf16 %v6825_v39, %v1241_v29  ;;  %v2027_v47 = vld [vmem:[#allocation2 + $0x78] sm:$0xff] }
 0x1a7   : > { %v4757_v41 = vcombine.low %v1397_v42, %v1397_v42  ;;  %v4758_v10 = vcombine.high %v1397_v42, %v1397_v42  ;;  %v2573_v19 = vsel %vm7610_vm2, %v2451_v25, %v2536_v6  ;;  %v1577_v25 = vld [vmem:[#allocation2 + $0xd9] sm:$0xff]  ;;  %v1674_v4 = vsel %vm7623_vm8, %v1578_v54, 0.0  ;;  %v6841_v42 = vld [vmem:[#allocation2 + $0xe7] sm:$0xff]  ;;  %vm7624_vm3 = vmmov %vm7610_vm2 }
 0x1a8   : > { %v4837_v55 = vcombine.low %v2573_v19, %v2573_v19  ;;  %v4838_v62 = vcombine.high %v2573_v19, %v2573_v19  ;;  %3901 = vmatmul.mubr.bf16.gmra.mxu1 %v5590_v21  ;;  %v2053_v36 = vpack.c.bf16 %v2028_v15, %v2027_v47  ;;  %v1692_v31 = vpack.c.bf16 %v1674_v4, %v1577_v25  ;;  %vm7626_vm5 = vmmov %vm7610_vm2  ;;  %v5598_v21 = vld [vmem:[#allocation3 + $0x16c] ss:$20 sps:$4 sm:$0xff]  }
 0x1a9   : > { %1543 = vst [vmem:[#allocation3 + $0x1e0] sm:$0xf] %v4757_v41  ;;  %1544 = vst [vmem:[#allocation3 + $0x1f4] sm:$0xf] %v4758_v10  ;;  %v2170_v2 = vpop.permute.xlu0 %2169  ;;  %v5588_v33 = vld [vmem:[#allocation3 + $0x84] ss:$20 sps:$4 sm:$0xff]   ;;  %3908 = vmatprep.mubr.bf16.mxu1 %v5592_v9 }
 0x1aa   : > { %2727 = vst [vmem:[#allocation3 + $0xac] sm:$0xf] %v4837_v55  ;;  %2728 = vst [vmem:[#allocation3 + $0xc0] sm:$0xf] %v4838_v62  ;;  %v2208_v7 = vsel %vm7620_vm9, %v2052_v59, %v2170_v2  ;;  %v1816_v1 = vpop.permute.xlu1 %1815  ;;  %4029 = vmatprep.mubr.bf16.mxu0 %v5588_v33  ;;  %v6844_v10 = vld [vmem:[#allocation2 + $0xef] sm:$0xff]  ;;  %v1243_v60 = vsel %vm7625_vm0, %v6841_v42, 0.0  ;;  %vm7628_vm9 = vnez %v7552_v23 }
 0x1ab   : > { %v4807_v56 = vcombine.low %v2208_v7, %v2208_v7  ;;  %v4808_v43 = vcombine.high %v2208_v7, %v2208_v7  ;;  %v1861_v8 = vsel %vm7621_vm7, %v1691_v57, %v1816_v1  ;;  %4030 = vmatmul.mubr.bf16.gmra.mxu0 %v5591_v11  ;;  %v5596_v2 = vld [vmem:[#allocation3 + $0x140] ss:$20 sps:$4 sm:$0xff]   ;;  %v2427_v33 = vsel %vm7583_vm14, %v6728_v58, 0.0  ;;  %vm7627_vm14 = vmmov %vm7610_vm2  ;;  %v6859_v47 = vld [vmem:[#allocation2 + $0xf7] sm:$0xff] }
 0x1ac   : > { %v4789_v37 = vcombine.low %v1861_v8, %v1861_v8  ;;  %v4790_v35 = vcombine.high %v1861_v8, %v1861_v8  ;;  %v5597_v57 = vld [vmem:[#allocation3 + $0xa8] ss:$20 sps:$4 sm:$0xff]   ;;  %v2453_v9 = vpack.c.bf16 %v6735_v48, %v2427_v33  ;;  %v2030_v58 = vld [vmem:[#allocation2 + $0x90] sm:$0xff]  ;;  %vm7629_vm7 = vmmov %vm7610_vm2 }
 0x1ad   : > { %2361 = vst [vmem:[#allocation3 + $0xd0] sm:$0xf] %v4807_v56  ;;  %2362 = vst [vmem:[#allocation3 + $0xe4] sm:$0xf] %v4808_v43  ;;  %v1354_v5 = vpop.permute.xlu0 %1353  ;;  %v1580_v11 = vld [vmem:[#allocation2 + $0xf1] sm:$0xff]  ;;  %v1261_v43 = vpack.c.bf16 %v6844_v10, %v1243_v60  ;;  %v6862_v25 = vld [vmem:[#allocation2 + $0xff] sm:$0xff] }
 0x1ae   : > { %2007 = vst [vmem:[#allocation3 + $0x1e4] sm:$0xf] %v4789_v37  ;;  %2008 = vst [vmem:[#allocation3 + $0x1f8] sm:$0xf] %v4790_v35  ;;  %v1400_v52 = vsel %vm7622_vm6, %v1260_v38, %v1354_v5  ;;  %v2538_v40 = vpop.permute.xlu1 %2537  ;;  %v1579_v35 = vld [vmem:[#allocation2 + $0xe9] sm:$0xff]  ;;  %v1676_v38 = vsel %vm7628_vm9, %v1580_v11, 0.0  ;;  %vm7630_vm6 = vnez %v7565_v46 }
 0x1af   : > { %v4759_v6 = vcombine.low %v1400_v52, %v1400_v52  ;;  %v4760_v44 = vcombine.high %v1400_v52, %v1400_v52  ;;  %v2576_v50 = vsel %vm7624_vm3, %v2452_v53, %v2538_v40  ;;  %v2054_v40 = vpack.c.bf16 %v2030_v58, %v2029_v63  ;;  %vm7631_vm8 = vmmov %vm7610_vm2  ;;  %v1581_v11 = vld [vmem:[#allocation2 + $0xf9] sm:$0xff] }
 0x1b0   : > { %v4839_v3 = vcombine.low %v2576_v50, %v2576_v50  ;;  %v4840_v41 = vcombine.high %v2576_v50, %v2576_v50  ;;  %3909 = vmatmul.mubr.bf16.gmra.mxu1 %v5596_v2  ;;  %v1245_v23 = vsel %vm7630_vm6, %v6859_v47, 0.0  ;;  %vm7632_vm3 = vmmov %vm7610_vm2 }
 0x1b1   : > { %1545 = vst [vmem:[#allocation3 + $0x208] sm:$0xf] %v4759_v6  ;;  %1546 = vst [vmem:[#allocation3 + $0x21c] sm:$0xf] %v4760_v44  ;;  %v2172_v19 = vpop.permute.xlu0 %2171  ;;  %v5594_v55 = vld [vmem:[#allocation3 + $0xac] ss:$20 sps:$4 sm:$0xff]   ;;  %3916 = vmatprep.mubr.bf16.mxu1 %v5598_v21  ;;  %v1693_v6 = vpack.c.bf16 %v1676_v38, %v1579_v35  ;;  %v1262_v33 = vpack.c.bf16 %v6862_v25, %v1245_v23 }
 0x1b2   : > { %2729 = vst [vmem:[#allocation3 + $0xd4] sm:$0xf] %v4839_v3  ;;  %2730 = vst [vmem:[#allocation3 + $0xe8] sm:$0xf] %v4840_v41  ;;  %v2211_v62 = vsel %vm7610_vm2, %v2053_v36, %v2172_v19  ;;  %v1818_v59 = vpop.permute.xlu1 %1817  ;;  %4037 = vmatprep.mubr.bf16.mxu0 %v5594_v55  ;;  %v5602_v41 = vld [vmem:[#allocation3 + $0x168] ss:$20 sps:$4 sm:$0xff]  }
 0x1b3   : > { %v4809_v29 = vcombine.low %v2211_v62, %v2211_v62  ;;  %v4810_v7 = vcombine.high %v2211_v62, %v2211_v62  ;;  %v1864_v1 = vsel %vm7626_vm5, %v1692_v31, %v1818_v59  ;;  %4038 = vmatmul.mubr.bf16.gmra.mxu0 %v5597_v57  ;;  %v2429_v19 = vsel %vm7587_vm11, %v6750_v28, 0.0  ;;  %v5604_v62 = vld [vmem:[#allocation3 + $0x194] ss:$20 sps:$4 sm:$0xff]   ;;  %vm7633_vm11 = vmmov %vm7610_vm2 }
 0x1b4   : > { %v4791_v45 = vcombine.low %v1864_v1, %v1864_v1  ;;  %v4792_v56 = vcombine.high %v1864_v1, %v1864_v1  ;;  %v5603_v36 = vld [vmem:[#allocation3 + $0xd0] ss:$20 sps:$4 sm:$0xff]   ;;  %v2454_v49 = vpack.c.bf16 %v6753_v12, %v2429_v19  ;;  %vm7634_vm2 = vnez %v7469_v20  ;;  %vm7635_vm5 = vmmov %vm7632_vm3 }
 0x1b5   : > { %2363 = vst [vmem:[#allocation3 + $0xf8] sm:$0xf] %v4809_v29  ;;  %2364 = vst [vmem:[#allocation3 + $0x10c] sm:$0xf] %v4810_v7  ;;  %v1356_v8 = vpop.permute.xlu0 %1355  ;;  %v1582_v59 = vld [vmem:[#allocation2 + $0x101] sm:$0xff]  ;;  %v2031_v29 = vld [vmem:[#allocation2 + $0x98] sm:$0xff] }
 0x1b6   : > { %2009 = vst [vmem:[#allocation3 + $0x20c] sm:$0xf] %v4791_v45  ;;  %2010 = vst [vmem:[#allocation3 + $0x220] sm:$0xf] %v4792_v56  ;;  %v1403_v54 = vsel %vm7627_vm14, %v1261_v43, %v1356_v8  ;;  %v2540_v37 = vpop.permute.xlu1 %2539  ;;  %v2032_v28 = vld [vmem:[#allocation2 + $0xa0] sm:$0xff]  ;;  %v1678_v45 = vsel %vm7634_vm2, %v1582_v59, 0.0 }
 0x1b7   : > { %v4761_v5 = vcombine.low %v1403_v54, %v1403_v54  ;;  %v4762_v53 = vcombine.high %v1403_v54, %v1403_v54  ;;  %v2579_v15 = vsel %vm7629_vm7, %v2453_v9, %v2540_v37  ;;  %v2055_v58 = vpack.c.bf16 %v2032_v28, %v2031_v29  ;;  %v2033_v54 = vld [vmem:[#allocation2 + $0xa8] sm:$0xff]  ;;  %v2034_v12 = vld [vmem:[#allocation2 + $0xb0] sm:$0xff]  ;;  %vm7636_vm14 = vmmov %vm7632_vm3 }
 0x1b8   : > { %v4841_v52 = vcombine.low %v2579_v15, %v2579_v15  ;;  %v4842_v48 = vcombine.high %v2579_v15, %v2579_v15  ;;  %3917 = vmatmul.mubr.bf16.gmra.mxu1 %v5602_v41  ;;  %v1694_v35 = vpack.c.bf16 %v1678_v45, %v1581_v11  ;;  %vm7637_vm9 = vmmov %vm7632_vm3  ;;  %v5614_v28 = vld [vmem:[#allocation3 + $0x1b8] ss:$20 sps:$4 sm:$0xff]  }
 0x1b9   : > { %1547 = vst [vmem:[#allocation3 + $0x230] sm:$0xf] %v4761_v5  ;;  %1548 = vst [vmem:[#allocation3 + $0x244] sm:$0xf] %v4762_v53  ;;  %v2174_v4 = vpop.permute.xlu0 %2173  ;;  %v5600_v44 = vld [vmem:[#allocation3 + $0xd4] ss:$20 sps:$4 sm:$0xff]   ;;  %3924 = vmatprep.mubr.bf16.mxu1 %v5604_v62 }
 0x1ba   : > { %2731 = vst [vmem:[#allocation3 + $0xfc] sm:$0xf] %v4841_v52  ;;  %2732 = vst [vmem:[#allocation3 + $0x110] sm:$0xf] %v4842_v48  ;;  %v2214_v50 = vsel %vm7631_vm8, %v2054_v40, %v2174_v4  ;;  %v1820_v3 = vpop.permute.xlu1 %1819  ;;  %4045 = vmatprep.mubr.bf16.mxu0 %v5600_v44  ;;  %v5608_v53 = vld [vmem:[#allocation3 + $0x190] ss:$20 sps:$4 sm:$0xff]  }
 0x1bb   : > { %v4811_v31 = vcombine.low %v2214_v50, %v2214_v50  ;;  %v4812_v55 = vcombine.high %v2214_v50, %v2214_v50  ;;  %v1867_v60 = vsel %vm7632_vm3, %v1693_v6, %v1820_v3  ;;  %4046 = vmatmul.mubr.bf16.gmra.mxu0 %v5603_v36  ;;  %v2431_v52 = vsel %vm7593_vm1, %v6768_v51, 0.0  ;;  %v5610_v6 = vld [vmem:[#allocation3 + $0x1bc] ss:$20 sps:$4 sm:$0xff]   ;;  %v2035_v3 = vld [vmem:[#allocation2 + $0xb8] sm:$0xff]  ;;  %vm7638_vm1 = vmmov %vm7632_vm3 }
 0x1bc   : > { %v4793_v2 = vcombine.low %v1867_v60, %v1867_v60  ;;  %v4794_v57 = vcombine.high %v1867_v60, %v1867_v60  ;;  %v5609_v15 = vld [vmem:[#allocation3 + $0xf8] ss:$20 sps:$4 sm:$0xff]   ;;  %v2056_v50 = vpack.c.bf16 %v2034_v12, %v2033_v54  ;;  %v2455_v36 = vpack.c.bf16 %v6771_v34, %v2431_v52  ;;  %vm7639_vm7 = vmmov %vm7638_vm1  ;;  %v2038_v34 = vld [vmem:[#allocation2 + $0xd0] sm:$0xff] }
 0x1bd   : > { %2365 = vst [vmem:[#allocation3 + $0x120] sm:$0xf] %v4811_v31  ;;  %2366 = vst [vmem:[#allocation3 + $0x134] sm:$0xf] %v4812_v55  ;;  %v1358_v7 = vpop.permute.xlu0 %1357  ;;  %v2433_v31 = vsel %vm7600_vm15, %v6786_v13, 0.0 }
 0x1be   : > { %2011 = vst [vmem:[#allocation3 + $0x234] sm:$0xf] %v4793_v2  ;;  %2012 = vst [vmem:[#allocation3 + $0x248] sm:$0xf] %v4794_v57  ;;  %v1406_v1 = vsel %vm7633_vm11, %v1262_v33, %v1358_v7  ;;  %v2542_v21 = vpop.permute.xlu1 %2541  ;;  %v2057_v57 = vpack.c.bf16 %v2036_v14, %v2035_v3  ;;  %v2037_v33 = vld [vmem:[#allocation2 + $0xc8] sm:$0xff]  ;;  %v2456_v7 = vpack.c.bf16 %v6789_v61, %v2433_v31  ;;  %v2439_v3 = vsel %vm6521_vm10, %v6841_v42, 0.0 }
 0x1bf   : > { %v4763_v56 = vcombine.low %v1406_v1, %v1406_v1  ;;  %v4764_v43 = vcombine.high %v1406_v1, %v1406_v1  ;;  %v2582_v8 = vsel %vm7635_vm5, %v2454_v49, %v2542_v21  ;;  %vm7640_vm8 = vmmov %vm7638_vm1  ;;  %v2435_v21 = vsel %vm7605_vm4, %v6804_v0, 0.0 }
 0x1c0   : > { %v4843_v9 = vcombine.low %v2582_v8, %v2582_v8  ;;  %v4844_v63 = vcombine.high %v2582_v8, %v2582_v8  ;;  %3925 = vmatmul.mubr.bf16.gmra.mxu1 %v5608_v53  ;;  %vm7641_vm15 = vmmov %vm7638_vm1  ;;  %v2457_v54 = vpack.c.bf16 %v6807_v24, %v2435_v21  ;;  %v3051_v53 = vld [vmem:[#allocation3 + $0x1f4] sm:$0xff]  ;;  %v2046_v21 = vld [vmem:[#allocation2 + $0x110] sm:$0xff] }
 0x1c1   : > { %1549 = vst [vmem:[#allocation3 + $0x258] sm:$0xf] %v4763_v56  ;;  %1550 = vst [vmem:[#allocation3 + $0x26c] sm:$0xf] %v4764_v43  ;;  %v2176_v37 = vpop.permute.xlu0 %2175  ;;  %v5606_v38 = vld [vmem:[#allocation3 + $0xfc] ss:$20 sps:$4 sm:$0xff]   ;;  %3932 = vmatprep.mubr.bf16.mxu1 %v5610_v6 }
 0x1c2   : > { %2733 = vst [vmem:[#allocation3 + $0x124] sm:$0xf] %v4843_v9  ;;  %2734 = vst [vmem:[#allocation3 + $0x138] sm:$0xf] %v4844_v63  ;;  %v2217_v5 = vsel %vm7636_vm14, %v2055_v58, %v2176_v37  ;;  %v1822_v20 = vpop.permute.xlu1 %1821  ;;  %4053 = vmatprep.mubr.bf16.mxu0 %v5606_v38  ;;  %v5616_v43 = vld [vmem:[#allocation3 + $0x1e4] ss:$20 sps:$4 sm:$0xff]   ;;  %v2058_v9 = vpack.c.bf16 %v2038_v34, %v2037_v33 }
 0x1c3   : > { %v4813_v48 = vcombine.low %v2217_v5, %v2217_v5  ;;  %v4814_v40 = vcombine.high %v2217_v5, %v2217_v5  ;;  %v1870_v4 = vsel %vm7637_vm9, %v1694_v35, %v1822_v20  ;;  %4054 = vmatmul.mubr.bf16.gmra.mxu0 %v5609_v15  ;;  %v2039_v63 = vld [vmem:[#allocation2 + $0xd8] sm:$0xff]  ;;  %vm7642_vm4 = vmmov %vm7638_vm1  ;;  %v2437_v37 = vsel %vm7609_vm13, %v6822_v18, 0.0  ;;  %v3048_v20 = vld [vmem:[#allocation3 + $0x1e0] sm:$0xff] }
 0x1c4   : > { %v4795_v44 = vcombine.low %v1870_v4, %v1870_v4  ;;  %v4796_v23 = vcombine.high %v1870_v4, %v1870_v4  ;;  %v5615_v1 = vld [vmem:[#allocation3 + $0x120] ss:$20 sps:$4 sm:$0xff]   ;;  %vm7643_vm3 = vmmov %vm7638_vm1  ;;  %v2059_v24 = vpack.c.bf16 %v2040_v32, %v2039_v63  ;;  %v2458_v6 = vpack.c.bf16 %v6825_v39, %v2437_v37 }
 0x1c5   : > { %2367 = vst [vmem:[#allocation3 + $0x148] sm:$0xf] %v4813_v48  ;;  %2368 = vst [vmem:[#allocation3 + $0x15c] sm:$0xf] %v4814_v40  ;;  %v2178_v41 = vpop.permute.xlu0 %2177  ;;  %v2041_v48 = vld [vmem:[#allocation2 + $0xe8] sm:$0xff]  ;;  %v2042_v40 = vld [vmem:[#allocation2 + $0xf0] sm:$0xff] }
 0x1c6   : > { %2013 = vst [vmem:[#allocation3 + $0x25c] sm:$0xf] %v4795_v44  ;;  %2014 = vst [vmem:[#allocation3 + $0x270] sm:$0xf] %v4796_v23  ;;  %v2220_v51 = vsel %vm7638_vm1, %v2056_v50, %v2178_v41  ;;  %v2544_v19 = vpop.permute.xlu1 %2543  ;;  %v4954_v23 = vcombine.low %v3048_v20, %v3051_v53  ;;  %v2060_v31 = vpack.c.bf16 %v2042_v40, %v2041_v48  ;;  %v5630_v63 = vld [vmem:[#allocation3 + $0x234] ss:$20 sps:$4 sm:$0xff]  }
 0x1c7   : > { %v4815_v55 = vcombine.low %v2220_v51, %v2220_v51  ;;  %v4816_v60 = vcombine.high %v2220_v51, %v2220_v51  ;;  %v2585_v62 = vsel %vm7639_vm7, %v2455_v36, %v2544_v19  ;;  %vm7644_vm13 = vmmov %vm7638_vm1  ;;  %v5622_v51 = vld [vmem:[#allocation3 + $0x20c] ss:$20 sps:$4 sm:$0xff]  }
 0x1c8   : > { %v4845_v59 = vcombine.low %v2585_v62, %v2585_v62  ;;  %v4846_v2 = vcombine.high %v2585_v62, %v2585_v62  ;;  %3933 = vmatmul.mubr.bf16.gmra.mxu1 %v5614_v28  ;;  %vm7645_vm11 = vmmov %vm7638_vm1 }
 0x1c9   : > { %2369 = vst [vmem:[#allocation3 + $0x170] sm:$0xf] %v4815_v55  ;;  %2370 = vst [vmem:[#allocation3 + $0x184] sm:$0xf] %v4816_v60  ;;  %v2180_v29 = vpop.permute.xlu0 %2179  ;;  %v5612_v49 = vld [vmem:[#allocation3 + $0x124] ss:$20 sps:$4 sm:$0xff]   ;;  %3940 = vmatprep.mubr.bf16.mxu1 %v5616_v43 }
 0x1ca   : > { %2735 = vst [vmem:[#allocation3 + $0x14c] sm:$0xf] %v4845_v59  ;;  %2736 = vst [vmem:[#allocation3 + $0x160] sm:$0xf] %v4846_v2  ;;  %v2223_v16 = vsel %vm7640_vm8, %v2057_v57, %v2180_v29  ;;  %v2546_v13 = vpop.permute.xlu1 %2545  ;;  %4061 = vmatprep.mubr.bf16.mxu0 %v5612_v49  ;;  %v2043_v55 = vld [vmem:[#allocation2 + $0xf8] sm:$0xff]  ;;  %v2044_v60 = vld [vmem:[#allocation2 + $0x100] sm:$0xff]  ;;  %v2459_v59 = vpack.c.bf16 %v6844_v10, %v2439_v3 }
 0x1cb   : > { %v4817_v11 = vcombine.low %v2223_v16, %v2223_v16  ;;  %v4818_v45 = vcombine.high %v2223_v16, %v2223_v16  ;;  %v2588_v56 = vsel %vm7641_vm15, %v2456_v7, %v2546_v13  ;;  %4062 = vmatmul.mubr.bf16.gmra.mxu0 %v5615_v1  ;;  %vm7646_vm10 = vmmov %vm7638_vm1  ;;  %v2441_v57 = vsel %vm7618_vm12, %v6859_v47, 0.0  ;;  %v2411_v7 = vld [vmem:[#allocation2 + $0x107] sm:$0xff] }
 0x1cc   : > { %v4847_v8 = vcombine.low %v2588_v56, %v2588_v56  ;;  %v4848_v61 = vcombine.high %v2588_v56, %v2588_v56  ;;  %v5620_v50 = vld [vmem:[#allocation3 + $0x148] ss:$20 sps:$4 sm:$0xff]   ;;  %vm7647_vm2 = vmmov %vm7638_vm1  ;;  %v2061_v10 = vpack.c.bf16 %v2044_v60, %v2043_v55  ;;  %v2460_v1 = vpack.c.bf16 %v6862_v25, %v2441_v57  ;;  %v5655_v60 = vld [vmem:[#allocation3 + $0xb0] ss:$20 sps:$4 sm:$0xff]  }
 0x1cd   : > { %2371 = vst [vmem:[#allocation3 + $0x198] sm:$0xf] %v4817_v11  ;;  %2372 = vst [vmem:[#allocation3 + $0x1ac] sm:$0xf] %v4818_v45  ;;  %v2182_v58 = vpop.permute.xlu0 %2181  ;;  %v2045_v13 = vld [vmem:[#allocation2 + $0x108] sm:$0xff]  ;;  %v2443_v56 = vsel %vm7625_vm0, %v2411_v7, 0.0 }
 0x1ce   : > { %2737 = vst [vmem:[#allocation3 + $0x174] sm:$0xf] %v4847_v8  ;;  %2738 = vst [vmem:[#allocation3 + $0x188] sm:$0xf] %v4848_v61  ;;  %v2226_v0 = vsel %vm7642_vm4, %v2058_v9, %v2182_v58  ;;  %v2548_v12 = vpop.permute.xlu1 %2547  ;;  %v5626_v11 = vld [vmem:[#allocation3 + $0x208] ss:$20 sps:$4 sm:$0xff]   ;;  %v2062_v32 = vpack.c.bf16 %v2046_v21, %v2045_v13 }
 0x1cf   : > { %v4819_v35 = vcombine.low %v2226_v0, %v2226_v0  ;;  %v4820_v38 = vcombine.high %v2226_v0, %v2226_v0  ;;  %v2591_v5 = vsel %vm7643_vm3, %v2457_v54, %v2548_v12  ;;  %vm7648_vm5 = vmmov %vm7638_vm1  ;;  %v2412_v45 = vld [vmem:[#allocation2 + $0x10f] sm:$0xff]  ;;  %v2413_v58 = vld [vmem:[#allocation2 + $0x117] sm:$0xff] }
 0x1d0   : > { %v4849_v15 = vcombine.low %v2591_v5, %v2591_v5  ;;  %v4850_v52 = vcombine.high %v2591_v5, %v2591_v5  ;;  %3941 = vmatmul.mubr.bf16.gmra.mxu1 %v4954_v23  ;;  %vm7649_vm12 = vmmov %vm7638_vm1  ;;  %v5627_v9 = vld [vmem:[#allocation3 + $0x170] ss:$20 sps:$4 sm:$0xff]   ;;  %v2461_v37 = vpack.c.bf16 %v2412_v45, %v2443_v56  ;;  %v2445_v5 = vsel %vm7630_vm6, %v2413_v58, 0.0  ;;  %v5662_v57 = vld [vmem:[#allocation3 + $0x128] ss:$20 sps:$4 sm:$0xff]  }
 0x1d1   : > { %2373 = vst [vmem:[#allocation3 + $0x1c0] sm:$0xf] %v4819_v35  ;;  %2374 = vst [vmem:[#allocation3 + $0x1d4] sm:$0xf] %v4820_v38  ;;  %v2184_v4 = vpop.permute.xlu0 %2183  ;;  %v5618_v44 = vld [vmem:[#allocation3 + $0x14c] ss:$20 sps:$4 sm:$0xff]   ;;  %3948 = vmatprep.mubr.bf16.mxu1 %v5622_v51 }
 0x1d2   : > { %2739 = vst [vmem:[#allocation3 + $0x19c] sm:$0xf] %v4849_v15  ;;  %2740 = vst [vmem:[#allocation3 + $0x1b0] sm:$0xf] %v4850_v52  ;;  %v2229_v26 = vsel %vm7644_vm13, %v2059_v24, %v2184_v4  ;;  %v2550_v18 = vpop.permute.xlu1 %2549  ;;  %4069 = vmatprep.mubr.bf16.mxu0 %v5618_v44  ;;  %v2414_v38 = vld [vmem:[#allocation2 + $0x11f] sm:$0xff] }
 0x1d3   : > { %v4821_v41 = vcombine.low %v2229_v26, %v2229_v26  ;;  %v4822_v36 = vcombine.high %v2229_v26, %v2229_v26  ;;  %v2594_v14 = vsel %vm7645_vm11, %v2458_v6, %v2550_v18  ;;  %4070 = vmatmul.mubr.bf16.gmra.mxu0 %v5620_v50  ;;  %vm7650_vm0 = vmmov %vm7638_vm1  ;;  %v2462_v48 = vpack.c.bf16 %v2414_v38, %v2445_v5  ;;  %v5632_v4 = vld [vmem:[#allocation3 + $0x230] ss:$20 sps:$4 sm:$0xff]   ;;  %v5639_v50 = vld [vmem:[#allocation3 + $0x258] ss:$20 sps:$4 sm:$0xff]  }
 0x1d4   : > { %v4851_v19 = vcombine.low %v2594_v14, %v2594_v14  ;;  %v4852_v39 = vcombine.high %v2594_v14, %v2594_v14  ;;  %vm7651_vm14 = vmmov %vm7650_vm0  ;;  %v5633_v44 = vld [vmem:[#allocation3 + $0x198] ss:$20 sps:$4 sm:$0xff]   ;;  %v5634_v26 = vld [vmem:[#allocation3 + $0x25c] ss:$20 sps:$4 sm:$0xff]  }
 0x1d5   : > { %2375 = vst [vmem:[#allocation3 + $0x1e8] sm:$0xf] %v4821_v41  ;;  %2376 = vst [vmem:[#allocation3 + $0x1fc] sm:$0xf] %v4822_v36  ;;  %v2186_v62 = vpop.permute.xlu0 %2185  ;;  %v5624_v17 = vld [vmem:[#allocation3 + $0x174] ss:$20 sps:$4 sm:$0xff]  }
 0x1d6   : > { %2741 = vst [vmem:[#allocation3 + $0x1c4] sm:$0xf] %v4851_v19  ;;  %2742 = vst [vmem:[#allocation3 + $0x1d8] sm:$0xf] %v4852_v39  ;;  %v2232_v42 = vsel %vm7646_vm10, %v2060_v31, %v2186_v62  ;;  %v2552_v2 = vpop.permute.xlu1 %2551  ;;  %4077 = vmatprep.mubr.bf16.mxu0 %v5624_v17  ;;  %v5644_v41 = vld [vmem:[#allocation3 + $0x10] ss:$20 sps:$4 sm:$0xff]  }
 0x1d7   : > { %v4823_v33 = vcombine.low %v2232_v42, %v2232_v42  ;;  %v4824_v34 = vcombine.high %v2232_v42, %v2232_v42  ;;  %v2597_v29 = vsel %vm7647_vm2, %v2459_v59, %v2552_v2  ;;  %vm7652_vm9 = vmmov %vm7650_vm0  ;;  %v5647_v14 = vld [vmem:[#allocation3 + $0x38] ss:$20 sps:$4 sm:$0xff]   ;;  %v5650_v19 = vld [vmem:[#allocation3 + $0x60] ss:$20 sps:$4 sm:$0xff]  }
 0x1d8   : > { %v4853_v49 = vcombine.low %v2597_v29, %v2597_v29  ;;  %v4854_v16 = vcombine.high %v2597_v29, %v2597_v29  ;;  %3949 = vmatmul.mubr.bf16.gmra.mxu1 %v5626_v11  ;;  %v5640_v3 = vld [vmem:[#allocation3 + $0x1c0] ss:$20 sps:$4 sm:$0xff]   ;;  %vm7653_vm6 = vmmov %vm7650_vm0  ;;  %v5652_v31 = vld [vmem:[#allocation3 + $0x88] ss:$20 sps:$4 sm:$0xff]  }
 0x1d9   : > { %2377 = vst [vmem:[#allocation3 + $0x210] sm:$0xf] %v4823_v33  ;;  %2378 = vst [vmem:[#allocation3 + $0x224] sm:$0xf] %v4824_v34  ;;  %v2188_v28 = vpop.permute.xlu0 %2187  ;;  %v5628_v0 = vld [vmem:[#allocation3 + $0x19c] ss:$20 sps:$4 sm:$0xff]   ;;  %3956 = vmatprep.mubr.bf16.mxu1 %v5630_v63 }
 0x1da   : > { %2743 = vst [vmem:[#allocation3 + $0x1ec] sm:$0xf] %v4853_v49  ;;  %2744 = vst [vmem:[#allocation3 + $0x200] sm:$0xf] %v4854_v16  ;;  %v2235_v30 = vsel %vm7648_vm5, %v2061_v10, %v2188_v28  ;;  %v2554_v47 = vpop.permute.xlu1 %2553  ;;  %v5657_v59 = vld [vmem:[#allocation3 + $0xd8] ss:$20 sps:$4 sm:$0xff]  }
 0x1db   : > { %v4825_v43 = vcombine.low %v2235_v30, %v2235_v30  ;;  %v4826_v8 = vcombine.high %v2235_v30, %v2235_v30  ;;  %v2600_v61 = vsel %vm7649_vm12, %v2460_v1, %v2554_v47  ;;  %4078 = vmatmul.mubr.bf16.gmra.mxu0 %v5627_v9  ;;  %vm7654_vm1 = vmmov %vm7650_vm0  ;;  %v5660_v42 = vld [vmem:[#allocation3 + $0x100] ss:$20 sps:$4 sm:$0xff]   ;;  %v5663_v34 = vld [vmem:[#allocation3 + $0x150] ss:$20 sps:$4 sm:$0xff]  }
 0x1dc   : > { %v4855_v54 = vcombine.low %v2600_v61, %v2600_v61  ;;  %v4856_v25 = vcombine.high %v2600_v61, %v2600_v61  ;;  %4085 = vmatprep.mubr.bf16.mxu0 %v5628_v0  ;;  %v5646_v51 = vld [vmem:[#allocation3 + $0x1e8] ss:$20 sps:$4 sm:$0xff]   ;;  %vm7655_vm7 = vmmov %vm7650_vm0  ;;  %v5664_v29 = vld [vmem:[#allocation3 + $0x178] ss:$20 sps:$4 sm:$0xff]  }
 0x1dd   : > { %2379 = vst [vmem:[#allocation3 + $0x238] sm:$0xf] %v4825_v43  ;;  %2380 = vst [vmem:[#allocation3 + $0x24c] sm:$0xf] %v4826_v8  ;;  %v2190_v12 = vpop.permute.xlu0 %2189  ;;  %v5636_v23 = vld [vmem:[#allocation3 + $0x1c4] ss:$20 sps:$4 sm:$0xff]  }
 0x1de   : > { %2745 = vst [vmem:[#allocation3 + $0x214] sm:$0xf] %v4855_v54  ;;  %2746 = vst [vmem:[#allocation3 + $0x228] sm:$0xf] %v4856_v25  ;;  %v2238_v22 = vsel %vm7650_vm0, %v2062_v32, %v2190_v12  ;;  %v2556_v35 = vpop.permute.xlu1 %2555  ;;  %v5665_v7 = vld [vmem:[#allocation3 + $0x1a0] ss:$20 sps:$4 sm:$0xff]  }
 0x1df   : > { %v4827_v20 = vcombine.low %v2238_v22, %v2238_v22  ;;  %v4828_v53 = vcombine.high %v2238_v22, %v2238_v22  ;;  %v2603_v15 = vsel %vm7651_vm14, %v2461_v37, %v2556_v35  ;;  %vm7656_vm8 = vmmov %vm7650_vm0  ;;  %v5666_v49 = vld [vmem:[#allocation3 + $0x1c8] ss:$20 sps:$4 sm:$0xff]   ;;  %v5667_v16 = vld [vmem:[#allocation3 + $0x1f0] ss:$20 sps:$4 sm:$0xff]  }
 0x1e0   : > { %v4857_v52 = vcombine.low %v2603_v15, %v2603_v15  ;;  %v4858_v24 = vcombine.high %v2603_v15, %v2603_v15  ;;  %3957 = vmatmul.mubr.bf16.gmra.mxu1 %v5632_v4  ;;  %v5651_v55 = vld [vmem:[#allocation3 + $0x210] ss:$20 sps:$4 sm:$0xff]   ;;  %vm7657_vm15 = vmmov %vm7650_vm0  ;;  %v5668_v10 = vld [vmem:[#allocation3 + $0x218] ss:$20 sps:$4 sm:$0xff]  }
 0x1e1   : > { %2381 = vst [vmem:[#allocation3 + $0x260] sm:$0xf] %v4827_v20  ;;  %2382 = vst [vmem:[#allocation3 + $0x274] sm:$0xf] %v4828_v53  ;;  %3964 = vmatprep.mubr.bf16.mxu1 %v5634_v26  ;;  %v5642_v36 = vld [vmem:[#allocation3 + $0x1ec] ss:$20 sps:$4 sm:$0xff]  }
 0x1e2   : > { %2747 = vst [vmem:[#allocation3 + $0x23c] sm:$0xf] %v4857_v52  ;;  %2748 = vst [vmem:[#allocation3 + $0x250] sm:$0xf] %v4858_v24  ;;  %v2558_v40 = vpop.permute.xlu1 %2557  ;;  %v5669_v13 = vld [vmem:[#allocation3 + $0x240] ss:$20 sps:$4 sm:$0xff]  }
 0x1e3   : > { %v2606_v6 = vsel %vm7652_vm9, %v2462_v48, %v2558_v40  ;;  %4086 = vmatmul.mubr.bf16.gmra.mxu0 %v5633_v44  ;;  %vm7658_vm4 = vmmov %vm7650_vm0  ;;  %v5670_v28 = vld [vmem:[#allocation3 + $0x268] ss:$20 sps:$4 sm:$0xff]   ;;  %v6954_v15 = vld [vmem:[%s7389_s3 + $0x1] ss:$0 sm:$0xff] }
 0x1e4   : > { %v4859_v18 = vcombine.low %v2606_v6, %v2606_v6  ;;  %v4860_v46 = vcombine.high %v2606_v6, %v2606_v6  ;;  %4093 = vmatprep.mubr.bf16.mxu0 %v5636_v23  ;;  %v5656_v17 = vld [vmem:[#allocation3 + $0x238] ss:$20 sps:$4 sm:$0xff]   ;;  %vm7659_vm3 = vmmov %vm7650_vm0 }
 0x1e5   : > { %v5648_v39 = vld [vmem:[#allocation3 + $0x214] ss:$20 sps:$4 sm:$0xff]   ;;  %vm7660_vm13 = vmmov %vm7650_vm0 }
 0x1e6   : > { %2749 = vst [vmem:[#allocation3 + $0x264] sm:$0xf] %v4859_v18  ;;  %2750 = vst [vmem:[#allocation3 + $0x278] sm:$0xf] %v4860_v46 }
 0x1e7   : > { %vm7661_vm11 = vmmov %vm7650_vm0 }
 0x1e8   : > { %3965 = vmatmul.mubr.bf16.gmra.mxu1 %v5639_v50  ;;  %v5661_v33 = vld [vmem:[#allocation3 + $0x260] ss:$20 sps:$4 sm:$0xff]   ;;  %vm7662_vm10 = vmmov %vm7650_vm0 }
 0x1e9   : > { %5403 = vmatprep.mubr.msk.bf16.mxu1 %vm7653_vm6, %v5644_v41  ;;  %v5653_v62 = vld [vmem:[#allocation3 + $0x23c] ss:$20 sps:$4 sm:$0xff]   ;;  %vm7663_vm2 = vmmov %vm7650_vm0 }
 0x1ea   : > { %vm7664_vm5 = vmmov %vm7650_vm0 }
 0x1eb   : > { %4094 = vmatmul.mubr.bf16.gmra.mxu0 %v5640_v3  ;;  %vm7665_vm12 = vmmov %vm7650_vm0 }
 0x1ec   : > { %4101 = vmatprep.mubr.bf16.mxu0 %v5642_v36  ;;  %vm7666_vm14 = vmmov %vm7650_vm0 }
 0x1ed   : > { %v5658_v2 = vld [vmem:[#allocation3 + $0x264] ss:$20 sps:$4 sm:$0xff]   ;;  %vm7667_vm9 = vmmov %vm7650_vm0 }
 0x1f0   : > { %5404 = vmatmul.mubr.msk.bf16.vlgmr.msra.gmra.mxu1 %vm7654_vm1, %v5647_v14  ;;  %vm7686_vm1 = vmmov %vm7650_vm0 }
 0x1f1   : > { %5407 = vmatprep.mubr.msk.bf16.mxu1 %vm7655_vm7, %v5650_v19  ;;  %vm7697_vm7 = vmmov %vm7650_vm0 }
 0x1f3   : > { %4102 = vmatmul.mubr.bf16.gmra.mxu0 %v5646_v51 }
 0x1f4   : > { %4109 = vmatprep.mubr.bf16.mxu0 %v5648_v39 }
 0x1f8   : > { %5408 = vmatmul.mubr.msk.bf16.gmra.mxu1 %vm7656_vm8, %v5652_v31  ;;  %vm7698_vm8 = vmmov %vm7650_vm0 }
 0x1f9   : > { %5411 = vmatprep.mubr.msk.bf16.mxu1 %vm7657_vm15, %v5655_v60  ;;  %vm7699_vm15 = vmmov %vm7650_vm0 }
 0x1fb   : > { %4110 = vmatmul.mubr.bf16.gmra.mxu0 %v5651_v55 }
 0x1fc   : > { %4117 = vmatprep.mubr.bf16.mxu0 %v5653_v62 }
 0x200   : > { %5412 = vmatmul.mubr.msk.bf16.gmra.mxu1 %vm7658_vm4, %v5657_v59  ;;  %vm7700_vm4 = vmmov %vm7650_vm0 }
 0x201   : > { %5415 = vmatprep.mubr.msk.bf16.mxu1 %vm7659_vm3, %v5660_v42  ;;  %vm7701_vm3 = vmmov %vm7650_vm0 }
 0x203   : > { %4118 = vmatmul.mubr.bf16.gmra.mxu0 %v5656_v17 }
 0x204   : > { %4125 = vmatprep.mubr.bf16.mxu0 %v5658_v2 }
 0x208   : > { %5416 = vmatmul.mubr.msk.bf16.gmra.mxu1 %vm7660_vm13, %v5662_v57  ;;  %vm7702_vm13 = vmmov %vm7650_vm0 }
 0x209   : > { %5419 = vmatprep.mubr.msk.bf16.mxu1 %vm7661_vm11, %v5663_v34  ;;  %vm7703_vm11 = vmmov %vm7650_vm0 }
 0x20b   : > { %4126 = vmatmul.mubr.bf16.gmra.mxu0 %v5661_v33 }
 0x210   : > { %5420 = vmatmul.mubr.msk.bf16.gmra.mxu1 %vm7662_vm10, %v5664_v29  ;;  %vm7704_vm10 = vmmov %vm7650_vm0 }
 0x211   : > { %5423 = vmatprep.mubr.msk.bf16.mxu1 %vm7663_vm2, %v5665_v7  ;;  %vm7705_vm2 = vmmov %vm7650_vm0 }
 0x218   : > { %5424 = vmatmul.mubr.msk.bf16.gmra.mxu1 %vm7664_vm5, %v5666_v49  ;;  %vm7706_vm5 = vmmov %vm7650_vm0 }
 0x219   : > { %5427 = vmatprep.mubr.msk.bf16.mxu1 %vm7665_vm12, %v5667_v16  ;;  %vm7707_vm12 = vmmov %vm7650_vm0 }
 0x220   : > { %5428 = vmatmul.mubr.msk.bf16.gmra.mxu1 %vm7650_vm0, %v5668_v10 }
 0x221   : > { %5431 = vmatprep.mubr.msk.bf16.mxu1 %vm7666_vm14, %v5669_v13  ;;  %vm7709_vm14 = vmmov %vm7650_vm0 }
 0x228   : > { %5432 = vmatmul.mubr.msk.bf16.gmra.mxu1 %vm7667_vm9, %v5670_v28  ;;  %vm7712_vm9 = vmmov %vm7650_vm0 }
 0x230   : > { %v5115_v1 = vpop.f32.mrf.mxu1 }
 0x232   : > { %v5116_v21 = vpop.f32.mrf.mxu1 }
 0x233   : > { %v5117_v30 = vadd.f32 %v5116_v21, %v5115_v1 }
 0x234   : > { %v5118_v47 = vpop.f32.mrf.mxu1 }
 0x235   : > { %v3847_v4 = vadd.f32 %v5117_v30, %v6954_v15 }
 0x236   : > { %v5119_v11 = vpop.f32.mrf.mxu1 }
 0x237   : > { %v5120_v45 = vadd.f32 %v5119_v11, %v5118_v47 }
 0x238   : > { %v5121_v56 = vpop.f32.mrf.mxu1 }
 0x239   : > { %v3850_v3 = vadd.f32 %v5120_v45, %v6954_v15 }
 0x23a   : > { %v5122_v43 = vpop.f32.mrf.mxu1 }
 0x23b   : > { %v6939_v8 = vadd.f32 %v5122_v43, %v5121_v56 }
 0x23c   : > { %v5124_v61 = vpop.f32.mrf.mxu1 }
 0x23e   : > { %v5125_v9 = vpop.f32.mrf.mxu1 }
 0x23f   : > { %v6941_v63 = vadd.f32 %v5125_v9, %v5124_v61 }
 0x240   : > { %v5127_v58 = vpop.f32.mrf.mxu1 }
 0x242   : > { %v5128_v54 = vpop.f32.mrf.mxu1 }
 0x243   : > { %v6943_v25 = vadd.f32 %v5128_v54, %v5127_v58 }
 0x244   : > { %v5130_v32 = vpop.f32.mrf.mxu1 }
 0x246   : > { %v5131_v0 = vpop.f32.mrf.mxu1 }
 0x247   : > { %v6945_v12 = vadd.f32 %v5131_v0, %v5130_v32 }
 0x248   : > { %v5133_v37 = vpop.f32.mrf.mxu1 }
 0x24a   : > { %v5134_v22 = vpop.f32.mrf.mxu1 }
 0x24b   : > { %v6947_v35 = vadd.f32 %v5134_v22, %v5133_v37 }
 0x24c   : > { %v5136_v38 = vpop.f32.mrf.mxu1 }
 0x24e   : > { %v5137_v5 = vpop.f32.mrf.mxu1 }
 0x24f   : > { %v6949_v20 = vadd.f32 %v5137_v5, %v5136_v38 }
 0x250   : > { %v5139_v53 = vpop.f32.mrf.mxu1 }
 0x252   : > { %v5140_v24 = vpop.f32.mrf.mxu1 }
 0x253   : > { %v5227_v52 = vpop.f32.mrf.mxu0  ;;  %v6956_v48 = vadd.f32 %v5140_v24, %v5139_v53 }
 0x254   : > { %v5142_v44 = vpop.f32.mrf.mxu1 }
 0x255   : > { %v5228_v40 = vpop.f32.mrf.mxu0 }
 0x256   : > { %v5229_v6 = vadd.f32 %v5228_v40, %v5227_v52  ;;  %v5143_v18 = vpop.f32.mrf.mxu1 }
 0x257   : > { %v5230_v26 = vpop.f32.mrf.mxu0  ;;  %v6961_v23 = vadd.f32 %v5143_v18, %v5142_v44 }
 0x258   : > { %v6959_v46 = vadd.f32 %v5229_v6, %v3847_v4  ;;  %v5145_v36 = vpop.f32.mrf.mxu1 }
 0x259   : > { %v5231_v50 = vpop.f32.mrf.mxu0 }
 0x25a   : > { %v5232_v41 = vadd.f32 %v5231_v50, %v5230_v26  ;;  %v5146_v51 = vpop.f32.mrf.mxu1 }
 0x25b   : > { %v6964_v14 = vpop.f32.mrf.mxu0  ;;  %v6968_v39 = vadd.f32 %v5146_v51, %v5145_v36 }
 0x25c   : > { %v6966_v19 = vadd.f32 %v5232_v41, %v3850_v3  ;;  %v5148_v55 = vpop.f32.mrf.mxu1 }
 0x25d   : > { %v6970_v31 = vpop.f32.mrf.mxu0 }
 0x25e   : > { %v5149_v62 = vpop.f32.mrf.mxu1 }
 0x25f   : > { %v6972_v60 = vpop.f32.mrf.mxu0  ;;  %v6974_v59 = vadd.f32 %v5149_v62, %v5148_v55 }
 0x260   : > { %v5151_v42 = vpop.f32.mrf.mxu1 }
 0x261   : > { %v6976_v17 = vpop.f32.mrf.mxu0 }
 0x262   : > { %v5152_v57 = vpop.f32.mrf.mxu1 }
 0x263   : > { %v6978_v2 = vpop.f32.mrf.mxu0  ;;  %v6980_v33 = vadd.f32 %v5152_v57, %v5151_v42 }
 0x264   : > { %v5154_v29 = vpop.f32.mrf.mxu1 }
 0x265   : > { %v6982_v34 = vpop.f32.mrf.mxu0 }
 0x266   : > { %v5155_v49 = vpop.f32.mrf.mxu1 }
 0x267   : > { %v6984_v7 = vpop.f32.mrf.mxu0  ;;  %v6986_v16 = vadd.f32 %v5155_v49, %v5154_v29 }
 0x268   : > { %v5157_v13 = vpop.f32.mrf.mxu1 }
 0x269   : > { %v6988_v10 = vpop.f32.mrf.mxu0 }
 0x26a   : > { %v5158_v1 = vpop.f32.mrf.mxu1 }
 0x26b   : > { %v6990_v28 = vpop.f32.mrf.mxu0  ;;  %v6992_v21 = vadd.f32 %v5158_v1, %v5157_v13 }
 0x26c   : > { %v5160_v47 = vpop.f32.mrf.mxu1 }
 0x26d   : > { %v6994_v30 = vpop.f32.mrf.mxu0 }
 0x26e   : > { %v5161_v45 = vpop.f32.mrf.mxu1 }
 0x26f   : > { %v6996_v11 = vpop.f32.mrf.mxu0  ;;  %v6998_v56 = vadd.f32 %v5161_v45, %v5160_v47 }
 0x270   : > { %v5163_v61 = vpop.f32.mrf.mxu1 }
 0x271   : > { %v7000_v43 = vpop.f32.mrf.mxu0 }
 0x272   : > { %v5164_v58 = vpop.f32.mrf.mxu1 }
 0x273   : > { %v7002_v9 = vpop.f32.mrf.mxu0  ;;  %v7004_v54 = vadd.f32 %v5164_v58, %v5163_v61 }
 0x274   : > { %v5166_v0 = vpop.f32.mrf.mxu1 }
 0x275   : > { %7668 = vst [vmem:[#allocation16_spill] sm:$0xff] %v7004_v54  ;;  %v7006_v32 = vpop.f32.mrf.mxu0 }
 0x276   : > { %v5167_v22 = vpop.f32.mrf.mxu1 }
 0x277   : > { %v7008_v37 = vpop.f32.mrf.mxu0  ;;  %v7010_v38 = vadd.f32 %v5167_v22, %v5166_v0 }
 0x278   : > { %v5169_v53 = vpop.f32.mrf.mxu1 }
 0x279   : > { %7669 = vst [vmem:[#allocation18_spill] sm:$0xff] %v7010_v38  ;;  %v7012_v5 = vpop.f32.mrf.mxu0 }
 0x27a   : > { %v5170_v24 = vpop.f32.mrf.mxu1 }
 0x27b   : > { %v7014_v52 = vpop.f32.mrf.mxu0  ;;  %v7016_v40 = vadd.f32 %v5170_v24, %v5169_v53 }
 0x27c   : > { %v5172_v6 = vpop.f32.mrf.mxu1 }
 0x27d   : > { %v7018_v4 = vpop.f32.mrf.mxu0 }
 0x27e   : > { %v5173_v26 = vpop.f32.mrf.mxu1 }
 0x27f   : > { %v7020_v44 = vpop.f32.mrf.mxu0  ;;  %v7022_v18 = vadd.f32 %v5173_v26, %v5172_v6 }
 0x280   : > { %v5175_v3 = vpop.f32.mrf.mxu1 }
 0x281   : > { %7670 = vst [vmem:[#allocation17_spill] sm:$0xff] %v7022_v18  ;;  %v7024_v50 = vpop.f32.mrf.mxu0 }
 0x282   : > { %v5176_v36 = vpop.f32.mrf.mxu1 }
 0x283   : > { %v7026_v41 = vpop.f32.mrf.mxu0  ;;  %v7028_v51 = vadd.f32 %v5176_v36, %v5175_v3 }
 0x284   : > { %v5178_v62 = vpop.f32.mrf.mxu1 }
 0x285   : > { %7671 = vst [vmem:[#allocation19_spill] sm:$0xff] %v7028_v51  ;;  %v7030_v55 = vpop.f32.mrf.mxu0 }
 0x286   : > { %v5179_v57 = vpop.f32.mrf.mxu1 }
 0x287   : > { %v7032_v42 = vpop.f32.mrf.mxu0  ;;  %v7034_v29 = vadd.f32 %v5179_v57, %v5178_v62 }
 0x288   : > { %v5181_v13 = vpop.f32.mrf.mxu1 }
 0x289   : > { %7672 = vst [vmem:[#allocation20_spill] sm:$0xff] %v7034_v29  ;;  %v7036_v49 = vpop.f32.mrf.mxu0 }
 0x28a   : > { %v5182_v47 = vpop.f32.mrf.mxu1 }
 0x28b   : > { %v7038_v1 = vpop.f32.mrf.mxu0  ;;  %v7040_v45 = vadd.f32 %v5182_v47, %v5181_v13 }
 0x28c   : > { %v5184_v58 = vpop.f32.mrf.mxu1 }
 0x28d   : > { %7673 = vst [vmem:[#allocation21_spill] sm:$0xff] %v7040_v45  ;;  %v7042_v61 = vpop.f32.mrf.mxu0 }
 0x28e   : > { %v5185_v22 = vpop.f32.mrf.mxu1 }
 0x28f   : > { %v7044_v0 = vpop.f32.mrf.mxu0  ;;  %v7046_v53 = vadd.f32 %v5185_v22, %v5184_v58 }
 0x290   : > { %v5187_v6 = vpop.f32.mrf.mxu1 }
 0x291   : > { %7674 = vst [vmem:[#allocation8_spill] sm:$0xff] %v7046_v53  ;;  %v7048_v24 = vpop.f32.mrf.mxu0 }
 0x292   : > { %v5188_v3 = vpop.f32.mrf.mxu1 }
 0x293   : > { %v7050_v26 = vpop.f32.mrf.mxu0  ;;  %v7052_v36 = vadd.f32 %v5188_v3, %v5187_v6  ;;  %v7681_v3 = vlaneseq }
 0x294   : > { %v5190_v57 = vpop.f32.mrf.mxu1 }
 0x295   : > { %7675 = vst [vmem:[#allocation22_spill] sm:$0xff] %v7052_v36  ;;  %v7054_v62 = vpop.f32.mrf.mxu0  ;;  %v7069_v36 = vand.u32 127, %v7681_v3 }
 0x296   : > { %7676 = vst [vmem:[#allocation23_spill] sm:$0xff] %v7054_v62  ;;  %v5191_v47 = vpop.f32.mrf.mxu1 }
 0x297   : > { %v7056_v13 = vpop.f32.mrf.mxu0  ;;  %v7058_v29 = vadd.f32 %v5191_v47, %v5190_v57  ;;  %7682 = vst [vmem:[#allocation28_spill] sm:$0xff] %v7069_v36  ;;  %vm680_vm6 = vcmp.eq.s32.totalorder %v5882_v27, %v7069_v36 }
 0x298   : > { %7677 = vst [vmem:[#allocation24_spill] sm:$0xff] %v7056_v13  ;;  %v5193_v58 = vpop.f32.mrf.mxu1 }
 0x299   : > { %7678 = vst [vmem:[#allocation25_spill] sm:$0xff] %v7058_v29  ;;  %v7060_v51 = vpop.f32.mrf.mxu0  ;;  %v7685_v29 = vmov 0.0  }
 0x29a   : > { %7679 = vst [vmem:[#allocation26_spill] sm:$0xff] %v7060_v51  ;;  %v5194_v53 = vpop.f32.mrf.mxu1  ;;  %v4690_v51 = vsel %vm680_vm6, 1.0, %v7685_v29  ;;  %vm7716_vm6 = vmmov %vm7650_vm0 }
 0x29b   : > { %v7062_v22 = vpop.f32.mrf.mxu0  ;;  %v7064_v45 = vadd.f32 %v5194_v53, %v5193_v58  ;;  %5451 = vmatprep.mubr.msk.f32.mxu0 %vm7686_vm1, %v4690_v51  ;;  %vm7718_vm1 = vmmov %vm7650_vm0 }
 0x29c   : > { %v5196_v6 = vpop.f32.mrf.mxu1 }
 0x29d   : > { %7680 = vst [vmem:[#allocation27_spill] sm:$0xff] %v7064_v45  ;;  %v7066_v38 = vpop.f32.mrf.mxu0 }
 0x29e   : > { %v5197_v13 = vpop.f32.mrf.mxu1 }
 0x29f   : > { %v7071_v18 = vpop.f32.mrf.mxu0  ;;  %v7075_v57 = vadd.f32 %v5197_v13, %v5196_v6 }
 0x2a0   : > { %7683 = vst [vmem:[#allocation29_spill] sm:$0xff] %v7071_v18  ;;  %v5199_v53 = vpop.f32.mrf.mxu1 }
 0x2a1   : > { %7684 = vst [vmem:[#allocation30_spill] sm:$0xff] %v7075_v57  ;;  %v7077_v47 = vpop.f32.mrf.mxu0  ;;  %v3855_v57 = vadd.f32 %v6939_v8, %v6954_v15  ;;  %v5247_v8 = vadd.f32 %v6994_v30, %v6990_v28  ;;  %v3863_v28 = vadd.f32 %v6943_v25, %v6954_v15 }
 0x2a2   : > { %v5200_v45 = vpop.f32.mrf.mxu1 }
 0x2a3   : > { %v7081_v58 = vpop.f32.mrf.mxu0  ;;  %v7083_v3 = vadd.f32 %v5200_v45, %v5199_v53  ;;  %v5235_v45 = vadd.f32 %v6970_v31, %v6964_v14  ;;  %v3858_v14 = vadd.f32 %v6941_v63, %v6954_v15  ;;  %v5241_v63 = vadd.f32 %v6982_v34, %v6978_v2 }
 0x2a4   : > { %v5202_v18 = vpop.f32.mrf.mxu1 }
 0x2a5   : > { %7687 = vst [vmem:[#allocation31_spill] sm:$0xff] %v7083_v3  ;;  %v7085_v54 = vpop.f32.mrf.mxu0 }
 0x2a6   : > { %7688 = vst [vmem:[#allocation32_spill] sm:$0xff] %v7085_v54  ;;  %v5203_v27 = vpop.f32.mrf.mxu1 }
 0x2a7   : > { %v7087_v62 = vpop.f32.mrf.mxu0  ;;  %v7089_v13 = vadd.f32 %v5203_v27, %v5202_v18 }
 0x2a8   : > { %7689 = vst [vmem:[#allocation33_spill] sm:$0xff] %v7087_v62  ;;  %v7093_v36 = vpop.f32.mrf.mxu1 }
 0x2a9   : > { %7690 = vst [vmem:[#allocation34_spill] sm:$0xff] %v7089_v13  ;;  %v7091_v6 = vpop.f32.mrf.mxu0  ;;  %7692 = vst [vmem:[#allocation36_spill] sm:$0xff] %v7093_v36  ;;  %v5238_v13 = vadd.f32 %v6976_v17, %v6972_v60 }
 0x2aa   : > { %7691 = vst [vmem:[#allocation35_spill] sm:$0xff] %v7091_v6  ;;  %v7097_v51 = vpop.f32.mrf.mxu1 }
 0x2ab   : > { %v7095_v29 = vpop.f32.mrf.mxu0  ;;  %7693 = vst [vmem:[#allocation37_spill] sm:$0xff] %v7097_v51  ;;  %v4016_v51 = vadd.f32 %v5235_v45, %v3855_v57  ;;  %v4019_v60 = vadd.f32 %v5238_v13, %v3858_v14  ;;  %v3871_v57 = vadd.f32 %v6947_v35, %v6954_v15  ;;  %v3866_v14 = vadd.f32 %v6945_v12, %v6954_v15 }
 0x2ac   : > { %v7103_v3 = vpop.f32.mrf.mxu1 }
 0x2ad   : > { %v7101_v53 = vpop.f32.mrf.mxu0  ;;  %7694 = vst [vmem:[#allocation38_spill] sm:$0xff] %v7103_v3  ;;  %v4032_v34 = vadd.f32 %v5247_v8, %v3871_v57 }
 0x2ae   : > { %v7109_v27 = vpop.f32.mrf.mxu1 }
 0x2af   : > { %v7107_v18 = vpop.f32.mrf.mxu0  ;;  %7696 = vst [vmem:[#allocation40_spill] sm:$0xff] %v7109_v27 }
 0x2b0   : > { %7695 = vst [vmem:[#allocation39_spill] sm:$0xff] %v7107_v18  ;;  %v5405_v6 = vpop.f32.mrf.mxu1 }
 0x2b1   : > { %v7113_v36 = vpop.f32.mrf.mxu0  ;;  %v4177_v3 = vadd.f32 %v5405_v6, %v4016_v51 }
 0x2b2   : > { %v4168_v62 = vpop.f32.mrf.mxu1 }
 0x2b3   : > { %v7117_v31 = vpop.f32.mrf.mxu0  ;;  %v4297_v18 = vmax.f32 %v4177_v3, 0.0  ;;  %v4169_v27 = vadd.f32 %v4168_v62, %v6959_v46  ;;  %v5250_v46 = vadd.f32 %v7000_v43, %v6996_v11  ;;  %v3874_v3 = vadd.f32 %v6949_v20, %v6954_v15 }
 0x2b4   : > { %v5406_v17 = vpop.f32.mrf.mxu1  ;;  %v4024_v43 = vadd.f32 %v5241_v63, %v3863_v28  ;;  %v5253_v63 = vadd.f32 %v7006_v32, %v7002_v9  ;;  %v5262_v28 = vadd.f32 %v7024_v50, %v7020_v44  ;;  %v3890_v9 = vadd.f32 %v6974_v59, %v6954_v15 }
 0x2b5   : > { %v7121_v54 = vpop.f32.mrf.mxu0  ;;  %4329 = vst.msk [vmem:[#allocation4 + $0x10] sm:$0xff] %vm7697_vm7, %v4297_v18  ;;  %v4295_v6 = vmax.f32 %v4169_v27, 0.0  ;;  %v4180_v45 = vadd.f32 %v5406_v17, %v4019_v60  ;;  %v5244_v18 = vadd.f32 %v6988_v10, %v6984_v7  ;;  %v4035_v17 = vadd.f32 %v5250_v46, %v3874_v3  ;;  %vm7721_vm7 = vmmov %vm7650_vm0 }
 0x2b6   : > { %v4171_v30 = vpop.f32.mrf.mxu1  ;;  %v3887_v7 = vadd.f32 %v6968_v39, %v6954_v15  ;;  %v3882_v44 = vadd.f32 %v6961_v23, %v6954_v15 }
 0x2b7   : > { %v7129_v51 = vpop.f32.mrf.mxu0  ;;  %4327 = vst.msk [vmem:[#allocation4] sm:$0xff] %vm7698_vm8, %v4295_v6  ;;  %v4298_v62 = vmax.f32 %v4180_v45, 0.0  ;;  %v4172_v2 = vadd.f32 %v4171_v30, %v6966_v19  ;;  %v5259_v19 = vadd.f32 %v7018_v4, %v7014_v52  ;;  %v4027_v45 = vadd.f32 %v5244_v18, %v3866_v14  ;;  %vm7724_vm8 = vmmov %vm7650_vm0 }
 0x2b8   : > { %v5409_v13 = vpop.f32.mrf.mxu1  ;;  %v3879_v52 = vadd.f32 %v6956_v48, %v6954_v15 }
 0x2b9   : > { %v7136_v35 = vpop.f32.mrf.mxu0  ;;  %4330 = vst.msk [vmem:[#allocation4 + $0x18] sm:$0xff] %vm7699_vm15, %v4298_v62  ;;  %v4296_v25 = vmax.f32 %v4172_v2, 0.0  ;;  %v4193_v11 = vadd.f32 %v5409_v13, %v4032_v34  ;;  %v4048_v46 = vadd.f32 %v5259_v19, %v3887_v7  ;;  %v5256_v2 = vadd.f32 %v7012_v5, %v7008_v37  ;;  %vm7728_vm15 = vmmov %vm7650_vm0 }
 0x2ba   : > { %v4184_v60 = vpop.f32.mrf.mxu1  ;;  %v4040_v3 = vadd.f32 %v5253_v63, %v3879_v52  ;;  %v5271_v13 = vadd.f32 %v7042_v61, %v7038_v1  ;;  %v3903_v37 = vadd.f32 %v6992_v21, %v6954_v15  ;;  %v3895_v1 = vadd.f32 %v6980_v33, %v6954_v15 }
 0x2bb   : > { %v7144_v27 = vpop.f32.mrf.mxu0  ;;  %4328 = vst.msk [vmem:[#allocation4 + $0x8] sm:$0xff] %vm7700_vm4, %v4296_v25  ;;  %v4301_v20 = vmax.f32 %v4193_v11, 0.0  ;;  %v4185_v8 = vadd.f32 %v4184_v60, %v4024_v43  ;;  %v4051_v25 = vadd.f32 %v5262_v28, %v3890_v9  ;;  %v5265_v43 = vadd.f32 %v7030_v55, %v7026_v41  ;;  %v7711_v9 = vld [vmem:[#allocation29_spill] sm:$0xff]  ;;  %vm7730_vm4 = vmmov %vm7650_vm0 }
 0x2bc   : > { %v5410_v57 = vpop.f32.mrf.mxu1  ;;  %v4043_v60 = vadd.f32 %v5256_v2, %v3882_v44  ;;  %v5274_v19 = vadd.f32 %v7048_v24, %v7044_v0  ;;  %v3906_v41 = vadd.f32 %v6998_v56, %v6954_v15  ;;  %v5268_v7 = vadd.f32 %v7036_v49, %v7032_v42 }
 0x2bd   : > { %v7153_v10 = vpop.f32.mrf.mxu0  ;;  %4333 = vst.msk [vmem:[#allocation4 + $0x30] sm:$0xff] %vm7701_vm3, %v4301_v20  ;;  %v4299_v12 = vmax.f32 %v4185_v8, 0.0  ;;  %v4196_v6 = vadd.f32 %v5410_v57, %v4035_v17  ;;  %v4064_v8 = vadd.f32 %v5271_v13, %v3903_v37  ;;  %v4056_v63 = vadd.f32 %v5265_v43, %v3895_v1  ;;  %v7715_v13 = vld [vmem:[#allocation26_spill] sm:$0xff]  ;;  %vm7732_vm3 = vmmov %vm7650_vm0 }
 0x2be   : > { %v4187_v4 = vpop.f32.mrf.mxu1  ;;  %v3898_v0 = vadd.f32 %v6986_v16, %v6954_v15  ;;  %v3919_v42 = vadd.f32 %v7016_v40, %v6954_v15 }
 0x2bf   : > { %4331 = vst.msk [vmem:[#allocation4 + $0x20] sm:$0xff] %vm7702_vm13, %v4299_v12  ;;  %v4302_v39 = vmax.f32 %v4196_v6, 0.0  ;;  %v4188_v30 = vadd.f32 %v4187_v4, %v4027_v45  ;;  %v7165_v32 = vpop.f32.mrf.mxu0  ;;  %v5283_v12 = vadd.f32 %v7066_v38, %v7062_v22  ;;  %v4067_v45 = vadd.f32 %v5274_v19, %v3906_v41  ;;  %v7708_v4 = vld [vmem:[#allocation23_spill] sm:$0xff]  ;;  %v7710_v38 = vld [vmem:[#allocation16_spill] sm:$0xff]  ;;  %vm7734_vm13 = vmmov %vm7650_vm0 }
 0x2c0   : > { %v5413_v62 = vpop.f32.mrf.mxu1  ;;  %v5277_v28 = vadd.f32 %v7708_v4, %v7050_v26  ;;  %v3911_v22 = vadd.f32 %v7710_v38, %v6954_v15  ;;  %v7727_v4 = vld [vmem:[#allocation35_spill] sm:$0xff] }
 0x2c1   : > { %4334 = vst.msk [vmem:[#allocation4 + $0x38] sm:$0xff] %vm7703_vm11, %v4302_v39  ;;  %v4300_v48 = vmax.f32 %v4188_v30, 0.0  ;;  %v4209_v34 = vadd.f32 %v5413_v62, %v4048_v46  ;;  %v7177_v5 = vpop.f32.mrf.mxu0  ;;  %v4059_v30 = vadd.f32 %v5268_v7, %v3898_v0  ;;  %v5286_v62 = vadd.f32 %v7077_v47, %v7711_v9  ;;  %v7717_v47 = vld [vmem:[#allocation18_spill] sm:$0xff]  ;;  %vm7738_vm11 = vmmov %vm7650_vm0 }
 0x2c2   : > { %v4200_v50 = vpop.f32.mrf.mxu1  ;;  %v4072_v37 = vadd.f32 %v5277_v28, %v3911_v22 }
 0x2c3   : > { %4332 = vst.msk [vmem:[#allocation4 + $0x28] sm:$0xff] %vm7704_vm10, %v4300_v48  ;;  %v4305_v59 = vmax.f32 %v4209_v34, 0.0  ;;  %v4201_v18 = vadd.f32 %v4200_v50, %v4040_v3  ;;  %v7189_v55 = vpop.f32.mrf.mxu0  ;;  %v4080_v48 = vadd.f32 %v5283_v12, %v3919_v42  ;;  %v7713_v34 = vld [vmem:[#allocation17_spill] sm:$0xff]  ;;  %v7714_v50 = vld [vmem:[#allocation24_spill] sm:$0xff]  ;;  %vm7740_vm10 = vmmov %vm7650_vm0 }
 0x2c4   : > { %v5414_v11 = vpop.f32.mrf.mxu1  ;;  %v3922_v26 = vadd.f32 %v7713_v34, %v6954_v15 }
 0x2c5   : > { %4337 = vst.msk [vmem:[#allocation4 + $0x50] sm:$0xff] %vm7705_vm2, %v4305_v59  ;;  %v4303_v23 = vmax.f32 %v4201_v18, 0.0  ;;  %v4212_v14 = vadd.f32 %v5414_v11, %v4051_v25  ;;  %v7201_v49 = vpop.f32.mrf.mxu0  ;;  %v5280_v59 = vadd.f32 %v7715_v13, %v7714_v50  ;;  %v3914_v11 = vadd.f32 %v7717_v47, %v6954_v15  ;;  %vm7743_vm2 = vmmov %vm7650_vm0 }
 0x2c6   : > { %v4203_v61 = vpop.f32.mrf.mxu1  ;;  %v4083_v1 = vadd.f32 %v5286_v62, %v3922_v26 }
 0x2c7   : > { %4335 = vst.msk [vmem:[#allocation4 + $0x40] sm:$0xff] %vm7706_vm5, %v4303_v23  ;;  %v4306_v21 = vmax.f32 %v4212_v14, 0.0  ;;  %v4204_v20 = vadd.f32 %v4203_v61, %v4043_v60  ;;  %v7213_v3 = vpop.f32.mrf.mxu0  ;;  %v5295_v23 = vadd.f32 %v7101_v53, %v7095_v29  ;;  %v7719_v61 = vld [vmem:[#allocation21_spill] sm:$0xff]  ;;  %v7722_v29 = vld [vmem:[#allocation19_spill] sm:$0xff]  ;;  %vm7745_vm5 = vmmov %vm7650_vm0 }
 0x2c8   : > { %v5417_v17 = vpop.f32.mrf.mxu1  ;;  %v3935_v19 = vadd.f32 %v7719_v61, %v6954_v15  ;;  %v3927_v53 = vadd.f32 %v7722_v29, %v6954_v15  ;;  %v5304_v61 = vadd.f32 %v7136_v35, %v7129_v51 }
 0x2c9   : > { %4338 = vst.msk [vmem:[#allocation4 + $0x58] sm:$0xff] %vm7707_vm12, %v4306_v21  ;;  %v4304_v33 = vmax.f32 %v4204_v20, 0.0  ;;  %v4225_v57 = vadd.f32 %v5417_v17, %v4064_v8  ;;  %v7225_v21 = vpop.f32.mrf.mxu0  ;;  %v7720_v8 = vld [vmem:[#allocation32_spill] sm:$0xff]  ;;  %vm7746_vm12 = vmmov %vm7650_vm0 }
 0x2ca   : > { %v4216_v24 = vpop.f32.mrf.mxu1  ;;  %v5289_v41 = vadd.f32 %v7720_v8, %v7081_v58 }
 0x2cb   : > { %4336 = vst.msk [vmem:[#allocation4 + $0x48] sm:$0xff] %vm7650_vm0, %v4304_v33  ;;  %v4309_v56 = vmax.f32 %v4225_v57, 0.0  ;;  %v4217_v6 = vadd.f32 %v4216_v24, %v4056_v63  ;;  %v4075_v33 = vadd.f32 %v5280_v59, %v3914_v11  ;;  %v7723_v63 = vld [vmem:[#allocation39_spill] sm:$0xff] }
 0x2cc   : > { %v5418_v52 = vpop.f32.mrf.mxu1  ;;  %v5298_v0 = vadd.f32 %v7113_v36, %v7723_v63  ;;  %v7729_v36 = vld [vmem:[#allocation20_spill] sm:$0xff] }
 0x2cd   : > { %4341 = vst.msk [vmem:[#allocation4 + $0x70] sm:$0xff] %vm7709_vm14, %v4309_v56  ;;  %v4307_v16 = vmax.f32 %v4217_v6, 0.0  ;;  %v4228_v39 = vadd.f32 %v5418_v52, %v4067_v45  ;;  %v4096_v56 = vadd.f32 %v5295_v23, %v3935_v19  ;;  %v7725_v6 = vld [vmem:[#allocation8_spill] sm:$0xff]  ;;  %v5317_v45 = vpop.f32.mrf.mxu0  ;;  %v7726_v52 = vld [vmem:[#allocation33_spill] sm:$0xff]  ;;  %v3930_v38 = vadd.f32 %v7729_v36, %v6954_v15  ;;  %vm7748_vm14 = vmmov %vm7650_vm0 }
 0x2ce   : > { %v4219_v46 = vpop.f32.mrf.mxu1  ;;  %v3938_v58 = vadd.f32 %v7725_v6, %v6954_v15  ;;  %v5292_v28 = vadd.f32 %v7727_v4, %v7726_v52  ;;  %v7737_v23 = vld [vmem:[#allocation37_spill] sm:$0xff]  ;;  %v7742_v63 = vld [vmem:[#allocation40_spill] sm:$0xff] }
 0x2cf   : > { %4339 = vst.msk [vmem:[#allocation4 + $0x60] sm:$0xff] %vm7712_vm9, %v4307_v16  ;;  %v4310_v40 = vmax.f32 %v4228_v39, 0.0  ;;  %v4220_v2 = vadd.f32 %v4219_v46, %v4059_v30  ;;  %v4088_v30 = vadd.f32 %v5289_v41, %v3927_v53  ;;  %v5307_v46 = vadd.f32 %v7153_v10, %v7144_v27  ;;  %v5318_v34 = vpop.f32.mrf.mxu0  ;;  %v7733_v27 = vld [vmem:[#allocation22_spill] sm:$0xff]  ;;  %vm7749_vm9 = vmmov %vm7650_vm0 }
 0x2d0   : > { %v5421_v44 = vpop.f32.mrf.mxu1  ;;  %v4091_v59 = vadd.f32 %v5292_v28, %v3930_v38  ;;  %v3943_v10 = vadd.f32 %v7733_v27, %v6954_v15 }
 0x2d1   : > { %4342 = vst.msk [vmem:[#allocation4 + $0x78] sm:$0xff] %vm7716_vm6, %v4310_v40  ;;  %v4308_v18 = vmax.f32 %v4220_v2, 0.0  ;;  %v4241_v25 = vadd.f32 %v5421_v44, %v4080_v48  ;;  %v4099_v40 = vadd.f32 %v5298_v0, %v3938_v58  ;;  %v7731_v2 = vld [vmem:[#allocation27_spill] sm:$0xff]  ;;  %v5301_v44 = vadd.f32 %v7121_v54, %v7117_v31  ;;  %v7736_v31 = vld [vmem:[#allocation36_spill] sm:$0xff]  ;;  %vm7750_vm6 = vmmov %vm7650_vm0 }
 0x2d2   : > { %v4232_v43 = vpop.f32.mrf.mxu1  ;;  %v3951_v48 = vadd.f32 %v7731_v2, %v6954_v15  ;;  %v7744_v58 = vld [vmem:[#allocation31_spill] sm:$0xff] }
 0x2d3   : > { %4340 = vst.msk [vmem:[#allocation4 + $0x68] sm:$0xff] %vm7718_vm1, %v4308_v18  ;;  %v4313_v14 = vmax.f32 %v4241_v25, 0.0  ;;  %v4233_v60 = vadd.f32 %v4232_v43, %v4072_v37  ;;  %v5310_v25 = vadd.f32 %v7177_v5, %v7165_v32  ;;  %v7735_v43 = vld [vmem:[#allocation30_spill] sm:$0xff]  ;;  %v4104_v5 = vadd.f32 %v5301_v44, %v3943_v10  ;;  %vm7751_vm1 = vmmov %vm7650_vm0 }
 0x2d4   : > { %v5422_v20 = vpop.f32.mrf.mxu1  ;;  %v4112_v11 = vadd.f32 %v5307_v46, %v3951_v48  ;;  %v3954_v54 = vadd.f32 %v7735_v43, %v6954_v15  ;;  %v7747_v46 = vld [vmem:[#allocation34_spill] sm:$0xff] }
 0x2d5   : > { %4345 = vst.msk [vmem:[#allocation4 + $0x90] sm:$0xff] %vm7721_vm7, %v4313_v14  ;;  %v4311_v17 = vmax.f32 %v4233_v60, 0.0  ;;  %v4244_v7 = vadd.f32 %v5422_v20, %v4083_v1  ;;  %v5207_v14 = vadd.f32 %v7737_v23, %v7736_v31  ;;  %v5320_v60 = vpop.f32.mrf.mxu0  ;;  %v7739_v20 = vld [vmem:[#allocation25_spill] sm:$0xff]  ;;  %vm7752_vm7 = vmmov %vm7650_vm0 }
 0x2d6   : > { %v4235_v57 = vpop.f32.mrf.mxu1  ;;  %v3946_v8 = vadd.f32 %v7739_v20, %v6954_v15  ;;  %v4115_v29 = vadd.f32 %v5310_v25, %v3954_v54 }
 0x2d7   : > { %4343 = vst.msk [vmem:[#allocation4 + $0x80] sm:$0xff] %vm7724_vm8, %v4311_v17  ;;  %v4314_v24 = vmax.f32 %v4244_v7, 0.0  ;;  %v4236_v12 = vadd.f32 %v4235_v57, %v4075_v33  ;;  %v5319_v17 = vadd.f32 %v5318_v34, %v5317_v45  ;;  %v3967_v53 = vadd.f32 %v5207_v14, %v6954_v15  ;;  %v7741_v57 = vld [vmem:[#allocation38_spill] sm:$0xff]  ;;  %v5321_v35 = vpop.f32.mrf.mxu0  ;;  %vm7753_vm8 = vmmov %vm7650_vm0 }
 0x2d8   : > { %v5425_v42 = vpop.f32.mrf.mxu1  ;;  %v5210_v51 = vadd.f32 %v7742_v63, %v7741_v57  ;;  %v4107_v6 = vadd.f32 %v5304_v61, %v3946_v8  ;;  %v3959_v45 = vadd.f32 %v7744_v58, %v6954_v15  ;;  %v5322_v52 = vadd.f32 %v5321_v35, %v5320_v60  ;;  %v4373_v63 = vld [vmem:[#allocation4 + $0x70] ss:$2 sm:$0xff]  ;;  %v4401_v58 = vld [vmem:[#allocation4 + $0x51] ss:$2 sm:$0xff] }
 0x2d9   : > { %4346 = vst.msk [vmem:[#allocation4 + $0x98] sm:$0xff] %vm7728_vm15, %v4314_v24  ;;  %v4312_v16 = vmax.f32 %v4236_v12, 0.0  ;;  %v4257_v39 = vadd.f32 %v5425_v42, %v4096_v56  ;;  %v5313_v24 = vadd.f32 %v7201_v49, %v7189_v55  ;;  %v5316_v55 = vadd.f32 %v7225_v21, %v7213_v3  ;;  %vm7754_vm15 = vmmov %vm7650_vm0 }
 0x2da   : > { %v4248_v22 = vpop.f32.mrf.mxu1 }
 0x2db   : > { %4344 = vst.msk [vmem:[#allocation4 + $0x88] sm:$0xff] %vm7730_vm4, %v4312_v16  ;;  %v4317_v9 = vmax.f32 %v4257_v39, 0.0  ;;  %v4249_v62 = vadd.f32 %v4248_v22, %v4088_v30  ;;  %v4128_v16 = vadd.f32 %v5319_v17, %v3967_v53  ;;  %v3970_v39 = vadd.f32 %v5210_v51, %v6954_v15  ;;  %vm7755_vm4 = vmmov %vm7650_vm0  ;;  %v4403_v53 = vld [vmem:[#allocation4 + $0x61] ss:$2 sm:$0xff]  ;;  %v4405_v51 = vld [vmem:[#allocation4 + $0x71] ss:$2 sm:$0xff] }
 0x2dc   : > { %v5426_v26 = vpop.f32.mrf.mxu1  ;;  %v4120_v38 = vadd.f32 %v5313_v24, %v3959_v45  ;;  %v4367_v24 = vld [vmem:[#allocation4 + $0x40] ss:$2 sm:$0xff] }
 0x2dd   : > { %4349 = vst.msk [vmem:[#allocation4 + $0xb0] sm:$0xff] %vm7732_vm3, %v4317_v9  ;;  %v4315_v50 = vmax.f32 %v4249_v62, 0.0  ;;  %v4260_v13 = vadd.f32 %v5426_v26, %v4099_v40  ;;  %v3962_v9 = vadd.f32 %v7747_v46, %v6954_v15  ;;  %v4131_v2 = vadd.f32 %v5322_v52, %v3970_v39  ;;  %vm7756_vm3 = vmmov %vm7650_vm0  ;;  %v4363_v52 = vld [vmem:[#allocation4 + $0x20] ss:$2 sm:$0xff]  ;;  %v4397_v39 = vld [vmem:[#allocation4 + $0x31] ss:$2 sm:$0xff] }
 0x2de   : > { %v4251_v18 = vpop.f32.mrf.mxu1  ;;  %v4393_v46 = vld [vmem:[#allocation4 + $0x11] ss:$2 sm:$0xff] }
 0x2df   : > { %4347 = vst.msk [vmem:[#allocation4 + $0xa0] sm:$0xff] %vm7734_vm13, %v4315_v50  ;;  %v4318_v37 = vmax.f32 %v4260_v13, 0.0  ;;  %v4252_v47 = vadd.f32 %v4251_v18, %v4091_v59  ;;  %v4123_v3 = vadd.f32 %v5316_v55, %v3962_v9  ;;  %vm7757_vm13 = vmmov %vm7650_vm0 }
 0x2e0   : > { %v5429_v1 = vpop.f32.mrf.mxu1  ;;  %v4409_v17 = vld [vmem:[#allocation4 + $0x91] ss:$2 sm:$0xff] }
 0x2e1   : > { %4350 = vst.msk [vmem:[#allocation4 + $0xb8] sm:$0xff] %vm7738_vm11, %v4318_v37  ;;  %v4316_v19 = vmax.f32 %v4252_v47, 0.0  ;;  %v4273_v32 = vadd.f32 %v5429_v1, %v4112_v11  ;;  %vm7758_vm11 = vmmov %vm7650_vm0 }
 0x2e2   : > { %v4264_v41 = vpop.f32.mrf.mxu1  ;;  %v4407_v20 = vld [vmem:[#allocation4 + $0x81] ss:$2 sm:$0xff] }
 0x2e3   : > { %4348 = vst.msk [vmem:[#allocation4 + $0xa8] sm:$0xff] %vm7740_vm10, %v4316_v19  ;;  %v4321_v7 = vmax.f32 %v4273_v32, 0.0  ;;  %v4265_v33 = vadd.f32 %v4264_v41, %v4104_v5  ;;  %v4375_v5 = vld [vmem:[#allocation4 + $0x80] ss:$2 sm:$0xff]  ;;  %v4377_v41 = vld [vmem:[#allocation4 + $0x90] ss:$2 sm:$0xff]  ;;  %vm7759_vm10 = vmmov %vm7650_vm0 }
 0x2e4   : > { %v5430_v0 = vpop.f32.mrf.mxu1  ;;  %v4431_v57 = vmax.f32 %v4377_v41, %v4409_v17 }
 0x2e5   : > { %4353 = vst.msk [vmem:[#allocation4 + $0xd0] sm:$0xff] %vm7743_vm2, %v4321_v7  ;;  %v4319_v12 = vmax.f32 %v4265_v33, 0.0  ;;  %v4276_v56 = vadd.f32 %v5430_v0, %v4115_v29  ;;  %v4430_v33 = vmax.f32 %v4375_v5, %v4407_v20  ;;  %v4371_v29 = vld [vmem:[#allocation4 + $0x60] ss:$2 sm:$0xff]  ;;  %vm7760_vm2 = vmmov %vm7650_vm0 }
 0x2e6   : > { %v4267_v42 = vpop.f32.mrf.mxu1  ;;  %v4428_v0 = vmax.f32 %v4371_v29, %v4403_v53 }
 0x2e7   : > { %4351 = vst.msk [vmem:[#allocation4 + $0xc0] sm:$0xff] %vm7745_vm5, %v4319_v12  ;;  %v4322_v4 = vmax.f32 %v4276_v56, 0.0  ;;  %v4268_v28 = vadd.f32 %v4267_v42, %v4107_v6  ;;  %v4442_v35 = vmax.f32 %v4430_v33, %v4431_v57  ;;  %v4399_v12 = vld [vmem:[#allocation4 + $0x41] ss:$2 sm:$0xff]  ;;  %v4429_v56 = vmax.f32 %v4373_v63, %v4405_v51  ;;  %v4369_v6 = vld [vmem:[#allocation4 + $0x50] ss:$2 sm:$0xff]  ;;  %vm7761_vm5 = vmmov %vm7650_vm0 }
 0x2e8   : > { %v5433_v30 = vpop.f32.mrf.mxu1  ;;  %v4381_v1 = vld [vmem:[#allocation4 + $0xb0] ss:$2 sm:$0xff]  ;;  %v4413_v61 = vld [vmem:[#allocation4 + $0xb1] ss:$2 sm:$0xff]  ;;  %v4426_v42 = vmax.f32 %v4367_v24, %v4399_v12 }
 0x2e9   : > { %4354 = vst.msk [vmem:[#allocation4 + $0xd8] sm:$0xff] %vm7746_vm12, %v4322_v4  ;;  %v4320_v49 = vmax.f32 %v4268_v28, 0.0  ;;  %v4289_v36 = vadd.f32 %v5433_v30, %v4128_v16  ;;  %v4433_v8 = vmax.f32 %v4381_v1, %v4413_v61  ;;  %v4441_v45 = vmax.f32 %v4428_v0, %v4429_v56  ;;  %v4395_v4 = vld [vmem:[#allocation4 + $0x21] ss:$2 sm:$0xff]  ;;  %v4365_v16 = vld [vmem:[#allocation4 + $0x30] ss:$2 sm:$0xff]  ;;  %vm7762_vm12 = vmmov %vm7650_vm0 }
 0x2ea   : > { %v4280_v22 = vpop.f32.mrf.mxu1  ;;  %v4379_v31 = vld [vmem:[#allocation4 + $0xa0] ss:$2 sm:$0xff]  ;;  %v4411_v23 = vld [vmem:[#allocation4 + $0xa1] ss:$2 sm:$0xff]  ;;  %v4427_v28 = vmax.f32 %v4369_v6, %v4401_v58  ;;  %v4424_v55 = vmax.f32 %v4363_v52, %v4395_v4 }
 0x2eb   : > { %4352 = vst.msk [vmem:[#allocation4 + $0xc8] sm:$0xff] %vm7650_vm0, %v4320_v49  ;;  %v4325_v62 = vmax.f32 %v4289_v36, 0.0  ;;  %v4281_v40 = vadd.f32 %v4280_v22, %v4120_v38  ;;  %v4432_v32 = vmax.f32 %v4379_v31, %v4411_v23  ;;  %v4359_v49 = vld [vmem:[#allocation4] ss:$2 sm:$0xff]  ;;  %v4391_v36 = vld [vmem:[#allocation4 + $0x1] ss:$2 sm:$0xff]  ;;  %v4425_v38 = vmax.f32 %v4365_v16, %v4397_v39 }
 0x2ec   : > { %v5434_v48 = vpop.f32.mrf.mxu1  ;;  %v4440_v30 = vmax.f32 %v4426_v42, %v4427_v28  ;;  %v4361_v22 = vld [vmem:[#allocation4 + $0x10] ss:$2 sm:$0xff] }
 0x2ed   : > { %4357 = vst.msk [vmem:[#allocation4 + $0xf0] sm:$0xff] %vm7748_vm14, %v4325_v62  ;;  %v4323_v34 = vmax.f32 %v4281_v40, 0.0  ;;  %v4292_v26 = vadd.f32 %v5434_v48, %v4131_v2  ;;  %v4443_v7 = vmax.f32 %v4432_v32, %v4433_v8  ;;  %v4439_v9 = vmax.f32 %v4424_v55, %v4425_v38  ;;  %vm7763_vm14 = vmmov %vm7650_vm0  ;;  %v7766_v48 = vld [vmem:[#allocation28_spill] sm:$0xff] }
 0x2ee   : > { %v4283_v21 = vpop.f32.mrf.mxu1  ;;  %v4422_v62 = vmax.f32 %v4359_v49, %v4391_v36  ;;  %v4423_v40 = vmax.f32 %v4361_v22, %v4393_v46 }
 0x2ef   : > { %4355 = vst.msk [vmem:[#allocation4 + $0xe0] sm:$0xff] %vm7749_vm9, %v4323_v34  ;;  %v4326_v44 = vmax.f32 %v4292_v26, 0.0  ;;  %v4284_v50 = vadd.f32 %v4283_v21, %v4123_v3  ;;  %vm7764_vm9 = vmmov %vm7650_vm0  ;;  %v7767_v34 = vld [vmem:[#allocation12_spill] sm:$0xff]  ;;  %v7768_v26 = vld [vmem:[#allocation9_spill] sm:$0xff]  ;;  %v7770_v3 = vmov 0.0  }
 0x2f0   : > { %v4385_v18 = vld [vmem:[#allocation4 + $0xd0] ss:$2 sm:$0xff]  ;;  %v4417_v47 = vld [vmem:[#allocation4 + $0xd1] ss:$2 sm:$0xff]  ;;  %v4438_v2 = vmax.f32 %v4422_v62, %v4423_v40 }
 0x2f1   : > { %4358 = vst.msk [vmem:[#allocation4 + $0xf8] sm:$0xff] %vm7750_vm6, %v4326_v44  ;;  %v4324_v13 = vmax.f32 %v4284_v50, 0.0  ;;  %v4435_v60 = vmax.f32 %v4385_v18, %v4417_v47  ;;  %vm7765_vm6 = vmmov %vm7650_vm0  ;;  %v7771_v50 = vld [vmem:[#allocation10_spill] sm:$0xff] }
 0x2f2   : > { %v4383_v15 = vld [vmem:[#allocation4 + $0xc0] ss:$2 sm:$0xff]  ;;  %v4415_v10 = vld [vmem:[#allocation4 + $0xc1] ss:$2 sm:$0xff] }
 0x2f3   : > { %4356 = vst.msk [vmem:[#allocation4 + $0xe8] sm:$0xff] %vm7751_vm1, %v4324_v13  ;;  %v4434_v54 = vmax.f32 %v4383_v15, %v4415_v10  ;;  %vm681_vm1 = vcmp.eq.s32.totalorder %v7767_v34, %v7766_v48  ;;  %v7772_v13 = vld [vmem:[#allocation11_spill] sm:$0xff]  ;;  %v7776_v10 = vld [vmem:[#allocation13_spill] sm:$0xff] }
 0x2f4   : > { %v4691_v21 = vsel %vm681_vm1, 1.0, %v7770_v3  ;;  %vm7783_vm1 = vmmov %vm7650_vm0 }
 0x2f5   : > { %v4444_v19 = vmax.f32 %v4434_v54, %v4435_v60 }
 0x2f8   : > { %v4389_v59 = vld [vmem:[#allocation4 + $0xf0] ss:$2 sm:$0xff]  ;;  %v4421_v27 = vld [vmem:[#allocation4 + $0xf1] ss:$2 sm:$0xff] }
 0x2f9   : > { %v4437_v43 = vmax.f32 %v4389_v59, %v4421_v27  ;;  %v7775_v27 = vld [vmem:[#allocation14_spill] sm:$0xff] }
 0x2fa   : > { %v4387_v25 = vld [vmem:[#allocation4 + $0xe0] ss:$2 sm:$0xff]  ;;  %v4419_v37 = vld [vmem:[#allocation4 + $0xe1] ss:$2 sm:$0xff] }
 0x2fb   : > { %v4436_v11 = vmax.f32 %v4387_v25, %v4419_v37  ;;  %v7779_v37 = vld [vmem:[#allocation15_spill] sm:$0xff] }
 0x2fd   : > { %v4445_v14 = vmax.f32 %v4436_v11, %v4437_v43 }
 0x2ff   : > { %5435 = vmatprep.subr.msk.mxu0 %vm7752_vm7, %v4445_v14  ;;  %vm682_vm7 = vcmp.eq.s32.totalorder %v7768_v26, %v7766_v48 }
 0x300   : > { %5436 = vmatpush3.xpose.msk.msra.mxu0 %vm7753_vm8, %v4445_v14  ;;  %vm7769_vm8 = vmmov %vm7650_vm0  ;;  %v4692_v44 = vsel %vm682_vm7, 1.0, %v7770_v3 }
 0x301   : > { %5437 = vmatprep.subr.msk.mxu0 %vm7754_vm15, %v4444_v19  ;;  %vm683_vm15 = vcmp.eq.s32.totalorder %v7771_v50, %v7766_v48  ;;  %vm7784_vm7 = vmmov %vm7650_vm0 }
 0x302   : > { %v4693_v15 = vsel %vm683_vm15, 1.0, %v7770_v3  ;;  %vm7786_vm15 = vmmov %vm7650_vm0 }
 0x304   : > { %5438 = vmatpush3.xpose.msk.msra.mxu0 %vm7755_vm4, %v4444_v19  ;;  %vm684_vm4 = vcmp.eq.s32.totalorder %v7772_v13, %v7766_v48 }
 0x305   : > { %5439 = vmatprep.subr.msk.mxu0 %vm7756_vm3, %v4443_v7  ;;  %vm7773_vm3 = vmmov %vm7650_vm0  ;;  %v4694_v59 = vsel %vm684_vm4, 1.0, %v7770_v3 }
 0x306   : > { %vm7787_vm4 = vmmov %vm7650_vm0 }
 0x308   : > { %5440 = vmatpush3.xpose.msk.msra.mxu0 %vm7757_vm13, %v4443_v7  ;;  %vm7774_vm13 = vmmov %vm7650_vm0 }
 0x309   : > { %5441 = vmatprep.subr.msk.mxu0 %vm7758_vm11, %v4442_v35  ;;  %vm685_vm11 = vcmp.eq.s32.totalorder %v7775_v27, %v7766_v48 }
 0x30a   : > { %v4695_v18 = vsel %vm685_vm11, 1.0, %v7770_v3 }
 0x30c   : > { %5442 = vmatpush3.xpose.msk.msra.mxu0 %vm7759_vm10, %v4442_v35  ;;  %vm686_vm10 = vcmp.eq.s32.totalorder %v7776_v10, %v7766_v48 }
 0x30d   : > { %5443 = vmatprep.subr.msk.mxu0 %vm7760_vm2, %v4441_v45  ;;  %vm7777_vm2 = vmmov %vm7650_vm0  ;;  %v4696_v25 = vsel %vm686_vm10, 1.0, %v7770_v3 }
 0x310   : > { %5444 = vmatpush3.xpose.msk.msra.mxu0 %vm7761_vm5, %v4441_v45  ;;  %vm7778_vm5 = vmmov %vm7650_vm0 }
 0x311   : > { %5445 = vmatprep.subr.msk.mxu0 %vm7762_vm12, %v4440_v30  ;;  %vm687_vm12 = vcmp.eq.s32.totalorder %v7779_v37, %v7766_v48 }
 0x312   : > { %v4697_v47 = vsel %vm687_vm12, 1.0, %v7770_v3 }
 0x314   : > { %5446 = vmatpush3.xpose.msk.msra.mxu0 %vm7650_vm0, %v4440_v30 }
 0x315   : > { %5447 = vmatprep.subr.msk.mxu0 %vm7763_vm14, %v4439_v9  ;;  %vm7780_vm14 = vmmov %vm7650_vm0 }
 0x318   : > { %5448 = vmatpush3.xpose.msk.msra.mxu0 %vm7764_vm9, %v4439_v9  ;;  %vm7781_vm9 = vmmov %vm7650_vm0 }
 0x319   : > { %5449 = vmatprep.subr.msk.mxu0 %vm7765_vm6, %v4438_v2  ;;  %vm7782_vm6 = vmmov %vm7650_vm0 }
 0x31c   : > { %5450 = vmatpush3.xpose.msk.msra.mxu0 %vm7769_vm8, %v4438_v2  ;;  %vm7785_vm8 = vmmov %vm7650_vm0 }
 0x31f   : > { %5452 = vmatmul.mubr.msk.f32.vlgmr.msra.gmra.mxu0 %vm7773_vm3, %v4691_v21  ;;  %vm7788_vm3 = vmmov %vm7650_vm0 }
 0x320   : > { %5454 = vmatprep.mubr.msk.f32.mxu0 %vm7774_vm13, %v4692_v44  ;;  %vm7789_vm13 = vmmov %vm7650_vm0 }
 0x323   : > { %5455 = vmatmul.mubr.msk.f32.gmra.mxu0 %vm7777_vm2, %v4693_v15 }
 0x324   : > { %5457 = vmatprep.mubr.msk.f32.mxu0 %vm7778_vm5, %v4694_v59 }
 0x327   : > { %5458 = vmatmul.mubr.msk.f32.gmra.mxu0 %vm7650_vm0, %v4695_v18 }
 0x328   : > { %5460 = vmatprep.mubr.msk.f32.mxu0 %vm7780_vm14, %v4696_v25 }
 0x32b   : > { %5461 = vmatmul.mubr.msk.f32.gmra.mxu0 %vm7781_vm9, %v4697_v47 }
 0x3df   : > { %v5453_v11 = vpop.f32.mrf.mxu0 }
 0x3e0   : > { %4600 = vst.msk [vmem:[%s190_s7 + $0x8] sm:$0xff] %vm7782_vm6, %v5453_v11 }
 0x3e1   : > { %v4560_v43 = vpop.f32.mrf.mxu0 }
 0x3e2   : > { %4599 = vst.msk [vmem:[%s190_s7] sm:$0xff] %vm7783_vm1, %v4560_v43 }
 0x3e3   : > { %v5456_v54 = vpop.f32.mrf.mxu0 }
 0x3e4   : > { %4602 = vst.msk [vmem:[%s190_s7 + $0x18] sm:$0xff] %vm7784_vm7, %v5456_v54 }
 0x3e5   : > { %v4570_v31 = vpop.f32.mrf.mxu0 }
 0x3e6   : > { %4601 = vst.msk [vmem:[%s190_s7 + $0x10] sm:$0xff] %vm7785_vm8, %v4570_v31 }
 0x3e7   : > { %v5459_v23 = vpop.f32.mrf.mxu0 }
 0x3e8   : > { %4604 = vst.msk [vmem:[%s190_s7 + $0x28] sm:$0xff] %vm7786_vm15, %v5459_v23 }
 0x3e9   : > { %v4580_v14 = vpop.f32.mrf.mxu0 }
 0x3ea   : > { %4603 = vst.msk [vmem:[%s190_s7 + $0x20] sm:$0xff] %vm7787_vm4, %v4580_v14 }
 0x3eb   : > { %v5462_v60 = vpop.f32.mrf.mxu0 }
 0x3ec   : > { %4606 = vst.msk [vmem:[%s190_s7 + $0x38] sm:$0xff] %vm7788_vm3, %v5462_v60 }
 0x3ed   : > { %v4590_v1 = vpop.f32.mrf.mxu0 }
 0x3ee   : > { %4605 = vst.msk [vmem:[%s190_s7 + $0x30] sm:$0xff] %vm7789_vm13, %v4590_v1 }
 0x3ef   : > { %5684 = shalt.err (!%p5681_p3)
}
 0x3f0   : > { %s5685_s23 = scalar_lea.hbm %s7340_s13, 1024  ;;  %s5689_s29 = scalar_lea.hbm %s7390_s4, 2048 }
 0x3f1   : > { %p5686_p4 = scmp.ne.s32.totalorder %s7340_s13, %s5685_s23  ;;  %p5690_p9 = scmp.lt.s32.totalorder %s7340_s13, %s7390_s4 }
 0x3f2   : > { %p5691_p10 = scmp.lt.s32.totalorder %s5689_s29, %s5685_s23 }
 0x3f3   : > { %p5687_p7 = pnand %p5686_p4, %p5801_p5 }
 0x3f4   : > { %p5692_p11 = por %p5691_p10, %p5690_p9 }
 0x3f5   : > { %p5688_p8 = pneg %p5687_p7 }
 0x3f7   : > { %p5693_p12 = pnand %p5692_p11, %p5688_p8 }
 0x3f9   : > { %5696 = shalt.err (!%p5693_p12)
}
 0x3fa   : > { %s5736_s6 = smov 128   ;;  %s5737_s7 = smov 8  }
 0x3fb   : > { %5463 = dma.vmem_to_hbm [thread:$0]  (%p5801_p5), %s7342_s9, 1024, %s7340_s13, %s7346_s19, %s5736_s6, %s5736_s6, %s5737_s7  }
 0x3fc PF: > { %p5469_p13 = scmp.ge.s32.totalorder %s5731_s18, 2  ;;  %s4636_s8 = sand.u32 1, %s5719_s15  }
 0x3fd   : > { %s4637_s11 = scalar_lea.sflag [#allocation6], %s4636_s8 }
 0x3fe   : > { %p5466_p0 = pnand %p5469_p13, %p5805_p6 }
 0x400   : > { %p5467_p1 = pneg %p5466_p0 }
 0x402   : > { %5714 = dma.done.wait (%p5467_p1), %s4637_s11, 1024  }
 0x403   : > { %5716 = vsyncadd (%p5467_p1), %s4637_s11, 4294966272  ;;  %p14_p2 = scmp.ge.s32.totalorder %s5788_s21, 4   ;;  %s7790_s15 = smov %s5723_s16 }
 0x404   : > { %s7791_s16 = smov %s5727_s17  ;;  %s7792_s17 = smov %s5799_s24 }
 0x405   : > { %s7793_s18 = smov %s5788_s21  ;;  %16 = sbr.rel (!%p14_p2) target bundleno = 3 (0x3), region = 102 }
 0x40a   :  { %4642 = vsyncpa [#allocation6], 1 }
 0x40b   :  { %4644 = vsyncpa [#allocation6 + $0x1], 1 }

</bundles_post_ra>
